<compile_context>
chip_gen: v7x
topology: tpu7x:2x2x1
jax: 0.10.0
libtpu: 0.0.40
codegen_flags: <defaults>
</compile_context>

<pallas_src>
import jax
import jax.numpy as jnp
import numpy as np
from jax import lax
from jax.experimental import pallas as pl
from jax.experimental.pallas import tpu as pltpu

OPAD = 128  # lane-dense output width (final result is sliced to O outside)


def _make_kernel(B, T, I, H, O):
    FI = 4 * I

    def kernel(x_ref, wr_ref, bbl_ref,
               wih0x_ref, wih0m_ref, whh0_ref, b0_ref,
               wih1_ref, whh1_ref, b1_ref,
               wih2_ref, whh2_ref, b2_ref,
               wl1x_ref, wl1m_ref, wl1h_ref, bl1_ref,
               wl2_ref, bl2_ref,
               out_ref,
               seq_a_sc, seq_b_sc):
        x = x_ref[...]                                            # (T*B, I) time-major

        # ---- Bilinear(x, x): bil[t,o] = sum_i x[t,i] * (sum_j x[t,j]*W[o,i,j]) + b[o]
        y = jnp.dot(x, wr_ref[...], preferred_element_type=jnp.float32)   # (T*B, I*4I)
        bil = x[:, 0:1] * y[:, 0:FI]
        for i in range(1, I):
            bil = bil + x[:, i:i + 1] * y[:, i * FI:(i + 1) * FI]
        bil = bil + bbl_ref[...]                                   # (T*B, 4I)

        # ---- One LSTM layer's serial recurrence (input projection already hoisted).
        def run_recurrence(gates_in, whh_ref, out_sc):
            whh = whh_ref[...]
            h = jnp.zeros((B, H), jnp.float32)
            c = jnp.zeros((B, H), jnp.float32)
            for t in range(T):                                     # fully unrolled, static
                r0 = t * B
                gates = (gates_in[r0:r0 + B, :]
                         + jnp.dot(h, whh, preferred_element_type=jnp.float32))
                # Gate columns pre-permuted to [i, f, o | g]:
                s = jax.nn.sigmoid(gates[:, 0:3 * H])              # i, f, o in one pass
                i_g = s[:, 0:H]
                f_g = s[:, H:2 * H]
                o_g = s[:, 2 * H:3 * H]
                g_g = jnp.tanh(gates[:, 3 * H:4 * H])
                c = f_g * c + i_g * g_g
                h = o_g * jnp.tanh(c)
                out_sc[r0:r0 + B, :] = h

        # ---- 3-layer LSTM with hoisted (T*B, 4H) input projections.
        g0 = (jnp.dot(x, wih0x_ref[...], preferred_element_type=jnp.float32)
              + jnp.dot(bil, wih0m_ref[...], preferred_element_type=jnp.float32)
              + b0_ref[...])
        run_recurrence(g0, whh0_ref, seq_a_sc)

        g1 = (jnp.dot(seq_a_sc[...], wih1_ref[...], preferred_element_type=jnp.float32)
              + b1_ref[...])
        run_recurrence(g1, whh1_ref, seq_b_sc)

        g2 = (jnp.dot(seq_b_sc[...], wih2_ref[...], preferred_element_type=jnp.float32)
              + b2_ref[...])
        run_recurrence(g2, whh2_ref, seq_a_sc)

        # ---- concat([x, bil, lstm_out]) -> Linear1 -> Linear2 (concat folded).
        o1 = (jnp.dot(x, wl1x_ref[...], preferred_element_type=jnp.float32)
              + jnp.dot(bil, wl1m_ref[...], preferred_element_type=jnp.float32)
              + jnp.dot(seq_a_sc[...], wl1h_ref[...], preferred_element_type=jnp.float32)
              + bl1_ref[...])                                      # (T*B, 5O)
        # Linear2 weight/bias are zero-padded to OPAD lanes in the wrapper so
        # this store is a full, unmasked lane-dense vst (no vst.msk).
        out_ref[...] = (jnp.dot(o1, wl2_ref[...], preferred_element_type=jnp.float32)
                        + bl2_ref[...]).astype(out_ref.dtype)

    return kernel


def bilinear_lstm_forward(x, params, lstm_size):
    """x: (B, T, I) float32. params mirror the PyTorch module's parameters."""
    B, T, I = x.shape
    H = lstm_size
    W_bl, b_bl, lstm, Wl1, bl1, Wl2, bl2 = params
    assert len(lstm) == 3, "kernel is specialized to lstm_layers=3"
    O = Wl2.shape[0]
    FI = 4 * I
    TB = T * B

    # Time-major flatten: row t*B + b  <->  (batch b, frame t).
    x_tm = jnp.transpose(x, (1, 0, 2)).reshape(TB, I)

    # Bilinear weight repack:  Wr[j, i*FI + o] = W_bl[o, i, j].
    Wr = jnp.transpose(W_bl, (2, 1, 0)).reshape(I, I * FI)
    bbl = b_bl.reshape(1, FI)

    # Gate-column permutation: torch order (i, f, g, o) -> (i, f, o, g) so the
    # kernel applies one sigmoid over 3H lanes and one tanh over H lanes.
    perm = np.concatenate([np.arange(0, 2 * H),
                           np.arange(3 * H, 4 * H),
                           np.arange(2 * H, 3 * H)])

    def pack_layer(Wih, Whh, bih, bhh):
        return Wih.T[:, perm], Whh.T[:, perm], (bih + bhh)[perm].reshape(1, 4 * H)

    Wih0, Whh0, b0 = pack_layer(*lstm[0])
    Wih1, Whh1, b1 = pack_layer(*lstm[1])
    Wih2, Whh2, b2 = pack_layer(*lstm[2])
    # Split layer-0 input weights so concat([x, bilinear]) becomes a sum of matmuls.
    Wih0x, Wih0m = Wih0[:I, :], Wih0[I:, :]

    # Linear1 split row-wise into [x | bilinear | lstm_out] parts.
    Wl1T = Wl1.T                                  # (5I + H, 5O)
    Wl1x, Wl1m, Wl1h = Wl1T[:I, :], Wl1T[I:5 * I, :], Wl1T[5 * I:, :]

    # Linear2 padded to OPAD lanes -> unmasked lane-dense output store.
    Wl2p = jnp.zeros((5 * O, OPAD), jnp.float32).at[:, :O].set(Wl2.T)
    bl2p = jnp.zeros((1, OPAD), jnp.float32).at[0, :O].set(bl2)

    args = [x_tm, Wr, bbl,
            Wih0x, Wih0m, Whh0, b0,
            Wih1, Whh1, b1,
            Wih2, Whh2, b2,
            Wl1x, Wl1m, Wl1h, bl1.reshape(1, -1),
            Wl2p, bl2p]

    in_specs = [pl.BlockSpec(a.shape, lambda i: (0, 0)) for a in args]

    out_padded = pl.pallas_call(
        _make_kernel(B, T, I, H, O),
        out_shape=jax.ShapeDtypeStruct((TB, OPAD), jnp.float32),
        grid_spec=pltpu.PrefetchScalarGridSpec(
            num_scalar_prefetch=0,
            grid=(1,),
            in_specs=in_specs,
            out_specs=pl.BlockSpec((TB, OPAD), lambda i: (0, 0)),
            scratch_shapes=[
                pltpu.VMEM((TB, H), jnp.float32),   # LSTM layer output (ping)
                pltpu.VMEM((TB, H), jnp.float32),   # LSTM layer output (pong)
            ],
        ),
        compiler_params=pltpu.CompilerParams(
            dimension_semantics=("arbitrary",)),
    )(*args)

    out_tm = out_padded[:, :O]
    return jnp.transpose(out_tm.reshape(T, B, O), (1, 0, 2))


def reference_forward(x, params, lstm_size):
    """Pure-JAX reference matching torch semantics (gate order i,f,g,o)."""
    W_bl, b_bl, lstm, Wl1, bl1, Wl2, bl2 = params
    H = lstm_size
    B, T, _ = x.shape
    mix = jnp.einsum('bti,oij,btj->bto', x, W_bl, x) + b_bl
    mix = jnp.concatenate([x, mix], axis=-1)
    seq = mix
    for (Wih, Whh, bih, bhh) in lstm:
        h = jnp.zeros((B, H), jnp.float32)
        c = jnp.zeros((B, H), jnp.float32)
        outs = []
        for t in range(T):
            g = seq[:, t] @ Wih.T + h @ Whh.T + bih + bhh
            i_ = jax.nn.sigmoid(g[:, :H])
            f_ = jax.nn.sigmoid(g[:, H:2 * H])
            gg = jnp.tanh(g[:, 2 * H:3 * H])
            o_ = jax.nn.sigmoid(g[:, 3 * H:])
            c = f_ * c + i_ * gg
            h = o_ * jnp.tanh(c)
            outs.append(h)
        seq = jnp.stack(outs, axis=1)
    cat = jnp.concatenate([mix, seq], axis=-1)
    out = cat @ Wl1.T + bl1
    out = out @ Wl2.T + bl2
    return out


if __name__ == "__main__":
    # Small shapes consistent with the module's forward:
    #   batch=2, frames=8, input_size=4, out_size=2, lstm_size=32, lstm_layers=3
    B, T, I, O, H, L = 2, 8, 4, 2, 32, 3

    key = jax.random.PRNGKey(0)
    keys = iter(jax.random.split(key, 32))

    def nrm(shape):
        return jax.random.normal(next(keys), shape, jnp.float32) * 0.1

    x = nrm((B, T, I))

    # Deterministic synthetic parameters (shapes match torch module __init__).
    W_bl = nrm((4 * I, I, I))          # nn.Bilinear(I, I, 4I).weight
    b_bl = nrm((4 * I,))               # nn.Bilinear bias
    lstm = []
    d_in = 5 * I
    for _ in range(L):
        Wih = nrm((4 * H, d_in))       # weight_ih_l{k}
        Whh = nrm((4 * H, H))          # weight_hh_l{k}
        bih = nrm((4 * H,))
        bhh = nrm((4 * H,))
        lstm.append((Wih, Whh, bih, bhh))
        d_in = H
    Wl1 = nrm((5 * O, 5 * I + H))      # nn.Linear(lstm_size + 5I, 5O)
    bl1 = nrm((5 * O,))
    Wl2 = nrm((O, 5 * O))              # nn.Linear(5O, O)
    bl2 = nrm((O,))

    params = (W_bl, b_bl, lstm, Wl1, bl1, Wl2, bl2)

    out = bilinear_lstm_forward(x, params, H)
    out = jax.block_until_ready(out)

    ref = reference_forward(x, params, H)
    assert out.shape == (B, T, O)
    np.testing.assert_allclose(np.asarray(out), np.asarray(ref), rtol=2e-3, atol=2e-4)

    print("KERNEL_OK")
</pallas_src>

<mosaic_0001>
module attributes {stable_mosaic.version = 11 : i64} {
  func.func @kernel(%arg0: i32, %arg1: memref<16x4xf32, #tpu.memory_space<vmem>>, %arg2: memref<4x64xf32, #tpu.memory_space<vmem>>, %arg3: memref<1x16xf32, #tpu.memory_space<vmem>>, %arg4: memref<4x128xf32, #tpu.memory_space<vmem>>, %arg5: memref<16x128xf32, #tpu.memory_space<vmem>>, %arg6: memref<32x128xf32, #tpu.memory_space<vmem>>, %arg7: memref<1x128xf32, #tpu.memory_space<vmem>>, %arg8: memref<32x128xf32, #tpu.memory_space<vmem>>, %arg9: memref<32x128xf32, #tpu.memory_space<vmem>>, %arg10: memref<1x128xf32, #tpu.memory_space<vmem>>, %arg11: memref<32x128xf32, #tpu.memory_space<vmem>>, %arg12: memref<32x128xf32, #tpu.memory_space<vmem>>, %arg13: memref<1x128xf32, #tpu.memory_space<vmem>>, %arg14: memref<4x10xf32, #tpu.memory_space<vmem>>, %arg15: memref<16x10xf32, #tpu.memory_space<vmem>>, %arg16: memref<32x10xf32, #tpu.memory_space<vmem>>, %arg17: memref<1x10xf32, #tpu.memory_space<vmem>>, %arg18: memref<10x128xf32, #tpu.memory_space<vmem>>, %arg19: memref<1x128xf32, #tpu.memory_space<vmem>>, %arg20: memref<16x128xf32, #tpu.memory_space<vmem>>, %arg21: memref<16x32xf32, #tpu.memory_space<vmem>>, %arg22: memref<16x32xf32, #tpu.memory_space<vmem>>) attributes {dimension_semantics = [#tpu.dimension_semantics<arbitrary>], iteration_bounds = array<i64: 1>, scalar_prefetch = 0 : i64, scratch_operands = 2 : i64, tpu.core_type = #tpu.core_type<tc>, window_params = [{pipeline_mode = #tpu.pipeline_mode<synchronous>, transform_indices = @transform_0, window_bounds = array<i64: 16, 4>}, {pipeline_mode = #tpu.pipeline_mode<synchronous>, transform_indices = @transform_1, window_bounds = array<i64: 4, 64>}, {pipeline_mode = #tpu.pipeline_mode<synchronous>, transform_indices = @transform_2, window_bounds = array<i64: 1, 16>}, {pipeline_mode = #tpu.pipeline_mode<synchronous>, transform_indices = @transform_3, window_bounds = array<i64: 4, 128>}, {pipeline_mode = #tpu.pipeline_mode<synchronous>, transform_indices = @transform_4, window_bounds = array<i64: 16, 128>}, {pipeline_mode = #tpu.pipeline_mode<synchronous>, transform_indices = @transform_5, window_bounds = array<i64: 32, 128>}, {pipeline_mode = #tpu.pipeline_mode<synchronous>, transform_indices = @transform_6, window_bounds = array<i64: 1, 128>}, {pipeline_mode = #tpu.pipeline_mode<synchronous>, transform_indices = @transform_7, window_bounds = array<i64: 32, 128>}, {pipeline_mode = #tpu.pipeline_mode<synchronous>, transform_indices = @transform_8, window_bounds = array<i64: 32, 128>}, {pipeline_mode = #tpu.pipeline_mode<synchronous>, transform_indices = @transform_9, window_bounds = array<i64: 1, 128>}, {pipeline_mode = #tpu.pipeline_mode<synchronous>, transform_indices = @transform_10, window_bounds = array<i64: 32, 128>}, {pipeline_mode = #tpu.pipeline_mode<synchronous>, transform_indices = @transform_11, window_bounds = array<i64: 32, 128>}, {pipeline_mode = #tpu.pipeline_mode<synchronous>, transform_indices = @transform_12, window_bounds = array<i64: 1, 128>}, {pipeline_mode = #tpu.pipeline_mode<synchronous>, transform_indices = @transform_13, window_bounds = array<i64: 4, 10>}, {pipeline_mode = #tpu.pipeline_mode<synchronous>, transform_indices = @transform_14, window_bounds = array<i64: 16, 10>}, {pipeline_mode = #tpu.pipeline_mode<synchronous>, transform_indices = @transform_15, window_bounds = array<i64: 32, 10>}, {pipeline_mode = #tpu.pipeline_mode<synchronous>, transform_indices = @transform_16, window_bounds = array<i64: 1, 10>}, {pipeline_mode = #tpu.pipeline_mode<synchronous>, transform_indices = @transform_17, window_bounds = array<i64: 10, 128>}, {pipeline_mode = #tpu.pipeline_mode<synchronous>, transform_indices = @transform_18, window_bounds = array<i64: 1, 128>}, {pipeline_mode = #tpu.pipeline_mode<synchronous>, transform_indices = @transform_19, window_bounds = array<i64: 16, 128>}]} {
    %c0 = arith.constant 0 : index
    %c0_0 = arith.constant 0 : index
    %0 = vector.load %arg1[%c0, %c0_0] : memref<16x4xf32, #tpu.memory_space<vmem>>, vector<16x4xf32>
    %c0_1 = arith.constant 0 : index
    %c0_2 = arith.constant 0 : index
    %1 = vector.load %arg2[%c0_1, %c0_2] : memref<4x64xf32, #tpu.memory_space<vmem>>, vector<4x64xf32>
    %cst = arith.constant dense<0.000000e+00> : vector<16x64xf32>
    %2 = tpu.matmul %0, %1, %cst {dimension_numbers = #tpu.dot_dimension_numbers<[1], [0], [0], [1], [0, 0, 1, 1], [], []>} : vector<16x4xf32>, vector<4x64xf32>, vector<16x64xf32> -> vector<16x64xf32>
    %3 = vector.extract_strided_slice %0 {offsets = [0, 0], sizes = [16, 1], strides = [1, 1]} : vector<16x4xf32> to vector<16x1xf32>
    %4 = vector.extract_strided_slice %2 {offsets = [0, 0], sizes = [16, 16], strides = [1, 1]} : vector<16x64xf32> to vector<16x16xf32>
    %5 = vector.broadcast %3 : vector<16x1xf32> to vector<16x16xf32>
    %6 = arith.mulf %5, %4 : vector<16x16xf32>
    %7 = vector.extract_strided_slice %0 {offsets = [0, 1], sizes = [16, 1], strides = [1, 1]} : vector<16x4xf32> to vector<16x1xf32>
    %8 = vector.extract_strided_slice %2 {offsets = [0, 16], sizes = [16, 16], strides = [1, 1]} : vector<16x64xf32> to vector<16x16xf32>
    %9 = vector.broadcast %7 : vector<16x1xf32> to vector<16x16xf32>
    %10 = arith.mulf %9, %8 : vector<16x16xf32>
    %11 = arith.addf %6, %10 : vector<16x16xf32>
    %12 = vector.extract_strided_slice %0 {offsets = [0, 2], sizes = [16, 1], strides = [1, 1]} : vector<16x4xf32> to vector<16x1xf32>
    %13 = vector.extract_strided_slice %2 {offsets = [0, 32], sizes = [16, 16], strides = [1, 1]} : vector<16x64xf32> to vector<16x16xf32>
    %14 = vector.broadcast %12 : vector<16x1xf32> to vector<16x16xf32>
    %15 = arith.mulf %14, %13 : vector<16x16xf32>
    %16 = arith.addf %11, %15 : vector<16x16xf32>
    %17 = vector.extract_strided_slice %0 {offsets = [0, 3], sizes = [16, 1], strides = [1, 1]} : vector<16x4xf32> to vector<16x1xf32>
    %18 = vector.extract_strided_slice %2 {offsets = [0, 48], sizes = [16, 16], strides = [1, 1]} : vector<16x64xf32> to vector<16x16xf32>
    %19 = vector.broadcast %17 : vector<16x1xf32> to vector<16x16xf32>
    %20 = arith.mulf %19, %18 : vector<16x16xf32>
    %21 = arith.addf %16, %20 : vector<16x16xf32>
    %c0_3 = arith.constant 0 : index
    %c0_4 = arith.constant 0 : index
    %22 = vector.load %arg3[%c0_3, %c0_4] : memref<1x16xf32, #tpu.memory_space<vmem>>, vector<1x16xf32>
    %23 = vector.broadcast %22 : vector<1x16xf32> to vector<16x16xf32>
    %24 = arith.addf %21, %23 : vector<16x16xf32>
    %c0_5 = arith.constant 0 : index
    %c0_6 = arith.constant 0 : index
    %25 = vector.load %arg4[%c0_5, %c0_6] : memref<4x128xf32, #tpu.memory_space<vmem>>, vector<4x128xf32>
    %cst_7 = arith.constant dense<0.000000e+00> : vector<16x128xf32>
    %26 = tpu.matmul %0, %25, %cst_7 {dimension_numbers = #tpu.dot_dimension_numbers<[1], [0], [0], [1], [0, 0, 1, 1], [], []>} : vector<16x4xf32>, vector<4x128xf32>, vector<16x128xf32> -> vector<16x128xf32>
    %c0_8 = arith.constant 0 : index
    %c0_9 = arith.constant 0 : index
    %27 = vector.load %arg5[%c0_8, %c0_9] : memref<16x128xf32, #tpu.memory_space<vmem>>, vector<16x128xf32>
    %cst_10 = arith.constant dense<0.000000e+00> : vector<16x128xf32>
    %28 = tpu.matmul %24, %27, %cst_10 {dimension_numbers = #tpu.dot_dimension_numbers<[1], [0], [0], [1], [0, 0, 1, 1], [], []>} : vector<16x16xf32>, vector<16x128xf32>, vector<16x128xf32> -> vector<16x128xf32>
    %29 = arith.addf %26, %28 : vector<16x128xf32>
    %c0_11 = arith.constant 0 : index
    %c0_12 = arith.constant 0 : index
    %30 = vector.load %arg7[%c0_11, %c0_12] : memref<1x128xf32, #tpu.memory_space<vmem>>, vector<1x128xf32>
    %31 = vector.broadcast %30 : vector<1x128xf32> to vector<16x128xf32>
    %32 = arith.addf %29, %31 : vector<16x128xf32>
    %c0_13 = arith.constant 0 : index
    %c0_14 = arith.constant 0 : index
    %33 = vector.load %arg6[%c0_13, %c0_14] : memref<32x128xf32, #tpu.memory_space<vmem>>, vector<32x128xf32>
    %cst_15 = arith.constant 0.000000e+00 : f32
    %34 = vector.broadcast %cst_15 : f32 to vector<2x32xf32>
    %cst_16 = arith.constant 0.000000e+00 : f32
    %35 = vector.broadcast %cst_16 : f32 to vector<2x32xf32>
    %36 = vector.extract_strided_slice %32 {offsets = [0, 0], sizes = [2, 128], strides = [1, 1]} : vector<16x128xf32> to vector<2x128xf32>
    %cst_17 = arith.constant dense<0.000000e+00> : vector<2x128xf32>
    %37 = tpu.matmul %34, %33, %cst_17 {dimension_numbers = #tpu.dot_dimension_numbers<[1], [0], [0], [1], [0, 0, 1, 1], [], []>} : vector<2x32xf32>, vector<32x128xf32>, vector<2x128xf32> -> vector<2x128xf32>
    %38 = arith.addf %36, %37 : vector<2x128xf32>
    %39 = vector.extract_strided_slice %38 {offsets = [0, 0], sizes = [2, 96], strides = [1, 1]} : vector<2x128xf32> to vector<2x96xf32>
    %40 = arith.negf %39 : vector<2x96xf32>
    %41 = math.exp %40 : vector<2x96xf32>
    %cst_18 = arith.constant 1.000000e+00 : f32
    %42 = vector.broadcast %cst_18 : f32 to vector<2x96xf32>
    %43 = arith.addf %42, %41 : vector<2x96xf32>
    %44 = arith.divf %42, %43 : vector<2x96xf32>
    %45 = vector.extract_strided_slice %44 {offsets = [0, 0], sizes = [2, 32], strides = [1, 1]} : vector<2x96xf32> to vector<2x32xf32>
    %46 = vector.extract_strided_slice %44 {offsets = [0, 32], sizes = [2, 32], strides = [1, 1]} : vector<2x96xf32> to vector<2x32xf32>
    %47 = vector.extract_strided_slice %44 {offsets = [0, 64], sizes = [2, 32], strides = [1, 1]} : vector<2x96xf32> to vector<2x32xf32>
    %48 = vector.extract_strided_slice %38 {offsets = [0, 96], sizes = [2, 32], strides = [1, 1]} : vector<2x128xf32> to vector<2x32xf32>
    %49 = math.tanh %48 : vector<2x32xf32>
    %50 = arith.mulf %46, %35 : vector<2x32xf32>
    %51 = arith.mulf %45, %49 : vector<2x32xf32>
    %52 = arith.addf %50, %51 : vector<2x32xf32>
    %53 = math.tanh %52 : vector<2x32xf32>
    %54 = arith.mulf %47, %53 : vector<2x32xf32>
    %c0_19 = arith.constant 0 : index
    %c0_20 = arith.constant 0 : index
    %55 = vector.load %arg21[%c0_19, %c0_20] : memref<16x32xf32, #tpu.memory_space<vmem>>, vector<2x32xf32>
    tpu.vector_store %arg21[%c0_19, %c0_20], %54 {strides = array<i32>} : memref<16x32xf32, #tpu.memory_space<vmem>>, vector<2x32xf32>,
    %56 = vector.extract_strided_slice %32 {offsets = [2, 0], sizes = [2, 128], strides = [1, 1]} : vector<16x128xf32> to vector<2x128xf32>
    %cst_21 = arith.constant dense<0.000000e+00> : vector<2x128xf32>
    %57 = tpu.matmul %54, %33, %cst_21 {dimension_numbers = #tpu.dot_dimension_numbers<[1], [0], [0], [1], [0, 0, 1, 1], [], []>} : vector<2x32xf32>, vector<32x128xf32>, vector<2x128xf32> -> vector<2x128xf32>
    %58 = arith.addf %56, %57 : vector<2x128xf32>
    %59 = vector.extract_strided_slice %58 {offsets = [0, 0], sizes = [2, 96], strides = [1, 1]} : vector<2x128xf32> to vector<2x96xf32>
    %60 = arith.negf %59 : vector<2x96xf32>
    %61 = math.exp %60 : vector<2x96xf32>
    %cst_22 = arith.constant 1.000000e+00 : f32
    %62 = vector.broadcast %cst_22 : f32 to vector<2x96xf32>
    %63 = arith.addf %62, %61 : vector<2x96xf32>
    %64 = arith.divf %62, %63 : vector<2x96xf32>
    %65 = vector.extract_strided_slice %64 {offsets = [0, 0], sizes = [2, 32], strides = [1, 1]} : vector<2x96xf32> to vector<2x32xf32>
    %66 = vector.extract_strided_slice %64 {offsets = [0, 32], sizes = [2, 32], strides = [1, 1]} : vector<2x96xf32> to vector<2x32xf32>
    %67 = vector.extract_strided_slice %64 {offsets = [0, 64], sizes = [2, 32], strides = [1, 1]} : vector<2x96xf32> to vector<2x32xf32>
    %68 = vector.extract_strided_slice %58 {offsets = [0, 96], sizes = [2, 32], strides = [1, 1]} : vector<2x128xf32> to vector<2x32xf32>
    %69 = math.tanh %68 : vector<2x32xf32>
    %70 = arith.mulf %66, %52 : vector<2x32xf32>
    %71 = arith.mulf %65, %69 : vector<2x32xf32>
    %72 = arith.addf %70, %71 : vector<2x32xf32>
    %73 = math.tanh %72 : vector<2x32xf32>
    %74 = arith.mulf %67, %73 : vector<2x32xf32>
    %c2 = arith.constant 2 : index
    %c0_23 = arith.constant 0 : index
    %75 = vector.load %arg21[%c2, %c0_23] : memref<16x32xf32, #tpu.memory_space<vmem>>, vector<2x32xf32>
    tpu.vector_store %arg21[%c2, %c0_23], %74 {strides = array<i32>} : memref<16x32xf32, #tpu.memory_space<vmem>>, vector<2x32xf32>,
    %76 = vector.extract_strided_slice %32 {offsets = [4, 0], sizes = [2, 128], strides = [1, 1]} : vector<16x128xf32> to vector<2x128xf32>
    %cst_24 = arith.constant dense<0.000000e+00> : vector<2x128xf32>
    %77 = tpu.matmul %74, %33, %cst_24 {dimension_numbers = #tpu.dot_dimension_numbers<[1], [0], [0], [1], [0, 0, 1, 1], [], []>} : vector<2x32xf32>, vector<32x128xf32>, vector<2x128xf32> -> vector<2x128xf32>
    %78 = arith.addf %76, %77 : vector<2x128xf32>
    %79 = vector.extract_strided_slice %78 {offsets = [0, 0], sizes = [2, 96], strides = [1, 1]} : vector<2x128xf32> to vector<2x96xf32>
    %80 = arith.negf %79 : vector<2x96xf32>
    %81 = math.exp %80 : vector<2x96xf32>
    %cst_25 = arith.constant 1.000000e+00 : f32
    %82 = vector.broadcast %cst_25 : f32 to vector<2x96xf32>
    %83 = arith.addf %82, %81 : vector<2x96xf32>
    %84 = arith.divf %82, %83 : vector<2x96xf32>
    %85 = vector.extract_strided_slice %84 {offsets = [0, 0], sizes = [2, 32], strides = [1, 1]} : vector<2x96xf32> to vector<2x32xf32>
    %86 = vector.extract_strided_slice %84 {offsets = [0, 32], sizes = [2, 32], strides = [1, 1]} : vector<2x96xf32> to vector<2x32xf32>
    %87 = vector.extract_strided_slice %84 {offsets = [0, 64], sizes = [2, 32], strides = [1, 1]} : vector<2x96xf32> to vector<2x32xf32>
    %88 = vector.extract_strided_slice %78 {offsets = [0, 96], sizes = [2, 32], strides = [1, 1]} : vector<2x128xf32> to vector<2x32xf32>
    %89 = math.tanh %88 : vector<2x32xf32>
    %90 = arith.mulf %86, %72 : vector<2x32xf32>
    %91 = arith.mulf %85, %89 : vector<2x32xf32>
    %92 = arith.addf %90, %91 : vector<2x32xf32>
    %93 = math.tanh %92 : vector<2x32xf32>
    %94 = arith.mulf %87, %93 : vector<2x32xf32>
    %c4 = arith.constant 4 : index
    %c0_26 = arith.constant 0 : index
    %95 = vector.load %arg21[%c4, %c0_26] : memref<16x32xf32, #tpu.memory_space<vmem>>, vector<2x32xf32>
    tpu.vector_store %arg21[%c4, %c0_26], %94 {strides = array<i32>} : memref<16x32xf32, #tpu.memory_space<vmem>>, vector<2x32xf32>,
    %96 = vector.extract_strided_slice %32 {offsets = [6, 0], sizes = [2, 128], strides = [1, 1]} : vector<16x128xf32> to vector<2x128xf32>
    %cst_27 = arith.constant dense<0.000000e+00> : vector<2x128xf32>
    %97 = tpu.matmul %94, %33, %cst_27 {dimension_numbers = #tpu.dot_dimension_numbers<[1], [0], [0], [1], [0, 0, 1, 1], [], []>} : vector<2x32xf32>, vector<32x128xf32>, vector<2x128xf32> -> vector<2x128xf32>
    %98 = arith.addf %96, %97 : vector<2x128xf32>
    %99 = vector.extract_strided_slice %98 {offsets = [0, 0], sizes = [2, 96], strides = [1, 1]} : vector<2x128xf32> to vector<2x96xf32>
    %100 = arith.negf %99 : vector<2x96xf32>
    %101 = math.exp %100 : vector<2x96xf32>
    %cst_28 = arith.constant 1.000000e+00 : f32
    %102 = vector.broadcast %cst_28 : f32 to vector<2x96xf32>
    %103 = arith.addf %102, %101 : vector<2x96xf32>
    %104 = arith.divf %102, %103 : vector<2x96xf32>
    %105 = vector.extract_strided_slice %104 {offsets = [0, 0], sizes = [2, 32], strides = [1, 1]} : vector<2x96xf32> to vector<2x32xf32>
    %106 = vector.extract_strided_slice %104 {offsets = [0, 32], sizes = [2, 32], strides = [1, 1]} : vector<2x96xf32> to vector<2x32xf32>
    %107 = vector.extract_strided_slice %104 {offsets = [0, 64], sizes = [2, 32], strides = [1, 1]} : vector<2x96xf32> to vector<2x32xf32>
    %108 = vector.extract_strided_slice %98 {offsets = [0, 96], sizes = [2, 32], strides = [1, 1]} : vector<2x128xf32> to vector<2x32xf32>
    %109 = math.tanh %108 : vector<2x32xf32>
    %110 = arith.mulf %106, %92 : vector<2x32xf32>
    %111 = arith.mulf %105, %109 : vector<2x32xf32>
    %112 = arith.addf %110, %111 : vector<2x32xf32>
    %113 = math.tanh %112 : vector<2x32xf32>
    %114 = arith.mulf %107, %113 : vector<2x32xf32>
    %c6 = arith.constant 6 : index
    %c0_29 = arith.constant 0 : index
    %115 = vector.load %arg21[%c6, %c0_29] : memref<16x32xf32, #tpu.memory_space<vmem>>, vector<2x32xf32>
    tpu.vector_store %arg21[%c6, %c0_29], %114 {strides = array<i32>} : memref<16x32xf32, #tpu.memory_space<vmem>>, vector<2x32xf32>,
    %116 = vector.extract_strided_slice %32 {offsets = [8, 0], sizes = [2, 128], strides = [1, 1]} : vector<16x128xf32> to vector<2x128xf32>
    %cst_30 = arith.constant dense<0.000000e+00> : vector<2x128xf32>
    %117 = tpu.matmul %114, %33, %cst_30 {dimension_numbers = #tpu.dot_dimension_numbers<[1], [0], [0], [1], [0, 0, 1, 1], [], []>} : vector<2x32xf32>, vector<32x128xf32>, vector<2x128xf32> -> vector<2x128xf32>
    %118 = arith.addf %116, %117 : vector<2x128xf32>
    %119 = vector.extract_strided_slice %118 {offsets = [0, 0], sizes = [2, 96], strides = [1, 1]} : vector<2x128xf32> to vector<2x96xf32>
    %120 = arith.negf %119 : vector<2x96xf32>
    %121 = math.exp %120 : vector<2x96xf32>
    %cst_31 = arith.constant 1.000000e+00 : f32
    %122 = vector.broadcast %cst_31 : f32 to vector<2x96xf32>
    %123 = arith.addf %122, %121 : vector<2x96xf32>
    %124 = arith.divf %122, %123 : vector<2x96xf32>
    %125 = vector.extract_strided_slice %124 {offsets = [0, 0], sizes = [2, 32], strides = [1, 1]} : vector<2x96xf32> to vector<2x32xf32>
    %126 = vector.extract_strided_slice %124 {offsets = [0, 32], sizes = [2, 32], strides = [1, 1]} : vector<2x96xf32> to vector<2x32xf32>
    %127 = vector.extract_strided_slice %124 {offsets = [0, 64], sizes = [2, 32], strides = [1, 1]} : vector<2x96xf32> to vector<2x32xf32>
    %128 = vector.extract_strided_slice %118 {offsets = [0, 96], sizes = [2, 32], strides = [1, 1]} : vector<2x128xf32> to vector<2x32xf32>
    %129 = math.tanh %128 : vector<2x32xf32>
    %130 = arith.mulf %126, %112 : vector<2x32xf32>
    %131 = arith.mulf %125, %129 : vector<2x32xf32>
    %132 = arith.addf %130, %131 : vector<2x32xf32>
    %133 = math.tanh %132 : vector<2x32xf32>
    %134 = arith.mulf %127, %133 : vector<2x32xf32>
    %c8 = arith.constant 8 : index
    %c0_32 = arith.constant 0 : index
    %135 = vector.load %arg21[%c8, %c0_32] : memref<16x32xf32, #tpu.memory_space<vmem>>, vector<2x32xf32>
    tpu.vector_store %arg21[%c8, %c0_32], %134 {strides = array<i32>} : memref<16x32xf32, #tpu.memory_space<vmem>>, vector<2x32xf32>,
    %136 = vector.extract_strided_slice %32 {offsets = [10, 0], sizes = [2, 128], strides = [1, 1]} : vector<16x128xf32> to vector<2x128xf32>
    %cst_33 = arith.constant dense<0.000000e+00> : vector<2x128xf32>
    %137 = tpu.matmul %134, %33, %cst_33 {dimension_numbers = #tpu.dot_dimension_numbers<[1], [0], [0], [1], [0, 0, 1, 1], [], []>} : vector<2x32xf32>, vector<32x128xf32>, vector<2x128xf32> -> vector<2x128xf32>
    %138 = arith.addf %136, %137 : vector<2x128xf32>
    %139 = vector.extract_strided_slice %138 {offsets = [0, 0], sizes = [2, 96], strides = [1, 1]} : vector<2x128xf32> to vector<2x96xf32>
    %140 = arith.negf %139 : vector<2x96xf32>
    %141 = math.exp %140 : vector<2x96xf32>
    %cst_34 = arith.constant 1.000000e+00 : f32
    %142 = vector.broadcast %cst_34 : f32 to vector<2x96xf32>
    %143 = arith.addf %142, %141 : vector<2x96xf32>
    %144 = arith.divf %142, %143 : vector<2x96xf32>
    %145 = vector.extract_strided_slice %144 {offsets = [0, 0], sizes = [2, 32], strides = [1, 1]} : vector<2x96xf32> to vector<2x32xf32>
    %146 = vector.extract_strided_slice %144 {offsets = [0, 32], sizes = [2, 32], strides = [1, 1]} : vector<2x96xf32> to vector<2x32xf32>
    %147 = vector.extract_strided_slice %144 {offsets = [0, 64], sizes = [2, 32], strides = [1, 1]} : vector<2x96xf32> to vector<2x32xf32>
    %148 = vector.extract_strided_slice %138 {offsets = [0, 96], sizes = [2, 32], strides = [1, 1]} : vector<2x128xf32> to vector<2x32xf32>
    %149 = math.tanh %148 : vector<2x32xf32>
    %150 = arith.mulf %146, %132 : vector<2x32xf32>
    %151 = arith.mulf %145, %149 : vector<2x32xf32>
    %152 = arith.addf %150, %151 : vector<2x32xf32>
    %153 = math.tanh %152 : vector<2x32xf32>
    %154 = arith.mulf %147, %153 : vector<2x32xf32>
    %c10 = arith.constant 10 : index
    %c0_35 = arith.constant 0 : index
    %155 = vector.load %arg21[%c10, %c0_35] : memref<16x32xf32, #tpu.memory_space<vmem>>, vector<2x32xf32>
    tpu.vector_store %arg21[%c10, %c0_35], %154 {strides = array<i32>} : memref<16x32xf32, #tpu.memory_space<vmem>>, vector<2x32xf32>,
    %156 = vector.extract_strided_slice %32 {offsets = [12, 0], sizes = [2, 128], strides = [1, 1]} : vector<16x128xf32> to vector<2x128xf32>
    %cst_36 = arith.constant dense<0.000000e+00> : vector<2x128xf32>
    %157 = tpu.matmul %154, %33, %cst_36 {dimension_numbers = #tpu.dot_dimension_numbers<[1], [0], [0], [1], [0, 0, 1, 1], [], []>} : vector<2x32xf32>, vector<32x128xf32>, vector<2x128xf32> -> vector<2x128xf32>
    %158 = arith.addf %156, %157 : vector<2x128xf32>
    %159 = vector.extract_strided_slice %158 {offsets = [0, 0], sizes = [2, 96], strides = [1, 1]} : vector<2x128xf32> to vector<2x96xf32>
    %160 = arith.negf %159 : vector<2x96xf32>
    %161 = math.exp %160 : vector<2x96xf32>
    %cst_37 = arith.constant 1.000000e+00 : f32
    %162 = vector.broadcast %cst_37 : f32 to vector<2x96xf32>
    %163 = arith.addf %162, %161 : vector<2x96xf32>
    %164 = arith.divf %162, %163 : vector<2x96xf32>
    %165 = vector.extract_strided_slice %164 {offsets = [0, 0], sizes = [2, 32], strides = [1, 1]} : vector<2x96xf32> to vector<2x32xf32>
    %166 = vector.extract_strided_slice %164 {offsets = [0, 32], sizes = [2, 32], strides = [1, 1]} : vector<2x96xf32> to vector<2x32xf32>
    %167 = vector.extract_strided_slice %164 {offsets = [0, 64], sizes = [2, 32], strides = [1, 1]} : vector<2x96xf32> to vector<2x32xf32>
    %168 = vector.extract_strided_slice %158 {offsets = [0, 96], sizes = [2, 32], strides = [1, 1]} : vector<2x128xf32> to vector<2x32xf32>
    %169 = math.tanh %168 : vector<2x32xf32>
    %170 = arith.mulf %166, %152 : vector<2x32xf32>
    %171 = arith.mulf %165, %169 : vector<2x32xf32>
    %172 = arith.addf %170, %171 : vector<2x32xf32>
    %173 = math.tanh %172 : vector<2x32xf32>
    %174 = arith.mulf %167, %173 : vector<2x32xf32>
    %c12 = arith.constant 12 : index
    %c0_38 = arith.constant 0 : index
    %175 = vector.load %arg21[%c12, %c0_38] : memref<16x32xf32, #tpu.memory_space<vmem>>, vector<2x32xf32>
    tpu.vector_store %arg21[%c12, %c0_38], %174 {strides = array<i32>} : memref<16x32xf32, #tpu.memory_space<vmem>>, vector<2x32xf32>,
    %176 = vector.extract_strided_slice %32 {offsets = [14, 0], sizes = [2, 128], strides = [1, 1]} : vector<16x128xf32> to vector<2x128xf32>
    %cst_39 = arith.constant dense<0.000000e+00> : vector<2x128xf32>
    %177 = tpu.matmul %174, %33, %cst_39 {dimension_numbers = #tpu.dot_dimension_numbers<[1], [0], [0], [1], [0, 0, 1, 1], [], []>} : vector<2x32xf32>, vector<32x128xf32>, vector<2x128xf32> -> vector<2x128xf32>
    %178 = arith.addf %176, %177 : vector<2x128xf32>
    %179 = vector.extract_strided_slice %178 {offsets = [0, 0], sizes = [2, 96], strides = [1, 1]} : vector<2x128xf32> to vector<2x96xf32>
    %180 = arith.negf %179 : vector<2x96xf32>
    %181 = math.exp %180 : vector<2x96xf32>
    %cst_40 = arith.constant 1.000000e+00 : f32
    %182 = vector.broadcast %cst_40 : f32 to vector<2x96xf32>
    %183 = arith.addf %182, %181 : vector<2x96xf32>
    %184 = arith.divf %182, %183 : vector<2x96xf32>
    %185 = vector.extract_strided_slice %184 {offsets = [0, 0], sizes = [2, 32], strides = [1, 1]} : vector<2x96xf32> to vector<2x32xf32>
    %186 = vector.extract_strided_slice %184 {offsets = [0, 32], sizes = [2, 32], strides = [1, 1]} : vector<2x96xf32> to vector<2x32xf32>
    %187 = vector.extract_strided_slice %184 {offsets = [0, 64], sizes = [2, 32], strides = [1, 1]} : vector<2x96xf32> to vector<2x32xf32>
    %188 = vector.extract_strided_slice %178 {offsets = [0, 96], sizes = [2, 32], strides = [1, 1]} : vector<2x128xf32> to vector<2x32xf32>
    %189 = math.tanh %188 : vector<2x32xf32>
    %190 = arith.mulf %186, %172 : vector<2x32xf32>
    %191 = arith.mulf %185, %189 : vector<2x32xf32>
    %192 = arith.addf %190, %191 : vector<2x32xf32>
    %193 = math.tanh %192 : vector<2x32xf32>
    %194 = arith.mulf %187, %193 : vector<2x32xf32>
    %c14 = arith.constant 14 : index
    %c0_41 = arith.constant 0 : index
    %195 = vector.load %arg21[%c14, %c0_41] : memref<16x32xf32, #tpu.memory_space<vmem>>, vector<2x32xf32>
    tpu.vector_store %arg21[%c14, %c0_41], %194 {strides = array<i32>} : memref<16x32xf32, #tpu.memory_space<vmem>>, vector<2x32xf32>,
    %c0_42 = arith.constant 0 : index
    %c0_43 = arith.constant 0 : index
    %196 = vector.load %arg21[%c0_42, %c0_43] : memref<16x32xf32, #tpu.memory_space<vmem>>, vector<16x32xf32>
    %c0_44 = arith.constant 0 : index
    %c0_45 = arith.constant 0 : index
    %197 = vector.load %arg8[%c0_44, %c0_45] : memref<32x128xf32, #tpu.memory_space<vmem>>, vector<32x128xf32>
    %cst_46 = arith.constant dense<0.000000e+00> : vector<16x128xf32>
    %198 = tpu.matmul %196, %197, %cst_46 {dimension_numbers = #tpu.dot_dimension_numbers<[1], [0], [0], [1], [0, 0, 1, 1], [], []>} : vector<16x32xf32>, vector<32x128xf32>, vector<16x128xf32> -> vector<16x128xf32>
    %c0_47 = arith.constant 0 : index
    %c0_48 = arith.constant 0 : index
    %199 = vector.load %arg10[%c0_47, %c0_48] : memref<1x128xf32, #tpu.memory_space<vmem>>, vector<1x128xf32>
    %200 = vector.broadcast %199 : vector<1x128xf32> to vector<16x128xf32>
    %201 = arith.addf %198, %200 : vector<16x128xf32>
    %c0_49 = arith.constant 0 : index
    %c0_50 = arith.constant 0 : index
    %202 = vector.load %arg9[%c0_49, %c0_50] : memref<32x128xf32, #tpu.memory_space<vmem>>, vector<32x128xf32>
    %cst_51 = arith.constant 0.000000e+00 : f32
    %203 = vector.broadcast %cst_51 : f32 to vector<2x32xf32>
    %cst_52 = arith.constant 0.000000e+00 : f32
    %204 = vector.broadcast %cst_52 : f32 to vector<2x32xf32>
    %205 = vector.extract_strided_slice %201 {offsets = [0, 0], sizes = [2, 128], strides = [1, 1]} : vector<16x128xf32> to vector<2x128xf32>
    %cst_53 = arith.constant dense<0.000000e+00> : vector<2x128xf32>
    %206 = tpu.matmul %203, %202, %cst_53 {dimension_numbers = #tpu.dot_dimension_numbers<[1], [0], [0], [1], [0, 0, 1, 1], [], []>} : vector<2x32xf32>, vector<32x128xf32>, vector<2x128xf32> -> vector<2x128xf32>
    %207 = arith.addf %205, %206 : vector<2x128xf32>
    %208 = vector.extract_strided_slice %207 {offsets = [0, 0], sizes = [2, 96], strides = [1, 1]} : vector<2x128xf32> to vector<2x96xf32>
    %209 = arith.negf %208 : vector<2x96xf32>
    %210 = math.exp %209 : vector<2x96xf32>
    %cst_54 = arith.constant 1.000000e+00 : f32
    %211 = vector.broadcast %cst_54 : f32 to vector<2x96xf32>
    %212 = arith.addf %211, %210 : vector<2x96xf32>
    %213 = arith.divf %211, %212 : vector<2x96xf32>
    %214 = vector.extract_strided_slice %213 {offsets = [0, 0], sizes = [2, 32], strides = [1, 1]} : vector<2x96xf32> to vector<2x32xf32>
    %215 = vector.extract_strided_slice %213 {offsets = [0, 32], sizes = [2, 32], strides = [1, 1]} : vector<2x96xf32> to vector<2x32xf32>
    %216 = vector.extract_strided_slice %213 {offsets = [0, 64], sizes = [2, 32], strides = [1, 1]} : vector<2x96xf32> to vector<2x32xf32>
    %217 = vector.extract_strided_slice %207 {offsets = [0, 96], sizes = [2, 32], strides = [1, 1]} : vector<2x128xf32> to vector<2x32xf32>
    %218 = math.tanh %217 : vector<2x32xf32>
    %219 = arith.mulf %215, %204 : vector<2x32xf32>
    %220 = arith.mulf %214, %218 : vector<2x32xf32>
    %221 = arith.addf %219, %220 : vector<2x32xf32>
    %222 = math.tanh %221 : vector<2x32xf32>
    %223 = arith.mulf %216, %222 : vector<2x32xf32>
    %c0_55 = arith.constant 0 : index
    %c0_56 = arith.constant 0 : index
    %224 = vector.load %arg22[%c0_55, %c0_56] : memref<16x32xf32, #tpu.memory_space<vmem>>, vector<2x32xf32>
    tpu.vector_store %arg22[%c0_55, %c0_56], %223 {strides = array<i32>} : memref<16x32xf32, #tpu.memory_space<vmem>>, vector<2x32xf32>,
    %225 = vector.extract_strided_slice %201 {offsets = [2, 0], sizes = [2, 128], strides = [1, 1]} : vector<16x128xf32> to vector<2x128xf32>
    %cst_57 = arith.constant dense<0.000000e+00> : vector<2x128xf32>
    %226 = tpu.matmul %223, %202, %cst_57 {dimension_numbers = #tpu.dot_dimension_numbers<[1], [0], [0], [1], [0, 0, 1, 1], [], []>} : vector<2x32xf32>, vector<32x128xf32>, vector<2x128xf32> -> vector<2x128xf32>
    %227 = arith.addf %225, %226 : vector<2x128xf32>
    %228 = vector.extract_strided_slice %227 {offsets = [0, 0], sizes = [2, 96], strides = [1, 1]} : vector<2x128xf32> to vector<2x96xf32>
    %229 = arith.negf %228 : vector<2x96xf32>
    %230 = math.exp %229 : vector<2x96xf32>
    %cst_58 = arith.constant 1.000000e+00 : f32
    %231 = vector.broadcast %cst_58 : f32 to vector<2x96xf32>
    %232 = arith.addf %231, %230 : vector<2x96xf32>
    %233 = arith.divf %231, %232 : vector<2x96xf32>
    %234 = vector.extract_strided_slice %233 {offsets = [0, 0], sizes = [2, 32], strides = [1, 1]} : vector<2x96xf32> to vector<2x32xf32>
    %235 = vector.extract_strided_slice %233 {offsets = [0, 32], sizes = [2, 32], strides = [1, 1]} : vector<2x96xf32> to vector<2x32xf32>
    %236 = vector.extract_strided_slice %233 {offsets = [0, 64], sizes = [2, 32], strides = [1, 1]} : vector<2x96xf32> to vector<2x32xf32>
    %237 = vector.extract_strided_slice %227 {offsets = [0, 96], sizes = [2, 32], strides = [1, 1]} : vector<2x128xf32> to vector<2x32xf32>
    %238 = math.tanh %237 : vector<2x32xf32>
    %239 = arith.mulf %235, %221 : vector<2x32xf32>
    %240 = arith.mulf %234, %238 : vector<2x32xf32>
    %241 = arith.addf %239, %240 : vector<2x32xf32>
    %242 = math.tanh %241 : vector<2x32xf32>
    %243 = arith.mulf %236, %242 : vector<2x32xf32>
    %c2_59 = arith.constant 2 : index
    %c0_60 = arith.constant 0 : index
    %244 = vector.load %arg22[%c2_59, %c0_60] : memref<16x32xf32, #tpu.memory_space<vmem>>, vector<2x32xf32>
    tpu.vector_store %arg22[%c2_59, %c0_60], %243 {strides = array<i32>} : memref<16x32xf32, #tpu.memory_space<vmem>>, vector<2x32xf32>,
    %245 = vector.extract_strided_slice %201 {offsets = [4, 0], sizes = [2, 128], strides = [1, 1]} : vector<16x128xf32> to vector<2x128xf32>
    %cst_61 = arith.constant dense<0.000000e+00> : vector<2x128xf32>
    %246 = tpu.matmul %243, %202, %cst_61 {dimension_numbers = #tpu.dot_dimension_numbers<[1], [0], [0], [1], [0, 0, 1, 1], [], []>} : vector<2x32xf32>, vector<32x128xf32>, vector<2x128xf32> -> vector<2x128xf32>
    %247 = arith.addf %245, %246 : vector<2x128xf32>
    %248 = vector.extract_strided_slice %247 {offsets = [0, 0], sizes = [2, 96], strides = [1, 1]} : vector<2x128xf32> to vector<2x96xf32>
    %249 = arith.negf %248 : vector<2x96xf32>
    %250 = math.exp %249 : vector<2x96xf32>
    %cst_62 = arith.constant 1.000000e+00 : f32
    %251 = vector.broadcast %cst_62 : f32 to vector<2x96xf32>
    %252 = arith.addf %251, %250 : vector<2x96xf32>
    %253 = arith.divf %251, %252 : vector<2x96xf32>
    %254 = vector.extract_strided_slice %253 {offsets = [0, 0], sizes = [2, 32], strides = [1, 1]} : vector<2x96xf32> to vector<2x32xf32>
    %255 = vector.extract_strided_slice %253 {offsets = [0, 32], sizes = [2, 32], strides = [1, 1]} : vector<2x96xf32> to vector<2x32xf32>
    %256 = vector.extract_strided_slice %253 {offsets = [0, 64], sizes = [2, 32], strides = [1, 1]} : vector<2x96xf32> to vector<2x32xf32>
    %257 = vector.extract_strided_slice %247 {offsets = [0, 96], sizes = [2, 32], strides = [1, 1]} : vector<2x128xf32> to vector<2x32xf32>
    %258 = math.tanh %257 : vector<2x32xf32>
    %259 = arith.mulf %255, %241 : vector<2x32xf32>
    %260 = arith.mulf %254, %258 : vector<2x32xf32>
    %261 = arith.addf %259, %260 : vector<2x32xf32>
    %262 = math.tanh %261 : vector<2x32xf32>
    %263 = arith.mulf %256, %262 : vector<2x32xf32>
    %c4_63 = arith.constant 4 : index
    %c0_64 = arith.constant 0 : index
    %264 = vector.load %arg22[%c4_63, %c0_64] : memref<16x32xf32, #tpu.memory_space<vmem>>, vector<2x32xf32>
    tpu.vector_store %arg22[%c4_63, %c0_64], %263 {strides = array<i32>} : memref<16x32xf32, #tpu.memory_space<vmem>>, vector<2x32xf32>,
    %265 = vector.extract_strided_slice %201 {offsets = [6, 0], sizes = [2, 128], strides = [1, 1]} : vector<16x128xf32> to vector<2x128xf32>
    %cst_65 = arith.constant dense<0.000000e+00> : vector<2x128xf32>
    %266 = tpu.matmul %263, %202, %cst_65 {dimension_numbers = #tpu.dot_dimension_numbers<[1], [0], [0], [1], [0, 0, 1, 1], [], []>} : vector<2x32xf32>, vector<32x128xf32>, vector<2x128xf32> -> vector<2x128xf32>
    %267 = arith.addf %265, %266 : vector<2x128xf32>
    %268 = vector.extract_strided_slice %267 {offsets = [0, 0], sizes = [2, 96], strides = [1, 1]} : vector<2x128xf32> to vector<2x96xf32>
    %269 = arith.negf %268 : vector<2x96xf32>
    %270 = math.exp %269 : vector<2x96xf32>
    %cst_66 = arith.constant 1.000000e+00 : f32
    %271 = vector.broadcast %cst_66 : f32 to vector<2x96xf32>
    %272 = arith.addf %271, %270 : vector<2x96xf32>
    %273 = arith.divf %271, %272 : vector<2x96xf32>
    %274 = vector.extract_strided_slice %273 {offsets = [0, 0], sizes = [2, 32], strides = [1, 1]} : vector<2x96xf32> to vector<2x32xf32>
    %275 = vector.extract_strided_slice %273 {offsets = [0, 32], sizes = [2, 32], strides = [1, 1]} : vector<2x96xf32> to vector<2x32xf32>
    %276 = vector.extract_strided_slice %273 {offsets = [0, 64], sizes = [2, 32], strides = [1, 1]} : vector<2x96xf32> to vector<2x32xf32>
    %277 = vector.extract_strided_slice %267 {offsets = [0, 96], sizes = [2, 32], strides = [1, 1]} : vector<2x128xf32> to vector<2x32xf32>
    %278 = math.tanh %277 : vector<2x32xf32>
    %279 = arith.mulf %275, %261 : vector<2x32xf32>
    %280 = arith.mulf %274, %278 : vector<2x32xf32>
    %281 = arith.addf %279, %280 : vector<2x32xf32>
    %282 = math.tanh %281 : vector<2x32xf32>
    %283 = arith.mulf %276, %282 : vector<2x32xf32>
    %c6_67 = arith.constant 6 : index
    %c0_68 = arith.constant 0 : index
    %284 = vector.load %arg22[%c6_67, %c0_68] : memref<16x32xf32, #tpu.memory_space<vmem>>, vector<2x32xf32>
    tpu.vector_store %arg22[%c6_67, %c0_68], %283 {strides = array<i32>} : memref<16x32xf32, #tpu.memory_space<vmem>>, vector<2x32xf32>,
    %285 = vector.extract_strided_slice %201 {offsets = [8, 0], sizes = [2, 128], strides = [1, 1]} : vector<16x128xf32> to vector<2x128xf32>
    %cst_69 = arith.constant dense<0.000000e+00> : vector<2x128xf32>
    %286 = tpu.matmul %283, %202, %cst_69 {dimension_numbers = #tpu.dot_dimension_numbers<[1], [0], [0], [1], [0, 0, 1, 1], [], []>} : vector<2x32xf32>, vector<32x128xf32>, vector<2x128xf32> -> vector<2x128xf32>
    %287 = arith.addf %285, %286 : vector<2x128xf32>
    %288 = vector.extract_strided_slice %287 {offsets = [0, 0], sizes = [2, 96], strides = [1, 1]} : vector<2x128xf32> to vector<2x96xf32>
    %289 = arith.negf %288 : vector<2x96xf32>
    %290 = math.exp %289 : vector<2x96xf32>
    %cst_70 = arith.constant 1.000000e+00 : f32
    %291 = vector.broadcast %cst_70 : f32 to vector<2x96xf32>
    %292 = arith.addf %291, %290 : vector<2x96xf32>
    %293 = arith.divf %291, %292 : vector<2x96xf32>
    %294 = vector.extract_strided_slice %293 {offsets = [0, 0], sizes = [2, 32], strides = [1, 1]} : vector<2x96xf32> to vector<2x32xf32>
    %295 = vector.extract_strided_slice %293 {offsets = [0, 32], sizes = [2, 32], strides = [1, 1]} : vector<2x96xf32> to vector<2x32xf32>
    %296 = vector.extract_strided_slice %293 {offsets = [0, 64], sizes = [2, 32], strides = [1, 1]} : vector<2x96xf32> to vector<2x32xf32>
    %297 = vector.extract_strided_slice %287 {offsets = [0, 96], sizes = [2, 32], strides = [1, 1]} : vector<2x128xf32> to vector<2x32xf32>
    %298 = math.tanh %297 : vector<2x32xf32>
    %299 = arith.mulf %295, %281 : vector<2x32xf32>
    %300 = arith.mulf %294, %298 : vector<2x32xf32>
    %301 = arith.addf %299, %300 : vector<2x32xf32>
    %302 = math.tanh %301 : vector<2x32xf32>
    %303 = arith.mulf %296, %302 : vector<2x32xf32>
    %c8_71 = arith.constant 8 : index
    %c0_72 = arith.constant 0 : index
    %304 = vector.load %arg22[%c8_71, %c0_72] : memref<16x32xf32, #tpu.memory_space<vmem>>, vector<2x32xf32>
    tpu.vector_store %arg22[%c8_71, %c0_72], %303 {strides = array<i32>} : memref<16x32xf32, #tpu.memory_space<vmem>>, vector<2x32xf32>,
    %305 = vector.extract_strided_slice %201 {offsets = [10, 0], sizes = [2, 128], strides = [1, 1]} : vector<16x128xf32> to vector<2x128xf32>
    %cst_73 = arith.constant dense<0.000000e+00> : vector<2x128xf32>
    %306 = tpu.matmul %303, %202, %cst_73 {dimension_numbers = #tpu.dot_dimension_numbers<[1], [0], [0], [1], [0, 0, 1, 1], [], []>} : vector<2x32xf32>, vector<32x128xf32>, vector<2x128xf32> -> vector<2x128xf32>
    %307 = arith.addf %305, %306 : vector<2x128xf32>
    %308 = vector.extract_strided_slice %307 {offsets = [0, 0], sizes = [2, 96], strides = [1, 1]} : vector<2x128xf32> to vector<2x96xf32>
    %309 = arith.negf %308 : vector<2x96xf32>
    %310 = math.exp %309 : vector<2x96xf32>
    %cst_74 = arith.constant 1.000000e+00 : f32
    %311 = vector.broadcast %cst_74 : f32 to vector<2x96xf32>
    %312 = arith.addf %311, %310 : vector<2x96xf32>
    %313 = arith.divf %311, %312 : vector<2x96xf32>
    %314 = vector.extract_strided_slice %313 {offsets = [0, 0], sizes = [2, 32], strides = [1, 1]} : vector<2x96xf32> to vector<2x32xf32>
    %315 = vector.extract_strided_slice %313 {offsets = [0, 32], sizes = [2, 32], strides = [1, 1]} : vector<2x96xf32> to vector<2x32xf32>
    %316 = vector.extract_strided_slice %313 {offsets = [0, 64], sizes = [2, 32], strides = [1, 1]} : vector<2x96xf32> to vector<2x32xf32>
    %317 = vector.extract_strided_slice %307 {offsets = [0, 96], sizes = [2, 32], strides = [1, 1]} : vector<2x128xf32> to vector<2x32xf32>
    %318 = math.tanh %317 : vector<2x32xf32>
    %319 = arith.mulf %315, %301 : vector<2x32xf32>
    %320 = arith.mulf %314, %318 : vector<2x32xf32>
    %321 = arith.addf %319, %320 : vector<2x32xf32>
    %322 = math.tanh %321 : vector<2x32xf32>
    %323 = arith.mulf %316, %322 : vector<2x32xf32>
    %c10_75 = arith.constant 10 : index
    %c0_76 = arith.constant 0 : index
    %324 = vector.load %arg22[%c10_75, %c0_76] : memref<16x32xf32, #tpu.memory_space<vmem>>, vector<2x32xf32>
    tpu.vector_store %arg22[%c10_75, %c0_76], %323 {strides = array<i32>} : memref<16x32xf32, #tpu.memory_space<vmem>>, vector<2x32xf32>,
    %325 = vector.extract_strided_slice %201 {offsets = [12, 0], sizes = [2, 128], strides = [1, 1]} : vector<16x128xf32> to vector<2x128xf32>
    %cst_77 = arith.constant dense<0.000000e+00> : vector<2x128xf32>
    %326 = tpu.matmul %323, %202, %cst_77 {dimension_numbers = #tpu.dot_dimension_numbers<[1], [0], [0], [1], [0, 0, 1, 1], [], []>} : vector<2x32xf32>, vector<32x128xf32>, vector<2x128xf32> -> vector<2x128xf32>
    %327 = arith.addf %325, %326 : vector<2x128xf32>
    %328 = vector.extract_strided_slice %327 {offsets = [0, 0], sizes = [2, 96], strides = [1, 1]} : vector<2x128xf32> to vector<2x96xf32>
    %329 = arith.negf %328 : vector<2x96xf32>
    %330 = math.exp %329 : vector<2x96xf32>
    %cst_78 = arith.constant 1.000000e+00 : f32
    %331 = vector.broadcast %cst_78 : f32 to vector<2x96xf32>
    %332 = arith.addf %331, %330 : vector<2x96xf32>
    %333 = arith.divf %331, %332 : vector<2x96xf32>
    %334 = vector.extract_strided_slice %333 {offsets = [0, 0], sizes = [2, 32], strides = [1, 1]} : vector<2x96xf32> to vector<2x32xf32>
    %335 = vector.extract_strided_slice %333 {offsets = [0, 32], sizes = [2, 32], strides = [1, 1]} : vector<2x96xf32> to vector<2x32xf32>
    %336 = vector.extract_strided_slice %333 {offsets = [0, 64], sizes = [2, 32], strides = [1, 1]} : vector<2x96xf32> to vector<2x32xf32>
    %337 = vector.extract_strided_slice %327 {offsets = [0, 96], sizes = [2, 32], strides = [1, 1]} : vector<2x128xf32> to vector<2x32xf32>
    %338 = math.tanh %337 : vector<2x32xf32>
    %339 = arith.mulf %335, %321 : vector<2x32xf32>
    %340 = arith.mulf %334, %338 : vector<2x32xf32>
    %341 = arith.addf %339, %340 : vector<2x32xf32>
    %342 = math.tanh %341 : vector<2x32xf32>
    %343 = arith.mulf %336, %342 : vector<2x32xf32>
    %c12_79 = arith.constant 12 : index
    %c0_80 = arith.constant 0 : index
    %344 = vector.load %arg22[%c12_79, %c0_80] : memref<16x32xf32, #tpu.memory_space<vmem>>, vector<2x32xf32>
    tpu.vector_store %arg22[%c12_79, %c0_80], %343 {strides = array<i32>} : memref<16x32xf32, #tpu.memory_space<vmem>>, vector<2x32xf32>,
    %345 = vector.extract_strided_slice %201 {offsets = [14, 0], sizes = [2, 128], strides = [1, 1]} : vector<16x128xf32> to vector<2x128xf32>
    %cst_81 = arith.constant dense<0.000000e+00> : vector<2x128xf32>
    %346 = tpu.matmul %343, %202, %cst_81 {dimension_numbers = #tpu.dot_dimension_numbers<[1], [0], [0], [1], [0, 0, 1, 1], [], []>} : vector<2x32xf32>, vector<32x128xf32>, vector<2x128xf32> -> vector<2x128xf32>
    %347 = arith.addf %345, %346 : vector<2x128xf32>
    %348 = vector.extract_strided_slice %347 {offsets = [0, 0], sizes = [2, 96], strides = [1, 1]} : vector<2x128xf32> to vector<2x96xf32>
    %349 = arith.negf %348 : vector<2x96xf32>
    %350 = math.exp %349 : vector<2x96xf32>
    %cst_82 = arith.constant 1.000000e+00 : f32
    %351 = vector.broadcast %cst_82 : f32 to vector<2x96xf32>
    %352 = arith.addf %351, %350 : vector<2x96xf32>
    %353 = arith.divf %351, %352 : vector<2x96xf32>
    %354 = vector.extract_strided_slice %353 {offsets = [0, 0], sizes = [2, 32], strides = [1, 1]} : vector<2x96xf32> to vector<2x32xf32>
    %355 = vector.extract_strided_slice %353 {offsets = [0, 32], sizes = [2, 32], strides = [1, 1]} : vector<2x96xf32> to vector<2x32xf32>
    %356 = vector.extract_strided_slice %353 {offsets = [0, 64], sizes = [2, 32], strides = [1, 1]} : vector<2x96xf32> to vector<2x32xf32>
    %357 = vector.extract_strided_slice %347 {offsets = [0, 96], sizes = [2, 32], strides = [1, 1]} : vector<2x128xf32> to vector<2x32xf32>
    %358 = math.tanh %357 : vector<2x32xf32>
    %359 = arith.mulf %355, %341 : vector<2x32xf32>
    %360 = arith.mulf %354, %358 : vector<2x32xf32>
    %361 = arith.addf %359, %360 : vector<2x32xf32>
    %362 = math.tanh %361 : vector<2x32xf32>
    %363 = arith.mulf %356, %362 : vector<2x32xf32>
    %c14_83 = arith.constant 14 : index
    %c0_84 = arith.constant 0 : index
    %364 = vector.load %arg22[%c14_83, %c0_84] : memref<16x32xf32, #tpu.memory_space<vmem>>, vector<2x32xf32>
    tpu.vector_store %arg22[%c14_83, %c0_84], %363 {strides = array<i32>} : memref<16x32xf32, #tpu.memory_space<vmem>>, vector<2x32xf32>,
    %c0_85 = arith.constant 0 : index
    %c0_86 = arith.constant 0 : index
    %365 = vector.load %arg22[%c0_85, %c0_86] : memref<16x32xf32, #tpu.memory_space<vmem>>, vector<16x32xf32>
    %c0_87 = arith.constant 0 : index
    %c0_88 = arith.constant 0 : index
    %366 = vector.load %arg11[%c0_87, %c0_88] : memref<32x128xf32, #tpu.memory_space<vmem>>, vector<32x128xf32>
    %cst_89 = arith.constant dense<0.000000e+00> : vector<16x128xf32>
    %367 = tpu.matmul %365, %366, %cst_89 {dimension_numbers = #tpu.dot_dimension_numbers<[1], [0], [0], [1], [0, 0, 1, 1], [], []>} : vector<16x32xf32>, vector<32x128xf32>, vector<16x128xf32> -> vector<16x128xf32>
    %c0_90 = arith.constant 0 : index
    %c0_91 = arith.constant 0 : index
    %368 = vector.load %arg13[%c0_90, %c0_91] : memref<1x128xf32, #tpu.memory_space<vmem>>, vector<1x128xf32>
    %369 = vector.broadcast %368 : vector<1x128xf32> to vector<16x128xf32>
    %370 = arith.addf %367, %369 : vector<16x128xf32>
    %c0_92 = arith.constant 0 : index
    %c0_93 = arith.constant 0 : index
    %371 = vector.load %arg12[%c0_92, %c0_93] : memref<32x128xf32, #tpu.memory_space<vmem>>, vector<32x128xf32>
    %cst_94 = arith.constant 0.000000e+00 : f32
    %372 = vector.broadcast %cst_94 : f32 to vector<2x32xf32>
    %cst_95 = arith.constant 0.000000e+00 : f32
    %373 = vector.broadcast %cst_95 : f32 to vector<2x32xf32>
    %374 = vector.extract_strided_slice %370 {offsets = [0, 0], sizes = [2, 128], strides = [1, 1]} : vector<16x128xf32> to vector<2x128xf32>
    %cst_96 = arith.constant dense<0.000000e+00> : vector<2x128xf32>
    %375 = tpu.matmul %372, %371, %cst_96 {dimension_numbers = #tpu.dot_dimension_numbers<[1], [0], [0], [1], [0, 0, 1, 1], [], []>} : vector<2x32xf32>, vector<32x128xf32>, vector<2x128xf32> -> vector<2x128xf32>
    %376 = arith.addf %374, %375 : vector<2x128xf32>
    %377 = vector.extract_strided_slice %376 {offsets = [0, 0], sizes = [2, 96], strides = [1, 1]} : vector<2x128xf32> to vector<2x96xf32>
    %378 = arith.negf %377 : vector<2x96xf32>
    %379 = math.exp %378 : vector<2x96xf32>
    %cst_97 = arith.constant 1.000000e+00 : f32
    %380 = vector.broadcast %cst_97 : f32 to vector<2x96xf32>
    %381 = arith.addf %380, %379 : vector<2x96xf32>
    %382 = arith.divf %380, %381 : vector<2x96xf32>
    %383 = vector.extract_strided_slice %382 {offsets = [0, 0], sizes = [2, 32], strides = [1, 1]} : vector<2x96xf32> to vector<2x32xf32>
    %384 = vector.extract_strided_slice %382 {offsets = [0, 32], sizes = [2, 32], strides = [1, 1]} : vector<2x96xf32> to vector<2x32xf32>
    %385 = vector.extract_strided_slice %382 {offsets = [0, 64], sizes = [2, 32], strides = [1, 1]} : vector<2x96xf32> to vector<2x32xf32>
    %386 = vector.extract_strided_slice %376 {offsets = [0, 96], sizes = [2, 32], strides = [1, 1]} : vector<2x128xf32> to vector<2x32xf32>
    %387 = math.tanh %386 : vector<2x32xf32>
    %388 = arith.mulf %384, %373 : vector<2x32xf32>
    %389 = arith.mulf %383, %387 : vector<2x32xf32>
    %390 = arith.addf %388, %389 : vector<2x32xf32>
    %391 = math.tanh %390 : vector<2x32xf32>
    %392 = arith.mulf %385, %391 : vector<2x32xf32>
    %c0_98 = arith.constant 0 : index
    %c0_99 = arith.constant 0 : index
    %393 = vector.load %arg21[%c0_98, %c0_99] : memref<16x32xf32, #tpu.memory_space<vmem>>, vector<2x32xf32>
    tpu.vector_store %arg21[%c0_98, %c0_99], %392 {strides = array<i32>} : memref<16x32xf32, #tpu.memory_space<vmem>>, vector<2x32xf32>,
    %394 = vector.extract_strided_slice %370 {offsets = [2, 0], sizes = [2, 128], strides = [1, 1]} : vector<16x128xf32> to vector<2x128xf32>
    %cst_100 = arith.constant dense<0.000000e+00> : vector<2x128xf32>
    %395 = tpu.matmul %392, %371, %cst_100 {dimension_numbers = #tpu.dot_dimension_numbers<[1], [0], [0], [1], [0, 0, 1, 1], [], []>} : vector<2x32xf32>, vector<32x128xf32>, vector<2x128xf32> -> vector<2x128xf32>
    %396 = arith.addf %394, %395 : vector<2x128xf32>
    %397 = vector.extract_strided_slice %396 {offsets = [0, 0], sizes = [2, 96], strides = [1, 1]} : vector<2x128xf32> to vector<2x96xf32>
    %398 = arith.negf %397 : vector<2x96xf32>
    %399 = math.exp %398 : vector<2x96xf32>
    %cst_101 = arith.constant 1.000000e+00 : f32
    %400 = vector.broadcast %cst_101 : f32 to vector<2x96xf32>
    %401 = arith.addf %400, %399 : vector<2x96xf32>
    %402 = arith.divf %400, %401 : vector<2x96xf32>
    %403 = vector.extract_strided_slice %402 {offsets = [0, 0], sizes = [2, 32], strides = [1, 1]} : vector<2x96xf32> to vector<2x32xf32>
    %404 = vector.extract_strided_slice %402 {offsets = [0, 32], sizes = [2, 32], strides = [1, 1]} : vector<2x96xf32> to vector<2x32xf32>
    %405 = vector.extract_strided_slice %402 {offsets = [0, 64], sizes = [2, 32], strides = [1, 1]} : vector<2x96xf32> to vector<2x32xf32>
    %406 = vector.extract_strided_slice %396 {offsets = [0, 96], sizes = [2, 32], strides = [1, 1]} : vector<2x128xf32> to vector<2x32xf32>
    %407 = math.tanh %406 : vector<2x32xf32>
    %408 = arith.mulf %404, %390 : vector<2x32xf32>
    %409 = arith.mulf %403, %407 : vector<2x32xf32>
    %410 = arith.addf %408, %409 : vector<2x32xf32>
    %411 = math.tanh %410 : vector<2x32xf32>
    %412 = arith.mulf %405, %411 : vector<2x32xf32>
    %c2_102 = arith.constant 2 : index
    %c0_103 = arith.constant 0 : index
    %413 = vector.load %arg21[%c2_102, %c0_103] : memref<16x32xf32, #tpu.memory_space<vmem>>, vector<2x32xf32>
    tpu.vector_store %arg21[%c2_102, %c0_103], %412 {strides = array<i32>} : memref<16x32xf32, #tpu.memory_space<vmem>>, vector<2x32xf32>,
    %414 = vector.extract_strided_slice %370 {offsets = [4, 0], sizes = [2, 128], strides = [1, 1]} : vector<16x128xf32> to vector<2x128xf32>
    %cst_104 = arith.constant dense<0.000000e+00> : vector<2x128xf32>
    %415 = tpu.matmul %412, %371, %cst_104 {dimension_numbers = #tpu.dot_dimension_numbers<[1], [0], [0], [1], [0, 0, 1, 1], [], []>} : vector<2x32xf32>, vector<32x128xf32>, vector<2x128xf32> -> vector<2x128xf32>
    %416 = arith.addf %414, %415 : vector<2x128xf32>
    %417 = vector.extract_strided_slice %416 {offsets = [0, 0], sizes = [2, 96], strides = [1, 1]} : vector<2x128xf32> to vector<2x96xf32>
    %418 = arith.negf %417 : vector<2x96xf32>
    %419 = math.exp %418 : vector<2x96xf32>
    %cst_105 = arith.constant 1.000000e+00 : f32
    %420 = vector.broadcast %cst_105 : f32 to vector<2x96xf32>
    %421 = arith.addf %420, %419 : vector<2x96xf32>
    %422 = arith.divf %420, %421 : vector<2x96xf32>
    %423 = vector.extract_strided_slice %422 {offsets = [0, 0], sizes = [2, 32], strides = [1, 1]} : vector<2x96xf32> to vector<2x32xf32>
    %424 = vector.extract_strided_slice %422 {offsets = [0, 32], sizes = [2, 32], strides = [1, 1]} : vector<2x96xf32> to vector<2x32xf32>
    %425 = vector.extract_strided_slice %422 {offsets = [0, 64], sizes = [2, 32], strides = [1, 1]} : vector<2x96xf32> to vector<2x32xf32>
    %426 = vector.extract_strided_slice %416 {offsets = [0, 96], sizes = [2, 32], strides = [1, 1]} : vector<2x128xf32> to vector<2x32xf32>
    %427 = math.tanh %426 : vector<2x32xf32>
    %428 = arith.mulf %424, %410 : vector<2x32xf32>
    %429 = arith.mulf %423, %427 : vector<2x32xf32>
    %430 = arith.addf %428, %429 : vector<2x32xf32>
    %431 = math.tanh %430 : vector<2x32xf32>
    %432 = arith.mulf %425, %431 : vector<2x32xf32>
    %c4_106 = arith.constant 4 : index
    %c0_107 = arith.constant 0 : index
    %433 = vector.load %arg21[%c4_106, %c0_107] : memref<16x32xf32, #tpu.memory_space<vmem>>, vector<2x32xf32>
    tpu.vector_store %arg21[%c4_106, %c0_107], %432 {strides = array<i32>} : memref<16x32xf32, #tpu.memory_space<vmem>>, vector<2x32xf32>,
    %434 = vector.extract_strided_slice %370 {offsets = [6, 0], sizes = [2, 128], strides = [1, 1]} : vector<16x128xf32> to vector<2x128xf32>
    %cst_108 = arith.constant dense<0.000000e+00> : vector<2x128xf32>
    %435 = tpu.matmul %432, %371, %cst_108 {dimension_numbers = #tpu.dot_dimension_numbers<[1], [0], [0], [1], [0, 0, 1, 1], [], []>} : vector<2x32xf32>, vector<32x128xf32>, vector<2x128xf32> -> vector<2x128xf32>
    %436 = arith.addf %434, %435 : vector<2x128xf32>
    %437 = vector.extract_strided_slice %436 {offsets = [0, 0], sizes = [2, 96], strides = [1, 1]} : vector<2x128xf32> to vector<2x96xf32>
    %438 = arith.negf %437 : vector<2x96xf32>
    %439 = math.exp %438 : vector<2x96xf32>
    %cst_109 = arith.constant 1.000000e+00 : f32
    %440 = vector.broadcast %cst_109 : f32 to vector<2x96xf32>
    %441 = arith.addf %440, %439 : vector<2x96xf32>
    %442 = arith.divf %440, %441 : vector<2x96xf32>
    %443 = vector.extract_strided_slice %442 {offsets = [0, 0], sizes = [2, 32], strides = [1, 1]} : vector<2x96xf32> to vector<2x32xf32>
    %444 = vector.extract_strided_slice %442 {offsets = [0, 32], sizes = [2, 32], strides = [1, 1]} : vector<2x96xf32> to vector<2x32xf32>
    %445 = vector.extract_strided_slice %442 {offsets = [0, 64], sizes = [2, 32], strides = [1, 1]} : vector<2x96xf32> to vector<2x32xf32>
    %446 = vector.extract_strided_slice %436 {offsets = [0, 96], sizes = [2, 32], strides = [1, 1]} : vector<2x128xf32> to vector<2x32xf32>
    %447 = math.tanh %446 : vector<2x32xf32>
    %448 = arith.mulf %444, %430 : vector<2x32xf32>
    %449 = arith.mulf %443, %447 : vector<2x32xf32>
    %450 = arith.addf %448, %449 : vector<2x32xf32>
    %451 = math.tanh %450 : vector<2x32xf32>
    %452 = arith.mulf %445, %451 : vector<2x32xf32>
    %c6_110 = arith.constant 6 : index
    %c0_111 = arith.constant 0 : index
    %453 = vector.load %arg21[%c6_110, %c0_111] : memref<16x32xf32, #tpu.memory_space<vmem>>, vector<2x32xf32>
    tpu.vector_store %arg21[%c6_110, %c0_111], %452 {strides = array<i32>} : memref<16x32xf32, #tpu.memory_space<vmem>>, vector<2x32xf32>,
    %454 = vector.extract_strided_slice %370 {offsets = [8, 0], sizes = [2, 128], strides = [1, 1]} : vector<16x128xf32> to vector<2x128xf32>
    %cst_112 = arith.constant dense<0.000000e+00> : vector<2x128xf32>
    %455 = tpu.matmul %452, %371, %cst_112 {dimension_numbers = #tpu.dot_dimension_numbers<[1], [0], [0], [1], [0, 0, 1, 1], [], []>} : vector<2x32xf32>, vector<32x128xf32>, vector<2x128xf32> -> vector<2x128xf32>
    %456 = arith.addf %454, %455 : vector<2x128xf32>
    %457 = vector.extract_strided_slice %456 {offsets = [0, 0], sizes = [2, 96], strides = [1, 1]} : vector<2x128xf32> to vector<2x96xf32>
    %458 = arith.negf %457 : vector<2x96xf32>
    %459 = math.exp %458 : vector<2x96xf32>
    %cst_113 = arith.constant 1.000000e+00 : f32
    %460 = vector.broadcast %cst_113 : f32 to vector<2x96xf32>
    %461 = arith.addf %460, %459 : vector<2x96xf32>
    %462 = arith.divf %460, %461 : vector<2x96xf32>
    %463 = vector.extract_strided_slice %462 {offsets = [0, 0], sizes = [2, 32], strides = [1, 1]} : vector<2x96xf32> to vector<2x32xf32>
    %464 = vector.extract_strided_slice %462 {offsets = [0, 32], sizes = [2, 32], strides = [1, 1]} : vector<2x96xf32> to vector<2x32xf32>
    %465 = vector.extract_strided_slice %462 {offsets = [0, 64], sizes = [2, 32], strides = [1, 1]} : vector<2x96xf32> to vector<2x32xf32>
    %466 = vector.extract_strided_slice %456 {offsets = [0, 96], sizes = [2, 32], strides = [1, 1]} : vector<2x128xf32> to vector<2x32xf32>
    %467 = math.tanh %466 : vector<2x32xf32>
    %468 = arith.mulf %464, %450 : vector<2x32xf32>
    %469 = arith.mulf %463, %467 : vector<2x32xf32>
    %470 = arith.addf %468, %469 : vector<2x32xf32>
    %471 = math.tanh %470 : vector<2x32xf32>
    %472 = arith.mulf %465, %471 : vector<2x32xf32>
    %c8_114 = arith.constant 8 : index
    %c0_115 = arith.constant 0 : index
    %473 = vector.load %arg21[%c8_114, %c0_115] : memref<16x32xf32, #tpu.memory_space<vmem>>, vector<2x32xf32>
    tpu.vector_store %arg21[%c8_114, %c0_115], %472 {strides = array<i32>} : memref<16x32xf32, #tpu.memory_space<vmem>>, vector<2x32xf32>,
    %474 = vector.extract_strided_slice %370 {offsets = [10, 0], sizes = [2, 128], strides = [1, 1]} : vector<16x128xf32> to vector<2x128xf32>
    %cst_116 = arith.constant dense<0.000000e+00> : vector<2x128xf32>
    %475 = tpu.matmul %472, %371, %cst_116 {dimension_numbers = #tpu.dot_dimension_numbers<[1], [0], [0], [1], [0, 0, 1, 1], [], []>} : vector<2x32xf32>, vector<32x128xf32>, vector<2x128xf32> -> vector<2x128xf32>
    %476 = arith.addf %474, %475 : vector<2x128xf32>
    %477 = vector.extract_strided_slice %476 {offsets = [0, 0], sizes = [2, 96], strides = [1, 1]} : vector<2x128xf32> to vector<2x96xf32>
    %478 = arith.negf %477 : vector<2x96xf32>
    %479 = math.exp %478 : vector<2x96xf32>
    %cst_117 = arith.constant 1.000000e+00 : f32
    %480 = vector.broadcast %cst_117 : f32 to vector<2x96xf32>
    %481 = arith.addf %480, %479 : vector<2x96xf32>
    %482 = arith.divf %480, %481 : vector<2x96xf32>
    %483 = vector.extract_strided_slice %482 {offsets = [0, 0], sizes = [2, 32], strides = [1, 1]} : vector<2x96xf32> to vector<2x32xf32>
    %484 = vector.extract_strided_slice %482 {offsets = [0, 32], sizes = [2, 32], strides = [1, 1]} : vector<2x96xf32> to vector<2x32xf32>
    %485 = vector.extract_strided_slice %482 {offsets = [0, 64], sizes = [2, 32], strides = [1, 1]} : vector<2x96xf32> to vector<2x32xf32>
    %486 = vector.extract_strided_slice %476 {offsets = [0, 96], sizes = [2, 32], strides = [1, 1]} : vector<2x128xf32> to vector<2x32xf32>
    %487 = math.tanh %486 : vector<2x32xf32>
    %488 = arith.mulf %484, %470 : vector<2x32xf32>
    %489 = arith.mulf %483, %487 : vector<2x32xf32>
    %490 = arith.addf %488, %489 : vector<2x32xf32>
    %491 = math.tanh %490 : vector<2x32xf32>
    %492 = arith.mulf %485, %491 : vector<2x32xf32>
    %c10_118 = arith.constant 10 : index
    %c0_119 = arith.constant 0 : index
    %493 = vector.load %arg21[%c10_118, %c0_119] : memref<16x32xf32, #tpu.memory_space<vmem>>, vector<2x32xf32>
    tpu.vector_store %arg21[%c10_118, %c0_119], %492 {strides = array<i32>} : memref<16x32xf32, #tpu.memory_space<vmem>>, vector<2x32xf32>,
    %494 = vector.extract_strided_slice %370 {offsets = [12, 0], sizes = [2, 128], strides = [1, 1]} : vector<16x128xf32> to vector<2x128xf32>
    %cst_120 = arith.constant dense<0.000000e+00> : vector<2x128xf32>
    %495 = tpu.matmul %492, %371, %cst_120 {dimension_numbers = #tpu.dot_dimension_numbers<[1], [0], [0], [1], [0, 0, 1, 1], [], []>} : vector<2x32xf32>, vector<32x128xf32>, vector<2x128xf32> -> vector<2x128xf32>
    %496 = arith.addf %494, %495 : vector<2x128xf32>
    %497 = vector.extract_strided_slice %496 {offsets = [0, 0], sizes = [2, 96], strides = [1, 1]} : vector<2x128xf32> to vector<2x96xf32>
    %498 = arith.negf %497 : vector<2x96xf32>
    %499 = math.exp %498 : vector<2x96xf32>
    %cst_121 = arith.constant 1.000000e+00 : f32
    %500 = vector.broadcast %cst_121 : f32 to vector<2x96xf32>
    %501 = arith.addf %500, %499 : vector<2x96xf32>
    %502 = arith.divf %500, %501 : vector<2x96xf32>
    %503 = vector.extract_strided_slice %502 {offsets = [0, 0], sizes = [2, 32], strides = [1, 1]} : vector<2x96xf32> to vector<2x32xf32>
    %504 = vector.extract_strided_slice %502 {offsets = [0, 32], sizes = [2, 32], strides = [1, 1]} : vector<2x96xf32> to vector<2x32xf32>
    %505 = vector.extract_strided_slice %502 {offsets = [0, 64], sizes = [2, 32], strides = [1, 1]} : vector<2x96xf32> to vector<2x32xf32>
    %506 = vector.extract_strided_slice %496 {offsets = [0, 96], sizes = [2, 32], strides = [1, 1]} : vector<2x128xf32> to vector<2x32xf32>
    %507 = math.tanh %506 : vector<2x32xf32>
    %508 = arith.mulf %504, %490 : vector<2x32xf32>
    %509 = arith.mulf %503, %507 : vector<2x32xf32>
    %510 = arith.addf %508, %509 : vector<2x32xf32>
    %511 = math.tanh %510 : vector<2x32xf32>
    %512 = arith.mulf %505, %511 : vector<2x32xf32>
    %c12_122 = arith.constant 12 : index
    %c0_123 = arith.constant 0 : index
    %513 = vector.load %arg21[%c12_122, %c0_123] : memref<16x32xf32, #tpu.memory_space<vmem>>, vector<2x32xf32>
    tpu.vector_store %arg21[%c12_122, %c0_123], %512 {strides = array<i32>} : memref<16x32xf32, #tpu.memory_space<vmem>>, vector<2x32xf32>,
    %514 = vector.extract_strided_slice %370 {offsets = [14, 0], sizes = [2, 128], strides = [1, 1]} : vector<16x128xf32> to vector<2x128xf32>
    %cst_124 = arith.constant dense<0.000000e+00> : vector<2x128xf32>
    %515 = tpu.matmul %512, %371, %cst_124 {dimension_numbers = #tpu.dot_dimension_numbers<[1], [0], [0], [1], [0, 0, 1, 1], [], []>} : vector<2x32xf32>, vector<32x128xf32>, vector<2x128xf32> -> vector<2x128xf32>
    %516 = arith.addf %514, %515 : vector<2x128xf32>
    %517 = vector.extract_strided_slice %516 {offsets = [0, 0], sizes = [2, 96], strides = [1, 1]} : vector<2x128xf32> to vector<2x96xf32>
    %518 = arith.negf %517 : vector<2x96xf32>
    %519 = math.exp %518 : vector<2x96xf32>
    %cst_125 = arith.constant 1.000000e+00 : f32
    %520 = vector.broadcast %cst_125 : f32 to vector<2x96xf32>
    %521 = arith.addf %520, %519 : vector<2x96xf32>
    %522 = arith.divf %520, %521 : vector<2x96xf32>
    %523 = vector.extract_strided_slice %522 {offsets = [0, 0], sizes = [2, 32], strides = [1, 1]} : vector<2x96xf32> to vector<2x32xf32>
    %524 = vector.extract_strided_slice %522 {offsets = [0, 32], sizes = [2, 32], strides = [1, 1]} : vector<2x96xf32> to vector<2x32xf32>
    %525 = vector.extract_strided_slice %522 {offsets = [0, 64], sizes = [2, 32], strides = [1, 1]} : vector<2x96xf32> to vector<2x32xf32>
    %526 = vector.extract_strided_slice %516 {offsets = [0, 96], sizes = [2, 32], strides = [1, 1]} : vector<2x128xf32> to vector<2x32xf32>
    %527 = math.tanh %526 : vector<2x32xf32>
    %528 = arith.mulf %524, %510 : vector<2x32xf32>
    %529 = arith.mulf %523, %527 : vector<2x32xf32>
    %530 = arith.addf %528, %529 : vector<2x32xf32>
    %531 = math.tanh %530 : vector<2x32xf32>
    %532 = arith.mulf %525, %531 : vector<2x32xf32>
    %c14_126 = arith.constant 14 : index
    %c0_127 = arith.constant 0 : index
    %533 = vector.load %arg21[%c14_126, %c0_127] : memref<16x32xf32, #tpu.memory_space<vmem>>, vector<2x32xf32>
    tpu.vector_store %arg21[%c14_126, %c0_127], %532 {strides = array<i32>} : memref<16x32xf32, #tpu.memory_space<vmem>>, vector<2x32xf32>,
    %c0_128 = arith.constant 0 : index
    %c0_129 = arith.constant 0 : index
    %534 = vector.load %arg14[%c0_128, %c0_129] : memref<4x10xf32, #tpu.memory_space<vmem>>, vector<4x10xf32>
    %cst_130 = arith.constant dense<0.000000e+00> : vector<16x10xf32>
    %535 = tpu.matmul %0, %534, %cst_130 {dimension_numbers = #tpu.dot_dimension_numbers<[1], [0], [0], [1], [0, 0, 1, 1], [], []>} : vector<16x4xf32>, vector<4x10xf32>, vector<16x10xf32> -> vector<16x10xf32>
    %c0_131 = arith.constant 0 : index
    %c0_132 = arith.constant 0 : index
    %536 = vector.load %arg15[%c0_131, %c0_132] : memref<16x10xf32, #tpu.memory_space<vmem>>, vector<16x10xf32>
    %cst_133 = arith.constant dense<0.000000e+00> : vector<16x10xf32>
    %537 = tpu.matmul %24, %536, %cst_133 {dimension_numbers = #tpu.dot_dimension_numbers<[1], [0], [0], [1], [0, 0, 1, 1], [], []>} : vector<16x16xf32>, vector<16x10xf32>, vector<16x10xf32> -> vector<16x10xf32>
    %538 = arith.addf %535, %537 : vector<16x10xf32>
    %c0_134 = arith.constant 0 : index
    %c0_135 = arith.constant 0 : index
    %539 = vector.load %arg21[%c0_134, %c0_135] : memref<16x32xf32, #tpu.memory_space<vmem>>, vector<16x32xf32>
    %c0_136 = arith.constant 0 : index
    %c0_137 = arith.constant 0 : index
    %540 = vector.load %arg16[%c0_136, %c0_137] : memref<32x10xf32, #tpu.memory_space<vmem>>, vector<32x10xf32>
    %cst_138 = arith.constant dense<0.000000e+00> : vector<16x10xf32>
    %541 = tpu.matmul %539, %540, %cst_138 {dimension_numbers = #tpu.dot_dimension_numbers<[1], [0], [0], [1], [0, 0, 1, 1], [], []>} : vector<16x32xf32>, vector<32x10xf32>, vector<16x10xf32> -> vector<16x10xf32>
    %542 = arith.addf %538, %541 : vector<16x10xf32>
    %c0_139 = arith.constant 0 : index
    %c0_140 = arith.constant 0 : index
    %543 = vector.load %arg17[%c0_139, %c0_140] : memref<1x10xf32, #tpu.memory_space<vmem>>, vector<1x10xf32>
    %544 = vector.broadcast %543 : vector<1x10xf32> to vector<16x10xf32>
    %545 = arith.addf %542, %544 : vector<16x10xf32>
    %c0_141 = arith.constant 0 : index
    %c0_142 = arith.constant 0 : index
    %546 = vector.load %arg18[%c0_141, %c0_142] : memref<10x128xf32, #tpu.memory_space<vmem>>, vector<10x128xf32>
    %cst_143 = arith.constant dense<0.000000e+00> : vector<16x128xf32>
    %547 = tpu.matmul %545, %546, %cst_143 {dimension_numbers = #tpu.dot_dimension_numbers<[1], [0], [0], [1], [0, 0, 1, 1], [], []>} : vector<16x10xf32>, vector<10x128xf32>, vector<16x128xf32> -> vector<16x128xf32>
    %c0_144 = arith.constant 0 : index
    %c0_145 = arith.constant 0 : index
    %548 = vector.load %arg19[%c0_144, %c0_145] : memref<1x128xf32, #tpu.memory_space<vmem>>, vector<1x128xf32>
    %549 = vector.broadcast %548 : vector<1x128xf32> to vector<16x128xf32>
    %550 = arith.addf %547, %549 : vector<16x128xf32>
    %c0_146 = arith.constant 0 : index
    %c0_147 = arith.constant 0 : index
    %551 = vector.load %arg20[%c0_146, %c0_147] : memref<16x128xf32, #tpu.memory_space<vmem>>, vector<16x128xf32>
    tpu.vector_store %arg20[%c0_146, %c0_147], %550 {strides = array<i32>} : memref<16x128xf32, #tpu.memory_space<vmem>>, vector<16x128xf32>,
    return
  }
  func.func @transform_0(%arg0: i32) -> (i32, i32) {
    %c0_i32 = arith.constant 0 : i32
    %c0_i32_0 = arith.constant 0 : i32
    %c0_i32_1 = arith.constant 0 : i32
    return %c0_i32, %c0_i32_0 : i32, i32
  }
  func.func @transform_1(%arg0: i32) -> (i32, i32) {
    %c0_i32 = arith.constant 0 : i32
    %c0_i32_0 = arith.constant 0 : i32
    %c0_i32_1 = arith.constant 0 : i32
    return %c0_i32, %c0_i32_0 : i32, i32
  }
  func.func @transform_2(%arg0: i32) -> (i32, i32) {
    %c0_i32 = arith.constant 0 : i32
    %c0_i32_0 = arith.constant 0 : i32
    %c0_i32_1 = arith.constant 0 : i32
    return %c0_i32, %c0_i32_0 : i32, i32
  }
  func.func @transform_3(%arg0: i32) -> (i32, i32) {
    %c0_i32 = arith.constant 0 : i32
    %c0_i32_0 = arith.constant 0 : i32
    %c0_i32_1 = arith.constant 0 : i32
    return %c0_i32, %c0_i32_0 : i32, i32
  }
  func.func @transform_4(%arg0: i32) -> (i32, i32) {
    %c0_i32 = arith.constant 0 : i32
    %c0_i32_0 = arith.constant 0 : i32
    %c0_i32_1 = arith.constant 0 : i32
    return %c0_i32, %c0_i32_0 : i32, i32
  }
  func.func @transform_5(%arg0: i32) -> (i32, i32) {
    %c0_i32 = arith.constant 0 : i32
    %c0_i32_0 = arith.constant 0 : i32
    %c0_i32_1 = arith.constant 0 : i32
    return %c0_i32, %c0_i32_0 : i32, i32
  }
  func.func @transform_6(%arg0: i32) -> (i32, i32) {
    %c0_i32 = arith.constant 0 : i32
    %c0_i32_0 = arith.constant 0 : i32
    %c0_i32_1 = arith.constant 0 : i32
    return %c0_i32, %c0_i32_0 : i32, i32
  }
  func.func @transform_7(%arg0: i32) -> (i32, i32) {
    %c0_i32 = arith.constant 0 : i32
    %c0_i32_0 = arith.constant 0 : i32
    %c0_i32_1 = arith.constant 0 : i32
    return %c0_i32, %c0_i32_0 : i32, i32
  }
  func.func @transform_8(%arg0: i32) -> (i32, i32) {
    %c0_i32 = arith.constant 0 : i32
    %c0_i32_0 = arith.constant 0 : i32
    %c0_i32_1 = arith.constant 0 : i32
    return %c0_i32, %c0_i32_0 : i32, i32
  }
  func.func @transform_9(%arg0: i32) -> (i32, i32) {
    %c0_i32 = arith.constant 0 : i32
    %c0_i32_0 = arith.constant 0 : i32
    %c0_i32_1 = arith.constant 0 : i32
    return %c0_i32, %c0_i32_0 : i32, i32
  }
  func.func @transform_10(%arg0: i32) -> (i32, i32) {
    %c0_i32 = arith.constant 0 : i32
    %c0_i32_0 = arith.constant 0 : i32
    %c0_i32_1 = arith.constant 0 : i32
    return %c0_i32, %c0_i32_0 : i32, i32
  }
  func.func @transform_11(%arg0: i32) -> (i32, i32) {
    %c0_i32 = arith.constant 0 : i32
    %c0_i32_0 = arith.constant 0 : i32
    %c0_i32_1 = arith.constant 0 : i32
    return %c0_i32, %c0_i32_0 : i32, i32
  }
  func.func @transform_12(%arg0: i32) -> (i32, i32) {
    %c0_i32 = arith.constant 0 : i32
    %c0_i32_0 = arith.constant 0 : i32
    %c0_i32_1 = arith.constant 0 : i32
    return %c0_i32, %c0_i32_0 : i32, i32
  }
  func.func @transform_13(%arg0: i32) -> (i32, i32) {
    %c0_i32 = arith.constant 0 : i32
    %c0_i32_0 = arith.constant 0 : i32
    %c0_i32_1 = arith.constant 0 : i32
    return %c0_i32, %c0_i32_0 : i32, i32
  }
  func.func @transform_14(%arg0: i32) -> (i32, i32) {
    %c0_i32 = arith.constant 0 : i32
    %c0_i32_0 = arith.constant 0 : i32
    %c0_i32_1 = arith.constant 0 : i32
    return %c0_i32, %c0_i32_0 : i32, i32
  }
  func.func @transform_15(%arg0: i32) -> (i32, i32) {
    %c0_i32 = arith.constant 0 : i32
    %c0_i32_0 = arith.constant 0 : i32
    %c0_i32_1 = arith.constant 0 : i32
    return %c0_i32, %c0_i32_0 : i32, i32
  }
  func.func @transform_16(%arg0: i32) -> (i32, i32) {
    %c0_i32 = arith.constant 0 : i32
    %c0_i32_0 = arith.constant 0 : i32
    %c0_i32_1 = arith.constant 0 : i32
    return %c0_i32, %c0_i32_0 : i32, i32
  }
  func.func @transform_17(%arg0: i32) -> (i32, i32) {
    %c0_i32 = arith.constant 0 : i32
    %c0_i32_0 = arith.constant 0 : i32
    %c0_i32_1 = arith.constant 0 : i32
    return %c0_i32, %c0_i32_0 : i32, i32
  }
  func.func @transform_18(%arg0: i32) -> (i32, i32) {
    %c0_i32 = arith.constant 0 : i32
    %c0_i32_0 = arith.constant 0 : i32
    %c0_i32_1 = arith.constant 0 : i32
    return %c0_i32, %c0_i32_0 : i32, i32
  }
  func.func @transform_19(%arg0: i32) -> (i32, i32) {
    %c0_i32 = arith.constant 0 : i32
    %c0_i32_0 = arith.constant 0 : i32
    %c0_i32_1 = arith.constant 0 : i32
    return %c0_i32, %c0_i32_0 : i32, i32
  }
}

</mosaic_0001>

<bundles_post_ra>
// kernel: tpu_custom_call.1
= control target key start
LH: loop header
LB: loop body
LE: loop exit
PB: predicated region body
PF: predicated region fallthrough
CT: control target
= control target key end

     0   :  { %s5847_s0 = inlined_call_operand.vmem [shape: f32[16,4], index: 0, kind: input, shape index: {}]   ;;  %s5848_s1 = inlined_call_operand.hbm [shape: f32[4,64], index: 1, kind: input, shape index: {}]   ;;  %s5849_s2 = inlined_call_operand.hbm [shape: f32[1,16], index: 2, kind: input, shape index: {}]   ;;  %s5850_s3 = inlined_call_operand.hbm [shape: f32[4,128], index: 3, kind: input, shape index: {}]   ;;  %s5851_s4 = inlined_call_operand.hbm [shape: f32[16,128], index: 4, kind: input, shape index: {}]   ;;  %s5852_s5 = inlined_call_operand.vmem [shape: f32[32,128], index: 5, kind: input, shape index: {}]   ;;  %s5853_s6 = inlined_call_operand.hbm [shape: f32[1,128], index: 6, kind: input, shape index: {}]   ;;  %s5854_s7 = inlined_call_operand.vmem [shape: f32[32,128], index: 7, kind: input, shape index: {}]   ;;  %s5855_s8 = inlined_call_operand.vmem [shape: f32[32,128], index: 8, kind: input, shape index: {}]   ;;  %s5856_s9 = inlined_call_operand.hbm [shape: f32[1,128], index: 9, kind: input, shape index: {}]   ;;  %s5857_s10 = inlined_call_operand.hbm [shape: f32[32,128], index: 10, kind: input, shape index: {}]   ;;  %s5858_s11 = inlined_call_operand.hbm [shape: f32[32,128], index: 11, kind: input, shape index: {}]   ;;  %s5859_s12 = inlined_call_operand.hbm [shape: f32[1,128], index: 12, kind: input, shape index: {}]   ;;  %s5860_s13 = inlined_call_operand.hbm [shape: f32[4,10], index: 13, kind: input, shape index: {}]   ;;  %s5861_s14 = inlined_call_operand.hbm [shape: f32[16,10], index: 14, kind: input, shape index: {}]   ;;  %s5862_s15 = inlined_call_operand.vmem [shape: f32[32,10], index: 15, kind: input, shape index: {}]   ;;  %s5863_s16 = inlined_call_operand.hbm [shape: f32[1,10], index: 16, kind: input, shape index: {}]   ;;  %s5864_s17 = inlined_call_operand.vmem [shape: f32[10,128], index: 17, kind: input, shape index: {}]   ;;  %s5865_s18 = inlined_call_operand.vmem [shape: f32[1,128], index: 18, kind: input, shape index: {}]   ;;  %s5866_s19 = inlined_call_operand.hbm [shape: f32[16,128], index: 19, kind: output, shape index: {}]  }
   0x1   :  { %5872 = sst [smem:[#allocation33_spill]] %s5847_s0 }
   0x2   :  { %5873 = sst [smem:[#allocation34_spill]] %s5848_s1 }
   0x3   :  { %5874 = sst [smem:[#allocation35_spill]] %s5849_s2 }
   0x4   :  { %5875 = sst [smem:[#allocation36_spill]] %s5850_s3 }
   0x5   :  { %5876 = sst [smem:[#allocation37_spill]] %s5866_s19 }
   0x6   :  { %24 = vsyncpa [#allocation5], 0 }
   0x7   :  { %25 = vsyncpa [#allocation8], 0 }
   0x8   :  { %26 = vsyncpa [#allocation11], 0 }
   0x9   :  { %27 = vsyncpa [#allocation14], 0 }
   0xa   :  { %28 = vsyncpa [#allocation17], 0 }
   0xb   :  { %29 = vsyncpa [#allocation20], 0 }
   0xc   :  { %30 = vsyncpa [#allocation23], 0 }
   0xd   :  { %31 = vsyncpa [#allocation6], 0  ;;  %s5020_s0 = smov [#allocation7]   ;;  %s5021_s20 = smov [#allocation10]  }
   0xe   :  { %s50_s30 = sshll.u32 %s5020_s0, 4  ;;  %s69_s21 = sshll.u32 %s5021_s20, 4  ;;  %s51_s30 = int_to_ptr.vmem [resolvable:$true] %s50_s30  ;;  %s5148_s21 = int_to_ptr.vmem [resolvable:$true] %s69_s21 }
   0xf   :  { %s5877_s2 = sld [smem:[#allocation35_spill]] }
  0x15   :  { %s4718_s23 = scalar_lea.hbm %s5877_s2, 16 }
  0x16   :  { %p4719_p0 = scmp.ne.s32.totalorder %s5877_s2, %s4718_s23  ;;  %p4722_p1 = scmp.lt.u32.totalorder %s4718_s23, %s5877_s2 }
  0x18   :  { %p4724_p2 = pnand %p4722_p1, %p4719_p0 }
  0x1a   :  { %4727 = shalt.err (!%p4724_p2)
}
  0x1b   :  { %s4728_s27 = scalar_lea.vmem %s51_s30, 16  ;;  %s4732_s28 = scalar_lea.vmem %s51_s30, 32 }
  0x1c   :  { %p4729_p3 = scmp.ne.s32.totalorder %s51_s30, %s4728_s27  ;;  %p4733_p4 = scmp.lt.s32.totalorder %s51_s30, %s51_s30 }
  0x1d   :  { %p4734_p5 = scmp.lt.s32.totalorder %s4732_s28, %s4728_s27 }
  0x1f   :  { %p4735_p6 = por %p4734_p5, %p4733_p4 }
  0x21   :  { %p4736_p7 = pnand %p4735_p6, %p4729_p3 }
  0x23   :  { %4739 = shalt.err (!%p4736_p7)
}
  0x24   :  { %53 = dma.hbm_to_vmem [thread:$0]  %s5877_s2, 16, %s51_s30, [#allocation8]  }
  0x25   :  { %s4740_s22 = scalar_lea.hbm %s5851_s4, 256 }
  0x26   :  { %p4741_p8 = scmp.ne.s32.totalorder %s5851_s4, %s4740_s22  ;;  %p4744_p9 = scmp.lt.u32.totalorder %s4740_s22, %s5851_s4 }
  0x28   :  { %p4746_p10 = pnand %p4744_p9, %p4741_p8 }
  0x2a   :  { %4749 = shalt.err (!%p4746_p10)
}
  0x2b   :  { %s4750_s26 = scalar_lea.vmem %s5148_s21, 256  ;;  %p4755_p12 = scmp.lt.s32.totalorder %s5148_s21, %s5148_s21 }
  0x2c   :  { %p4751_p11 = scmp.ne.s32.totalorder %s5148_s21, %s4750_s26  ;;  %p4756_p13 = scmp.lt.s32.totalorder %s4750_s26, %s4750_s26 }
  0x2e   :  { %p4757_p0 = por %p4756_p13, %p4755_p12 }
  0x30   :  { %p4758_p1 = pnand %p4757_p0, %p4751_p11 }
  0x32   :  { %4761 = shalt.err (!%p4758_p1)
}
  0x33   :  { %s5022_s30 = smov 128   ;;  %s5023_s2 = smov 8  }
  0x34   :  { %75 = dma.hbm_to_vmem [thread:$0]  %s5851_s4, 256, %s5148_s21, [#allocation11], %s5022_s30, %s5022_s30, %s5023_s2  }
  0x35   :  { %s5024_s29 = smov [#allocation13]   ;;  %s5025_s20 = smov [#allocation16]  }
  0x36   :  { %s98_s0 = sshll.u32 %s5024_s29, 4  ;;  %s119_s1 = sshll.u32 %s5025_s20, 4  ;;  %s99_s0 = int_to_ptr.vmem [resolvable:$true] %s98_s0  ;;  %s5182_s1 = int_to_ptr.vmem [resolvable:$true] %s119_s1 }
  0x37   :  { %s4762_s23 = scalar_lea.hbm %s5856_s9, 16 }
  0x38   :  { %p4763_p2 = scmp.ne.s32.totalorder %s5856_s9, %s4762_s23  ;;  %p4766_p3 = scmp.lt.u32.totalorder %s4762_s23, %s5856_s9 }
  0x3a   :  { %p4768_p4 = pnand %p4766_p3, %p4763_p2 }
  0x3c   :  { %4771 = shalt.err (!%p4768_p4)
}
  0x3d   :  { %s4772_s4 = scalar_lea.vmem %s99_s0, 16  ;;  %s4776_s21 = scalar_lea.vmem %s99_s0, 32 }
  0x3e   :  { %p4773_p5 = scmp.ne.s32.totalorder %s99_s0, %s4772_s4  ;;  %p4777_p6 = scmp.lt.s32.totalorder %s99_s0, %s99_s0 }
  0x3f   :  { %p4778_p7 = scmp.lt.s32.totalorder %s4776_s21, %s4772_s4 }
  0x41   :  { %p4779_p8 = por %p4778_p7, %p4777_p6 }
  0x43   :  { %p4780_p9 = pnand %p4779_p8, %p4773_p5 }
  0x45   :  { %4783 = shalt.err (!%p4780_p9)
}
  0x46   :  { %101 = dma.hbm_to_vmem [thread:$0]  %s5856_s9, 16, %s99_s0, [#allocation14]  }
  0x47   :  { %s4784_s22 = scalar_lea.hbm %s5858_s11, 512 }
  0x48   :  { %p4785_p10 = scmp.ne.s32.totalorder %s5858_s11, %s4784_s22  ;;  %p4788_p11 = scmp.lt.u32.totalorder %s4784_s22, %s5858_s11 }
  0x4a   :  { %p4790_p12 = pnand %p4788_p11, %p4785_p10 }
  0x4c   :  { %4793 = shalt.err (!%p4790_p12)
}
  0x4d   :  { %s4794_s3 = scalar_lea.vmem %s5182_s1, 512  ;;  %p4799_p0 = scmp.lt.s32.totalorder %s5182_s1, %s5182_s1 }
  0x4e   :  { %p4795_p13 = scmp.ne.s32.totalorder %s5182_s1, %s4794_s3  ;;  %p4800_p1 = scmp.lt.s32.totalorder %s4794_s3, %s4794_s3 }
  0x50   :  { %p4801_p2 = por %p4800_p1, %p4799_p0 }
  0x52   :  { %p4802_p3 = pnand %p4801_p2, %p4795_p13 }
  0x54   :  { %4805 = shalt.err (!%p4802_p3)
}
  0x55   :  { %125 = dma.hbm_to_vmem [thread:$0]  %s5858_s11, 512, %s5182_s1, [#allocation17], %s5022_s30, %s5022_s30, %s5023_s2  }
  0x56   :  { %s5026_s26 = smov [#allocation19]   ;;  %s5027_s21 = smov [#allocation4]  }
  0x57   :  { %s142_s4 = sshll.u32 %s5026_s26, 4  ;;  %s40_s27 = sshll.u32 %s5027_s21, 4  ;;  %s143_s4 = int_to_ptr.vmem [resolvable:$true] %s142_s4  ;;  %s41_s27 = int_to_ptr.vmem [resolvable:$true] %s40_s27 }
  0x58   :  { %s4806_s20 = scalar_lea.hbm %s5860_s13, 64 }
  0x59   :  { %p4807_p4 = scmp.ne.s32.totalorder %s5860_s13, %s4806_s20  ;;  %p4810_p5 = scmp.lt.u32.totalorder %s4806_s20, %s5860_s13 }
  0x5b   :  { %p4812_p6 = pnand %p4810_p5, %p4807_p4 }
  0x5d   :  { %4815 = shalt.err (!%p4812_p6)
}
  0x5e   :  { %s4816_s11 = scalar_lea.vmem %s143_s4, 64  ;;  %p4821_p8 = scmp.lt.s32.totalorder %s143_s4, %s143_s4 }
  0x5f   :  { %p4817_p7 = scmp.ne.s32.totalorder %s143_s4, %s4816_s11  ;;  %p4822_p9 = scmp.lt.s32.totalorder %s4816_s11, %s4816_s11 }
  0x61   :  { %p4823_p10 = por %p4822_p9, %p4821_p8 }
  0x63   :  { %p4824_p11 = pnand %p4823_p10, %p4817_p7 }
  0x65   :  { %4827 = shalt.err (!%p4824_p11)
}
  0x66   :  { %145 = dma.hbm_to_vmem [thread:$0]  %s5860_s13, 64, %s143_s4, [#allocation20]  }
  0x67   :  { %s5878_s0 = sld [smem:[#allocation34_spill]] }
  0x6d   :  { %s4828_s26 = scalar_lea.hbm %s5878_s0, 64 }
  0x6e   :  { %p4829_p12 = scmp.ne.s32.totalorder %s5878_s0, %s4828_s26  ;;  %p4832_p13 = scmp.lt.u32.totalorder %s4828_s26, %s5878_s0 }
  0x70   :  { %p4834_p0 = pnand %p4832_p13, %p4829_p12 }
  0x72   :  { %4837 = shalt.err (!%p4834_p0)
}
  0x73   :  { %s4838_s22 = scalar_lea.vmem %s41_s27, 64  ;;  %p4843_p2 = scmp.lt.s32.totalorder %s41_s27, %s41_s27 }
  0x74   :  { %p4839_p1 = scmp.ne.s32.totalorder %s41_s27, %s4838_s22  ;;  %p4844_p3 = scmp.lt.s32.totalorder %s4838_s22, %s4838_s22 }
  0x76   :  { %p4845_p4 = por %p4844_p3, %p4843_p2 }
  0x78   :  { %p4846_p5 = pnand %p4845_p4, %p4839_p1 }
  0x7a   :  { %4849 = shalt.err (!%p4846_p5)
}
  0x7b   :  { %43 = dma.hbm_to_vmem [thread:$0]  %s5878_s0, 64, %s41_s27, [#allocation5]  }
  0x7c   :  { %s5028_s19 = smov [#allocation9]   ;;  %s5029_s23 = smov [#allocation12]  }
  0x7d   :  { %s60_s24 = sshll.u32 %s5028_s19, 4  ;;  %s84_s11 = sshll.u32 %s5029_s23, 4  ;;  %s61_s24 = int_to_ptr.vmem [resolvable:$true] %s60_s24  ;;  %s85_s11 = int_to_ptr.vmem [resolvable:$true] %s84_s11 }
  0x7e   :  { %s5879_s3 = sld [smem:[#allocation36_spill]] }
  0x84   :  { %s4850_s9 = scalar_lea.hbm %s5879_s3, 64 }
  0x85   :  { %p4851_p6 = scmp.ne.s32.totalorder %s5879_s3, %s4850_s9  ;;  %p4854_p7 = scmp.lt.u32.totalorder %s4850_s9, %s5879_s3 }
  0x87   :  { %p4856_p8 = pnand %p4854_p7, %p4851_p6 }
  0x89   :  { %4859 = shalt.err (!%p4856_p8)
}
  0x8a   :  { %s4860_s27 = scalar_lea.vmem %s61_s24, 64  ;;  %p4865_p10 = scmp.lt.s32.totalorder %s61_s24, %s61_s24 }
  0x8b   :  { %p4861_p9 = scmp.ne.s32.totalorder %s61_s24, %s4860_s27  ;;  %p4866_p11 = scmp.lt.s32.totalorder %s4860_s27, %s4860_s27 }
  0x8d   :  { %p4867_p12 = por %p4866_p11, %p4865_p10 }
  0x8f   :  { %p4868_p13 = pnand %p4867_p12, %p4861_p9 }
  0x91   :  { %4871 = shalt.err (!%p4868_p13)
}
  0x92   :  { %63 = dma.hbm_to_vmem [thread:$0]  %s5879_s3, 64, %s61_s24, [#allocation8]  }
  0x93   :  { %s4872_s4 = scalar_lea.hbm %s5853_s6, 16 }
  0x94   :  { %p4873_p0 = scmp.ne.s32.totalorder %s5853_s6, %s4872_s4  ;;  %p4876_p1 = scmp.lt.u32.totalorder %s4872_s4, %s5853_s6 }
  0x96   :  { %p4878_p2 = pnand %p4876_p1, %p4873_p0 }
  0x98   :  { %4881 = shalt.err (!%p4878_p2)
}
  0x99   :  { %s4882_s9 = scalar_lea.vmem %s85_s11, 16  ;;  %s4886_s26 = scalar_lea.vmem %s85_s11, 32 }
  0x9a   :  { %p4883_p3 = scmp.ne.s32.totalorder %s85_s11, %s4882_s9  ;;  %p4887_p4 = scmp.lt.s32.totalorder %s85_s11, %s85_s11 }
  0x9b   :  { %p4888_p5 = scmp.lt.s32.totalorder %s4886_s26, %s4882_s9 }
  0x9d   :  { %p4889_p6 = por %p4888_p5, %p4887_p4 }
  0x9f   :  { %p4890_p7 = pnand %p4889_p6, %p4883_p3 }
  0xa1   :  { %4893 = shalt.err (!%p4890_p7)
}
  0xa2   :  { %87 = dma.hbm_to_vmem [thread:$0]  %s5853_s6, 16, %s85_s11, [#allocation11]  }
  0xa3   :  { %s5030_s21 = smov [#allocation15]   ;;  %s5031_s29 = smov [#allocation18]  }
  0xa4   :  { %s107_s28 = sshll.u32 %s5030_s21, 4  ;;  %s132_s27 = sshll.u32 %s5031_s29, 4  ;;  %s108_s28 = int_to_ptr.vmem [resolvable:$true] %s107_s28  ;;  %s133_s27 = int_to_ptr.vmem [resolvable:$true] %s132_s27 }
  0xa5   :  { %s4894_s22 = scalar_lea.hbm %s5857_s10, 512 }
  0xa6   :  { %p4895_p8 = scmp.ne.s32.totalorder %s5857_s10, %s4894_s22  ;;  %p4898_p9 = scmp.lt.u32.totalorder %s4894_s22, %s5857_s10 }
  0xa8   :  { %p4900_p10 = pnand %p4898_p9, %p4895_p8 }
  0xaa   :  { %4903 = shalt.err (!%p4900_p10)
}
  0xab   :  { %s4904_s6 = scalar_lea.vmem %s108_s28, 512  ;;  %p4909_p12 = scmp.lt.s32.totalorder %s108_s28, %s108_s28 }
  0xac   :  { %p4905_p11 = scmp.ne.s32.totalorder %s108_s28, %s4904_s6  ;;  %p4910_p13 = scmp.lt.s32.totalorder %s4904_s6, %s4904_s6 }
  0xae   :  { %p4911_p0 = por %p4910_p13, %p4909_p12 }
  0xb0   :  { %p4912_p1 = pnand %p4911_p0, %p4905_p11 }
  0xb2   :  { %4915 = shalt.err (!%p4912_p1)
}
  0xb3   :  { %113 = dma.hbm_to_vmem [thread:$0]  %s5857_s10, 512, %s108_s28, [#allocation14], %s5022_s30, %s5022_s30, %s5023_s2  }
  0xb4   :  { %s4916_s26 = scalar_lea.hbm %s5859_s12, 16 }
  0xb5   :  { %p4917_p2 = scmp.ne.s32.totalorder %s5859_s12, %s4916_s26  ;;  %p4920_p3 = scmp.lt.u32.totalorder %s4916_s26, %s5859_s12 }
  0xb7   :  { %p4922_p4 = pnand %p4920_p3, %p4917_p2 }
  0xb9   :  { %4925 = shalt.err (!%p4922_p4)
}
  0xba   :  { %s4926_s0 = scalar_lea.vmem %s133_s27, 16  ;;  %s4930_s20 = scalar_lea.vmem %s133_s27, 32 }
  0xbb   :  { %p4927_p5 = scmp.ne.s32.totalorder %s133_s27, %s4926_s0  ;;  %p4931_p6 = scmp.lt.s32.totalorder %s133_s27, %s133_s27 }
  0xbc   :  { %p4932_p7 = scmp.lt.s32.totalorder %s4930_s20, %s4926_s0 }
  0xbe   :  { %p4933_p8 = por %p4932_p7, %p4931_p6 }
  0xc0   :  { %p4934_p9 = pnand %p4933_p8, %p4927_p5 }
  0xc2   :  { %4937 = shalt.err (!%p4934_p9)
}
  0xc3   :  { %135 = dma.hbm_to_vmem [thread:$0]  %s5859_s12, 16, %s133_s27, [#allocation17]  }
  0xc4   :  { %s5032_s22 = smov [#allocation21]   ;;  %s5033_s4 = smov [#allocation22]  }
  0xc5   :  { %s151_s13 = sshll.u32 %s5032_s22, 4  ;;  %s166_s19 = sshll.u32 %s5033_s4, 4  ;;  %s152_s13 = int_to_ptr.vmem [resolvable:$true] %s151_s13  ;;  %s167_s19 = int_to_ptr.vmem [resolvable:$true] %s166_s19 }
  0xc6   :  { %s4938_s11 = scalar_lea.hbm %s5861_s14, 256 }
  0xc7   :  { %p4939_p10 = scmp.ne.s32.totalorder %s5861_s14, %s4938_s11  ;;  %p4942_p11 = scmp.lt.u32.totalorder %s4938_s11, %s5861_s14 }
  0xc9   :  { %p4944_p12 = pnand %p4942_p11, %p4939_p10 }
  0xcb   :  { %4947 = shalt.err (!%p4944_p12)
}
  0xcc   :  { %s4948_s12 = scalar_lea.vmem %s152_s13, 256  ;;  %p4953_p0 = scmp.lt.s32.totalorder %s152_s13, %s152_s13 }
  0xcd   :  { %p4949_p13 = scmp.ne.s32.totalorder %s152_s13, %s4948_s12  ;;  %p4954_p1 = scmp.lt.s32.totalorder %s4948_s12, %s4948_s12 }
  0xcf   :  { %p4955_p2 = por %p4954_p1, %p4953_p0 }
  0xd1   :  { %p4956_p3 = pnand %p4955_p2, %p4949_p13 }
  0xd3   :  { %4959 = shalt.err (!%p4956_p3)
}
  0xd4   :  { %157 = dma.hbm_to_vmem [thread:$0]  %s5861_s14, 256, %s152_s13, [#allocation20], %s5022_s30, %s5022_s30, %s5023_s2  }
  0xd5   :  { %s4960_s29 = scalar_lea.hbm %s5863_s16, 16 }
  0xd6   :  { %p4961_p4 = scmp.ne.s32.totalorder %s5863_s16, %s4960_s29  ;;  %p4964_p5 = scmp.lt.u32.totalorder %s4960_s29, %s5863_s16 }
  0xd8   :  { %p4966_p6 = pnand %p4964_p5, %p4961_p4 }
  0xda   :  { %4969 = shalt.err (!%p4966_p6)
}
  0xdb   :  { %s4970_s22 = scalar_lea.vmem %s167_s19, 16  ;;  %s4974_s4 = scalar_lea.vmem %s167_s19, 32 }
  0xdc   :  { %p4971_p7 = scmp.ne.s32.totalorder %s167_s19, %s4970_s22  ;;  %p4975_p8 = scmp.lt.s32.totalorder %s167_s19, %s167_s19 }
  0xdd   :  { %p4976_p9 = scmp.lt.s32.totalorder %s4974_s4, %s4970_s22 }
  0xdf   :  { %p4977_p10 = por %p4976_p9, %p4975_p8 }
  0xe1   :  { %p4978_p11 = pnand %p4977_p10, %p4971_p7 }
  0xe3   :  { %4981 = shalt.err (!%p4978_p11)
}
  0xe4   :  { %169 = dma.hbm_to_vmem [thread:$0]  %s5863_s16, 16, %s167_s19, [#allocation23]  }
  0xe5   :  { %5004 = dma.done.wait [#allocation5], 64  }
  0xe6   :  { %5005 = vsyncadd [#allocation5], 4294967232 }
  0xe7   :  { %5006 = dma.done.wait [#allocation8], 80  }
  0xe8   :  { %5007 = vsyncadd [#allocation8], 4294967216 }
  0xe9   :  { %5008 = dma.done.wait [#allocation11], 272  }
  0xea   :  { %5009 = vsyncadd [#allocation11], 4294967024 }
  0xeb   :  { %5010 = dma.done.wait [#allocation14], 528  }
  0xec   :  { %5011 = vsyncadd [#allocation14], 4294966768 }
  0xed   :  { %5012 = dma.done.wait [#allocation17], 528  }
  0xee   :  { %5013 = vsyncadd [#allocation17], 4294966768 }
  0xef   :  { %5014 = dma.done.wait [#allocation20], 320  }
  0xf0   :  { %5015 = vsyncadd [#allocation20], 4294966976 }
  0xf1   :  { %5016 = dma.done.wait [#allocation23], 16  }
  0xf2   :  { %5017 = vsyncadd [#allocation23], 4294967280  ;;  %v5034_v0 = vmov 1   ;;  %v5035_v1 = vmov 2   ;;  %vm220_vm0 = vcmask 1043456   ;;  %vm213_vm1 = vcmask 31744  }
  0xf3   :  { %4517 = vset.pattern.permute.xlu0 %v5034_v0  ;;  %4518 = vset.pattern.permute.xlu1 %v5035_v1  ;;  %v212_v2 = vld [vmem:[#allocation4] sm:$0xf]  ;;  %s5880_s23 = sld [smem:[#allocation33_spill]]  ;;  %v5036_v5 = vmov 3   ;;  %v5037_v6 = vmov 0   ;;  %v379_v9 = vld [vmem:[#allocation10] sm:$0xff] }
  0xf4   :  { %3968 = vmatprep.subr.msk.mxu1 %vm220_vm0, %v212_v2  ;;  %v380_v10 = vld [vmem:[#allocation10 + $0x8] sm:$0xff]  ;;  %s5038_s1 = smov 112   ;;  %s5039_s25 = smov 96   ;;  %v378_v17 = vld [vmem:[#allocation9] sm:$0xf]  ;;  %v5041_v27 = vmov 0.0|0.0  }
  0xf5   :  { %3969 = vmatpush3.msk.msra.mxu1 %vm220_vm0, %v212_v2  ;;  %v4301_v13 = vpack.c.bf16 %v380_v10, %v379_v9  ;;  %v550_v22 = vld [vmem:[%s5852_s5] sm:$0xff]  ;;  %v551_v23 = vld [vmem:[%s5852_s5 + $0x8] sm:$0xff]  ;;  %v552_v25 = vld [vmem:[%s5852_s5 + $0x10] sm:$0xff]  ;;  %s5040_s0 = smov 80   ;;  %4305 = vmatprep.subr.bf16.mxu0 %v5041_v27  ;;  %vm5042_vm2 = vmmov 0   ;;  %v5043_v32 = vmov 0.0  }
  0xf6   :  { %v5349_v24 = vpack.c.bf16 %v551_v23, %v550_v22  ;;  %v553_v26 = vld [vmem:[%s5852_s5 + $0x18] sm:$0xff]  ;;  %3993 = vmatprep.mubr.msk.f32.mxu0 %vm5042_vm2, %v5043_v32  ;;  %v3739_v42 = vld [vmem:[#allocation7] ss:$0 sm:$0xff]  ;;  %vm381_vm3 = vcmask 130048   ;;  %v3745_v54 = vld [vmem:[#allocation12] ss:$0 sm:$0xff] }
  0xf7   :  { %4302 = vmatprep.subr.bf16.mxu1 %v4301_v13  ;;  %v5359_v29 = vpack.c.bf16 %v553_v26, %v552_v25  ;;  %s5044_s5 = smov 32   ;;  %s5045_s20 = smov 64   ;;  %vm657_vm4 = vcmask 254976   ;;  %vm554_vm5 = vcmask 261120   ;;  %vm766_vm6 = vcmask 257026  }
  0xf8   :  { %4307 = vmatpush3.bf16.msra.mxu0 %v5349_v24  ;;  %vm990_vm7 = vcmask 261126   ;;  %vm878_vm8 = vcmask 259076   ;;  %vm3632_vm9 = vcmask 1041408   ;;  %vm5046_vm10 = vmmov 1   ;;  %s5047_s19 = smov [#allocation24]  }
  0xf9   :  { %v5321_v3 = vld [vmem:[%s5880_s23] sm:$0xff]  ;;  %v5326_v4 = vld [vmem:[%s5880_s23 + $0x8] sm:$0xff]  ;;  %4308 = vmatprep.subr.bf16.mxu0 %v5041_v27  ;;  %vm4478_vm11 = vmpackc.low %vm3632_vm9, %vm5046_vm10  ;;  %vm3625_vm12 = vcmask 80896  }
  0xfa   :  { %3970 = vmatprep.mubr.msk.f32.mxu1 %vm213_vm1, %v5321_v3  ;;  %310 = vperm.xlu0 %4517, %v5321_v3  }
  0xfb   :  { %3971 = vmatmul.mubr.msk.f32.vlgmr.msra.gmra.mrb[0].mxu1 %vm213_vm1, %v5326_v4  ;;  %330 = vperm.xlu1 %4518, %v5321_v3  }
  0xfc   :  { %4304 = vmatpush3.bf16.msra.mxu1 %v4301_v13  ;;  %4310 = vmatpush3.bf16.msra.mxu0 %v5359_v29 }
  0xfd   :  { %3980 = vmatprep.subr.msk.mxu1 %vm220_vm0, %v378_v17  ;;  %4317 = vmatprep.subr.bf16.mxu0 %v5041_v27 }
  0xfe   :  { %314 = vperm.xlu0 %4517, %v5326_v4  }
  0xff   :  { %334 = vperm.xlu1 %4518, %v5326_v4   ;;  %3994 = vmatmul.mubr.f32.vlgmr.msra.gmra.mrb[0].mxu0 %v5043_v32 }
 0x100   :  { %4319 = vmatpush3.bf16.msra.mxu0 %v5349_v24  ;;  %4015 = vmatprep.mubr.msk.f32.mxu0 %vm5042_vm2, %v5043_v32 }
 0x101   :  { %4320 = vmatprep.subr.bf16.mxu0 %v5041_v27 }
 0x102   :  { %4519 = vset.pattern.permute.xlu0 %v5036_v5 }
 0x103   :  { %4520 = vset.pattern.permute.xlu1 %v5036_v5  ;;  %350 = vperm.xlu0 %4519, %v5321_v3  }
 0x104   :  { %354 = vperm.xlu1 %4520, %v5326_v4   ;;  %4322 = vmatpush3.bf16.msra.mxu0 %v5359_v29 }
 0x105   :  { %4329 = vmatprep.subr.bf16.mxu0 %v5041_v27 }
 0x107   :  { %4522 = vset.pattern.permute.xlu0 %v5037_v6 }
 0x108   :  { %4521 = vset.pattern.permute.xlu1 %v5037_v6  ;;  %304 = vperm.xlu0 %4522, %v5326_v4  }
 0x109   :  { %300 = vperm.xlu1 %4521, %v5321_v3  }
 0x10c   :  { %4523 = vset.pattern.permute.xlu0 %v5036_v5 }
 0x179   :  { %v311_v7 = vpop.permute.xlu0 %310 }
 0x17a   :  { %v331_v11 = vpop.permute.xlu1 %330 }
 0x17d   :  { %v315_v8 = vpop.permute.xlu0 %314 }
 0x17e   :  { %v335_v20 = vpop.permute.xlu1 %334 }
 0x182   :  { %v351_v18 = vpop.permute.xlu0 %350 }
 0x183   :  { %v355_v30 = vpop.permute.xlu1 %354 }
 0x187   :  { %v305_v34 = vpop.permute.xlu0 %304 }
 0x188   :  { %v301_v33 = vpop.permute.xlu1 %300 }
 0x1ce   :  { %v3972_v12 = vpop.f32.mrb[0].mxu1 }
 0x1cf   :  { %v290_v14 = vpop.f32.mrb[1].mxu1  ;;  %v318_v15 = vmul.f32 %v3972_v12, %v315_v8  ;;  %v338_v28 = vmul.f32 %v3972_v12, %v335_v20  ;;  %v358_v31 = vmul.f32 %v3972_v12, %v355_v30  ;;  %v308_v40 = vmul.f32 %v3972_v12, %v305_v34 }
 0x1d0   :  { %v337_v16 = vmul.f32 %v331_v11, %v290_v14  ;;  %v317_v19 = vmul.f32 %v311_v7, %v290_v14  ;;  %v357_v21 = vmul.f32 %v351_v18, %v290_v14  ;;  %v307_v37 = vmul.f32 %v301_v33, %v290_v14 }
 0x1d1   :  { %323 = vrot.lane.b32.xlu1 %v318_v15, %s5038_s1 }
 0x1d2   :  { %341 = vrot.lane.b32.xlu0 %v337_v16, %s5039_s25  ;;  %v624_v52 = vpop.f32.mrb[0].mxu0 }
 0x1d3   :  { %v3995_v53 = vpop.f32.mrb[1].mxu0 }
 0x1d5   :  { %321 = vrot.lane.b32.xlu1 %v317_v19, %s5038_s1 }
 0x1d6   :  { %361 = vrot.lane.b32.xlu0 %v357_v21, %s5040_s0 }
 0x1d9   :  { %343 = vrot.lane.b32.xlu1 %v338_v28, %s5039_s25 }
 0x1dd   :  { %363 = vrot.lane.b32.xlu1 %v358_v31, %s5040_s0 }
 0x243   :  { %v324_v35 = vpop.permute.xlu1 %323 }
 0x244   :  { %v342_v36 = vpop.permute.xlu0 %341  ;;  %v328_v45 = vadd.f32 %v324_v35, %v308_v40 }
 0x247   :  { %v322_v38 = vpop.permute.xlu1 %321 }
 0x248   :  { %v327_v39 = vadd.f32 %v322_v38, %v307_v37  ;;  %v362_v43 = vpop.permute.xlu0 %361 }
 0x24a   :  { %v347_v41 = vadd.f32 %v342_v36, %v327_v39 }
 0x24b   :  { %v344_v44 = vpop.permute.xlu1 %343 }
 0x24c   :  { %v367_v46 = vadd.f32 %v362_v43, %v347_v41  ;;  %v348_v48 = vadd.f32 %v344_v44, %v328_v45 }
 0x24e   :  { %v5373_v47 = vadd.f32 %v3739_v42, %v367_v46 }
 0x24f   :  { %v364_v49 = vpop.permute.xlu1 %363 }
 0x250   :  { %v368_v50 = vadd.f32 %v364_v49, %v348_v48  ;;  %3977 = vmatprep.mubr.msk.f32.mxu1 %vm381_vm3, %v5373_v47 }
 0x252   :  { %v5377_v51 = vadd.f32 %v3739_v42, %v368_v50 }
 0x254   :  { %3978 = vmatmul.mubr.msk.f32.vlgmr.msra.gmra.mrb[2].mxu1 %vm381_vm3, %v5377_v51 }
 0x255   :  { %3981 = vmatpush3.msk.msra.mxu1 %vm220_vm0, %v378_v17  ;;  %3982 = vmatprep.mubr.msk.f32.mxu1 %vm213_vm1, %v5321_v3 }
 0x256   :  { %4311 = vmatprep.subr.bf16.mxu1 %v5041_v27 }
 0x25c   :  { %3983 = vmatmul.mubr.msk.f32.vlgmr.msra.gmra.mrb[2].mxu1 %vm213_vm1, %v5326_v4 }
 0x25d   :  { %4313 = vmatpush3.bf16.msra.mxu1 %v5349_v24  ;;  %4004 = vmatprep.mubr.msk.f32.mxu1 %vm5042_vm2, %v5043_v32 }
 0x25e   :  { %4314 = vmatprep.subr.bf16.mxu1 %v5041_v27 }
 0x261   :  { %4316 = vmatpush3.bf16.msra.mxu1 %v5359_v29 }
 0x262   :  { %4323 = vmatprep.subr.bf16.mxu1 %v5041_v27 }
 0x32f   :  { %v3984_v55 = vpop.f32.mrb[2].mxu1 }
 0x330   :  { %v5393_v56 = vadd.f32 %v3984_v55, %v3745_v54  ;;  %v532_v57 = vpop.f32.mrb[3].mxu1 }
 0x331   :  { %v5395_v58 = vadd.f32 %v3745_v54, %v532_v57 }
 0x333   :  { %v628_v59 = vadd.f32 %v624_v52, %v5395_v58 }
 0x335   :  { %4524 = vtanh.f32 %v628_v59  ;;  %v3746_v61 = vmul.f32 -1.442695, %v628_v59 }
 0x337   :  { %4526 = vpow2.f32 %v3746_v61 }
 0x33f   :  { %v4525_v60 = vpop.eup %4524 }
 0x340   :  { %638 = vrot.lane.b32.xlu0 %v4525_v60, %s5044_s5 }
 0x341   :  { %v4527_v62 = vpop.eup %4526 }
 0x342   :  { %v632_v63 = vadd.f32 1.0, %v4527_v62 }
 0x344   :  { %4528 = vrcp.f32 %v632_v63 }
 0x34e   :  { %v4529_v0 = vpop.eup %4528 }
 0x34f   :  { %v636_v3 = vmul.f32 0.0, %v4529_v0 }
 0x3b2   :  { %v639_v1 = vpop.permute.xlu0 %638 }
 0x3b3   :  { %v641_v2 = vmul.f32 %v4529_v0, %v639_v1 }
 0x3b5   :  { %643 = vrot.lane.b32.xlu1 %v641_v2, %s5044_s5 }
 0x427   :  { %v644_v4 = vpop.permute.xlu1 %643 }
 0x428   :  { %v646_v5 = vadd.f32 %v644_v4, %v636_v3 }
 0x42a   :  { %4530 = vtanh.f32 %v646_v5  ;;  %v743_v21 = vrot.slane %v646_v5, 6 }
 0x434   :  { %v4531_v6 = vpop.eup %4530 }
 0x435   :  { %649 = vrot.lane.b32.xlu0 %v4531_v6, %s5044_s5 }
 0x4a7   :  { %v650_v7 = vpop.permute.xlu0 %649 }
 0x4a8   :  { %v652_v8 = vmul.f32 %v4529_v0, %v650_v7 }
 0x4aa   :  { %654 = vrot.lane.b32.xlu1 %v652_v8, %s5045_s20 }
 0x51c   :  { %v655_v9 = vpop.permute.xlu1 %654 }
 0x51d   :  { %658 = vst.msk [vmem:[#allocation2] sm:$0x3] %vm657_vm4, %v655_v9  ;;  %4005 = vmatmul.mubr.msk.f32.vlgmr.msra.gmra.mrb[4].mxu1 %vm554_vm5, %v655_v9 }
 0x51e   :  { %4325 = vmatpush3.bf16.msra.mxu1 %v5349_v24  ;;  %4026 = vmatprep.mubr.msk.f32.mxu1 %vm5042_vm2, %v5043_v32 }
 0x51f   :  { %4326 = vmatprep.subr.bf16.mxu1 %v5041_v27 }
 0x522   :  { %4328 = vmatpush3.bf16.msra.mxu1 %v5359_v29 }
 0x523   :  { %4335 = vmatprep.subr.bf16.mxu1 %v5041_v27 }
 0x5f0   :  { %v727_v10 = vpop.f32.mrb[4].mxu1 }
 0x5f1   :  { %v732_v11 = vrot.slane %v727_v10, 6  ;;  %v4006_v12 = vpop.f32.mrb[5].mxu1 }
 0x5f3   :  { %v734_v13 = vadd.f32 %v732_v11, %v5395_v58 }
 0x5f5   :  { %4532 = vtanh.f32 %v734_v13  ;;  %v3748_v15 = vmul.f32 -1.442695, %v734_v13 }
 0x5f7   :  { %4534 = vpow2.f32 %v3748_v15 }
 0x5ff   :  { %v4533_v14 = vpop.eup %4532 }
 0x600   :  { %747 = vrot.lane.b32.xlu0 %v4533_v14, %s5044_s5 }
 0x601   :  { %v4535_v16 = vpop.eup %4534 }
 0x602   :  { %v738_v17 = vadd.f32 1.0, %v4535_v16 }
 0x604   :  { %4536 = vrcp.f32 %v738_v17 }
 0x60e   :  { %v4537_v18 = vpop.eup %4536 }
 0x60f   :  { %v745_v22 = vmul.f32 %v4537_v18, %v743_v21 }
 0x672   :  { %v748_v19 = vpop.permute.xlu0 %747 }
 0x673   :  { %v750_v20 = vmul.f32 %v4537_v18, %v748_v19 }
 0x675   :  { %752 = vrot.lane.b32.xlu1 %v750_v20, %s5044_s5 }
 0x6e7   :  { %v753_v23 = vpop.permute.xlu1 %752 }
 0x6e8   :  { %v755_v25 = vadd.f32 %v753_v23, %v745_v22 }
 0x6ea   :  { %4538 = vtanh.f32 %v755_v25  ;;  %v855_v45 = vrot.slane %v755_v25, 6 }
 0x6f4   :  { %v4539_v26 = vpop.eup %4538 }
 0x6f5   :  { %758 = vrot.lane.b32.xlu0 %v4539_v26, %s5044_s5 }
 0x767   :  { %v759_v28 = vpop.permute.xlu0 %758 }
 0x768   :  { %v5414_v30 = vmul.f32 %v4537_v18, %v759_v28 }
 0x76a   :  { %v768_v31 = vrot.slane %v5414_v30, 2 }
 0x76c   :  { %769 = vrot.lane.b32.xlu1 %v768_v31, %s5045_s20 }
 0x7de   :  { %v770_v33 = vpop.permute.xlu1 %769 }
 0x7df   :  { %4016 = vmatmul.mubr.msk.f32.vlgmr.msra.gmra.mrb[2].mxu0 %vm554_vm5, %v770_v33 }
 0x7e0   :  { %4331 = vmatpush3.bf16.msra.mxu0 %v5349_v24  ;;  %4037 = vmatprep.mubr.msk.f32.mxu0 %vm5042_vm2, %v5043_v32 }
 0x7e1   :  { %4332 = vmatprep.subr.bf16.mxu0 %v5041_v27 }
 0x7e4   :  { %4334 = vmatpush3.bf16.msra.mxu0 %v5359_v29 }
 0x7e5   :  { %4341 = vmatprep.subr.bf16.mxu0 %v5041_v27 }
 0x8b2   :  { %v839_v34 = vpop.f32.mrb[2].mxu0 }
 0x8b3   :  { %v844_v35 = vrot.slane %v839_v34, 4  ;;  %v4017_v36 = vpop.f32.mrb[3].mxu0 }
 0x8b5   :  { %v846_v37 = vadd.f32 %v844_v35, %v5395_v58 }
 0x8b7   :  { %4540 = vtanh.f32 %v846_v37  ;;  %v3750_v39 = vmul.f32 -1.442695, %v846_v37 }
 0x8b9   :  { %4542 = vpow2.f32 %v3750_v39 }
 0x8c1   :  { %v4541_v38 = vpop.eup %4540 }
 0x8c2   :  { %859 = vrot.lane.b32.xlu0 %v4541_v38, %s5044_s5 }
 0x8c3   :  { %v4543_v40 = vpop.eup %4542 }
 0x8c4   :  { %v850_v41 = vadd.f32 1.0, %v4543_v40 }
 0x8c6   :  { %4544 = vrcp.f32 %v850_v41 }
 0x8d0   :  { %v4545_v42 = vpop.eup %4544 }
 0x8d1   :  { %v857_v46 = vmul.f32 %v4545_v42, %v855_v45 }
 0x934   :  { %v860_v43 = vpop.permute.xlu0 %859 }
 0x935   :  { %v862_v44 = vmul.f32 %v4545_v42, %v860_v43 }
 0x937   :  { %864 = vrot.lane.b32.xlu1 %v862_v44, %s5044_s5 }
 0x9a9   :  { %v865_v48 = vpop.permute.xlu1 %864 }
 0x9aa   :  { %v867_v49 = vadd.f32 %v865_v48, %v857_v46 }
 0x9ac   :  { %4546 = vtanh.f32 %v867_v49  ;;  %v967_v5 = vrot.slane %v867_v49, 6 }
 0x9b6   :  { %v4547_v50 = vpop.eup %4546 }
 0x9b7   :  { %870 = vrot.lane.b32.xlu0 %v4547_v50, %s5044_s5 }
 0xa29   :  { %v871_v52 = vpop.permute.xlu0 %870 }
 0xa2a   :  { %v5429_v53 = vmul.f32 %v4545_v42, %v871_v52 }
 0xa2c   :  { %v880_v54 = vrot.slane %v5429_v53, 4 }
 0xa2e   :  { %881 = vrot.lane.b32.xlu1 %v880_v54, %s5045_s20 }
 0xaa0   :  { %v882_v55 = vpop.permute.xlu1 %881 }
 0xaa1   :  { %4027 = vmatmul.mubr.msk.f32.vlgmr.msra.gmra.mrb[6].mxu1 %vm554_vm5, %v882_v55 }
 0xaa2   :  { %4337 = vmatpush3.bf16.msra.mxu1 %v5349_v24  ;;  %4048 = vmatprep.mubr.msk.f32.mxu1 %vm5042_vm2, %v5043_v32 }
 0xaa3   :  { %4338 = vmatprep.subr.bf16.mxu1 %v5041_v27 }
 0xaa6   :  { %4340 = vmatpush3.bf16.msra.mxu1 %v5359_v29 }
 0xaa7   :  { %4347 = vmatprep.subr.bf16.mxu1 %v5041_v27 }
 0xb74   :  { %v951_v57 = vpop.f32.mrb[6].mxu1 }
 0xb75   :  { %v956_v59 = vrot.slane %v951_v57, 2  ;;  %v4028_v60 = vpop.f32.mrb[7].mxu1 }
 0xb77   :  { %v958_v61 = vadd.f32 %v956_v59, %v5395_v58 }
 0xb79   :  { %4548 = vtanh.f32 %v958_v61  ;;  %v3752_v63 = vmul.f32 -1.442695, %v958_v61 }
 0xb7b   :  { %4550 = vpow2.f32 %v3752_v63 }
 0xb83   :  { %v4549_v62 = vpop.eup %4548 }
 0xb84   :  { %971 = vrot.lane.b32.xlu0 %v4549_v62, %s5044_s5 }
 0xb85   :  { %v4551_v0 = vpop.eup %4550 }
 0xb86   :  { %v962_v1 = vadd.f32 1.0, %v4551_v0 }
 0xb88   :  { %4552 = vrcp.f32 %v962_v1 }
 0xb92   :  { %v4553_v2 = vpop.eup %4552 }
 0xb93   :  { %v969_v6 = vmul.f32 %v4553_v2, %v967_v5 }
 0xbf6   :  { %v972_v3 = vpop.permute.xlu0 %971 }
 0xbf7   :  { %v974_v4 = vmul.f32 %v4553_v2, %v972_v3 }
 0xbf9   :  { %976 = vrot.lane.b32.xlu1 %v974_v4, %s5044_s5 }
 0xc6b   :  { %v977_v7 = vpop.permute.xlu1 %976 }
 0xc6c   :  { %v979_v8 = vadd.f32 %v977_v7, %v969_v6 }
 0xc6e   :  { %4554 = vtanh.f32 %v979_v8  ;;  %v1076_v23 = vrot.slane %v979_v8, 6 }
 0xc78   :  { %v4555_v58 = vpop.eup %4554 }
 0xc79   :  { %982 = vrot.lane.b32.xlu0 %v4555_v58, %s5044_s5 }
 0xceb   :  { %v983_v9 = vpop.permute.xlu0 %982 }
 0xcec   :  { %v5444_v10 = vmul.f32 %v4553_v2, %v983_v9 }
 0xcee   :  { %v992_v11 = vrot.slane %v5444_v10, 6 }
 0xcf0   :  { %993 = vrot.lane.b32.xlu1 %v992_v11, %s5045_s20 }
 0xd62   :  { %v994_v12 = vpop.permute.xlu1 %993 }
 0xd63   :  { %4038 = vmatmul.mubr.msk.f32.vlgmr.msra.gmra.mrb[4].mxu0 %vm554_vm5, %v994_v12 }
 0xd64   :  { %4343 = vmatpush3.bf16.msra.mxu0 %v5349_v24  ;;  %4059 = vmatprep.mubr.msk.f32.mxu0 %vm5042_vm2, %v5043_v32 }
 0xd65   :  { %4344 = vmatprep.subr.bf16.mxu0 %v5041_v27 }
 0xd68   :  { %4346 = vmatpush3.bf16.msra.mxu0 %v5359_v29 }
 0xe36   :  { %v1063_v13 = vpop.f32.mrb[4].mxu0 }
 0xe37   :  { %v1067_v14 = vadd.f32 %v1063_v13, %v5393_v56  ;;  %v4039_v15 = vpop.f32.mrb[5].mxu0 }
 0xe39   :  { %4556 = vtanh.f32 %v1067_v14  ;;  %v3754_v17 = vmul.f32 -1.442695, %v1067_v14 }
 0xe3b   :  { %4558 = vpow2.f32 %v3754_v17 }
 0xe43   :  { %v4557_v16 = vpop.eup %4556 }
 0xe44   :  { %1080 = vrot.lane.b32.xlu0 %v4557_v16, %s5044_s5 }
 0xe45   :  { %v4559_v18 = vpop.eup %4558 }
 0xe46   :  { %v1071_v19 = vadd.f32 1.0, %v4559_v18 }
 0xe48   :  { %4560 = vrcp.f32 %v1071_v19 }
 0xe52   :  { %v4561_v20 = vpop.eup %4560 }
 0xe53   :  { %v1078_v25 = vmul.f32 %v4561_v20, %v1076_v23 }
 0xeb6   :  { %v1081_v21 = vpop.permute.xlu0 %1080 }
 0xeb7   :  { %v1083_v22 = vmul.f32 %v4561_v20, %v1081_v21 }
 0xeb9   :  { %1085 = vrot.lane.b32.xlu1 %v1083_v22, %s5044_s5 }
 0xf2b   :  { %v1086_v26 = vpop.permute.xlu1 %1085 }
 0xf2c   :  { %v1088_v28 = vadd.f32 %v1086_v26, %v1078_v25 }
 0xf2e   :  { %4562 = vtanh.f32 %v1088_v28 }
 0xf38   :  { %v4563_v31 = vpop.eup %4562 }
 0xf39   :  { %1091 = vrot.lane.b32.xlu0 %v4563_v31, %s5044_s5 }
 0xfab   :  { %v1092_v33 = vpop.permute.xlu0 %1091 }
 0xfac   :  { %v1094_v34 = vmul.f32 %v4561_v20, %v1092_v33 }
 0xfae   :  { %1096 = vrot.lane.b32.xlu1 %v1094_v34, %s5045_s20 }
0x1020   :  { %v1097_v35 = vpop.permute.xlu1 %1096 }
0x1021   :  { %1099 = vst.msk [vmem:[#allocation2 + $0x8] sm:$0x3] %vm657_vm4, %v1097_v35  ;;  %4049 = vmatmul.mubr.msk.f32.vlgmr.msra.gmra.mrb[8].mxu1 %vm554_vm5, %v1097_v35 }
0x1022   :  { %4349 = vmatpush3.bf16.msra.mxu1 %v5349_v24  ;;  %4070 = vmatprep.mubr.msk.f32.mxu1 %vm5042_vm2, %v5043_v32 }
0x1023   :  { %4350 = vmatprep.subr.bf16.mxu1 %v5041_v27 }
0x1026   :  { %4352 = vmatpush3.bf16.msra.mxu1 %v5359_v29  ;;  %v1184_v29 = vrot.slane %v1088_v28, 6 }
0x1027   :  { %4361 = vmatprep.subr.bf16.mxu1 %v5041_v27 }
0x10f4   :  { %v1168_v36 = vpop.f32.mrb[8].mxu1 }
0x10f5   :  { %v1173_v37 = vrot.slane %v1168_v36, 6  ;;  %v4050_v38 = vpop.f32.mrb[9].mxu1 }
0x10f7   :  { %v1175_v39 = vadd.f32 %v1173_v37, %v5393_v56  ;;  %v1433_v37 = vld [vmem:[%s5854_s7 + $0x8] sm:$0xff] }
0x10f9   :  { %4564 = vtanh.f32 %v1175_v39  ;;  %v3756_v41 = vmul.f32 -1.442695, %v1175_v39  ;;  %v1524_v39 = vld [vmem:[%s5855_s8] sm:$0xff] }
0x10fb   :  { %4566 = vpow2.f32 %v3756_v41 }
0x1103   :  { %v4565_v40 = vpop.eup %4564 }
0x1104   :  { %1188 = vrot.lane.b32.xlu0 %v4565_v40, %s5044_s5  ;;  %v1434_v40 = vld [vmem:[%s5854_s7 + $0x10] sm:$0xff] }
0x1105   :  { %v4567_v24 = vpop.eup %4566 }
0x1106   :  { %v1179_v42 = vadd.f32 1.0, %v4567_v24  ;;  %v1435_v24 = vld [vmem:[%s5854_s7 + $0x18] sm:$0xff] }
0x1108   :  { %4568 = vrcp.f32 %v1179_v42  ;;  %v1526_v42 = vld [vmem:[%s5855_s8 + $0x10] sm:$0xff] }
0x1112   :  { %v4569_v43 = vpop.eup %4568 }
0x1113   :  { %v1186_v46 = vmul.f32 %v4569_v43, %v1184_v29 }
0x1176   :  { %v1189_v44 = vpop.permute.xlu0 %1188 }
0x1177   :  { %v1191_v45 = vmul.f32 %v4569_v43, %v1189_v44  ;;  %v4357_v44 = vpack.c.bf16 %v1435_v24, %v1434_v40 }
0x1179   :  { %1193 = vrot.lane.b32.xlu1 %v1191_v45, %s5044_s5 }
0x11eb   :  { %v1194_v48 = vpop.permute.xlu1 %1193 }
0x11ec   :  { %v1196_v49 = vadd.f32 %v1194_v48, %v1186_v46 }
0x11ee   :  { %4570 = vtanh.f32 %v1196_v49  ;;  %v1295_v6 = vrot.slane %v1196_v49, 6 }
0x11f8   :  { %v4571_v50 = vpop.eup %4570 }
0x11f9   :  { %1199 = vrot.lane.b32.xlu0 %v4571_v50, %s5044_s5 }
0x126b   :  { %v1200_v52 = vpop.permute.xlu0 %1199 }
0x126c   :  { %v5471_v54 = vmul.f32 %v4569_v43, %v1200_v52  ;;  %v1527_v43 = vld [vmem:[%s5855_s8 + $0x18] sm:$0xff] }
0x126d   :  { %v5527_v45 = vpack.c.bf16 %v1527_v43, %v1526_v42 }
0x126e   :  { %v1208_v55 = vrot.slane %v5471_v54, 2 }
0x1270   :  { %1209 = vrot.lane.b32.xlu1 %v1208_v55, %s5045_s20 }
0x12e2   :  { %v1210_v57 = vpop.permute.xlu1 %1209 }
0x12e3   :  { %4060 = vmatmul.mubr.msk.f32.vlgmr.msra.gmra.mrb[6].mxu0 %vm554_vm5, %v1210_v57 }
0x13b6   :  { %v1279_v59 = vpop.f32.mrb[6].mxu0 }
0x13b7   :  { %v1284_v60 = vrot.slane %v1279_v59, 4  ;;  %v4061_v61 = vpop.f32.mrb[7].mxu0  ;;  %v3761_v59 = vld [vmem:[#allocation13] ss:$0 sm:$0xff] }
0x13b9   :  { %v1286_v62 = vadd.f32 %v1284_v60, %v5393_v56 }
0x13bb   :  { %4572 = vtanh.f32 %v1286_v62  ;;  %v3758_v0 = vmul.f32 -1.442695, %v1286_v62 }
0x13bd   :  { %4574 = vpow2.f32 %v3758_v0 }
0x13c5   :  { %v4573_v63 = vpop.eup %4572 }
0x13c6   :  { %1299 = vrot.lane.b32.xlu0 %v4573_v63, %s5044_s5 }
0x13c7   :  { %v4575_v1 = vpop.eup %4574 }
0x13c8   :  { %v1290_v2 = vadd.f32 1.0, %v4575_v1 }
0x13ca   :  { %4576 = vrcp.f32 %v1290_v2 }
0x13d4   :  { %v4577_v3 = vpop.eup %4576 }
0x13d5   :  { %v1297_v7 = vmul.f32 %v4577_v3, %v1295_v6 }
0x1438   :  { %v1300_v4 = vpop.permute.xlu0 %1299 }
0x1439   :  { %v1302_v5 = vmul.f32 %v4577_v3, %v1300_v4 }
0x143b   :  { %1304 = vrot.lane.b32.xlu1 %v1302_v5, %s5044_s5 }
0x14ad   :  { %v1305_v8 = vpop.permute.xlu1 %1304 }
0x14ae   :  { %v1307_v58 = vadd.f32 %v1305_v8, %v1297_v7 }
0x14b0   :  { %4578 = vtanh.f32 %v1307_v58 }
0x14ba   :  { %v4579_v9 = vpop.eup %4578 }
0x14bb   :  { %1310 = vrot.lane.b32.xlu0 %v4579_v9, %s5044_s5 }
0x152d   :  { %v1311_v11 = vpop.permute.xlu0 %1310 }
0x152e   :  { %v1313_v12 = vmul.f32 %v4577_v3, %v1311_v11 }
0x1530   :  { %v1319_v13 = vrot.slane %v1313_v12, 4 }
0x1532   :  { %1320 = vrot.lane.b32.xlu1 %v1319_v13, %s5045_s20 }
0x15a4   :  { %v1321_v14 = vpop.permute.xlu1 %1320 }
0x15a5   :  { %4071 = vmatmul.mubr.msk.f32.vlgmr.msra.gmra.mrb[10].mxu1 %vm554_vm5, %v1321_v14 }
0x15a6   :  { %4092 = vmatprep.mubr.msk.f32.mxu1 %vm5042_vm2, %v5043_v32 }
0x1678   :  { %v1390_v15 = vpop.f32.mrb[10].mxu1 }
0x1679   :  { %v1395_v16 = vrot.slane %v1390_v15, 2  ;;  %v4072_v17 = vpop.f32.mrb[11].mxu1 }
0x167b   :  { %v1397_v18 = vadd.f32 %v1395_v16, %v5393_v56  ;;  %v1406_v56 = vrot.slane %v1307_v58, 6 }
0x167d   :  { %4580 = vtanh.f32 %v1397_v18  ;;  %v3760_v20 = vmul.f32 -1.442695, %v1397_v18 }
0x167f   :  { %4582 = vpow2.f32 %v3760_v20 }
0x1687   :  { %v4581_v19 = vpop.eup %4580 }
0x1688   :  { %1410 = vrot.lane.b32.xlu0 %v4581_v19, %s5044_s5 }
0x1689   :  { %v4583_v21 = vpop.eup %4582 }
0x168a   :  { %v1401_v22 = vadd.f32 1.0, %v4583_v21 }
0x168c   :  { %4584 = vrcp.f32 %v1401_v22 }
0x1696   :  { %v4585_v23 = vpop.eup %4584 }
0x1697   :  { %v1408_v28 = vmul.f32 %v4585_v23, %v1406_v56 }
0x16fa   :  { %v1411_v25 = vpop.permute.xlu0 %1410 }
0x16fb   :  { %v1413_v26 = vmul.f32 %v4585_v23, %v1411_v25 }
0x16fd   :  { %1415 = vrot.lane.b32.xlu1 %v1413_v26, %s5044_s5 }
0x1701   :  { %763 = vrot.lane.b32.xlu1 %v5414_v30, %s5045_s20 }
0x1705   :  { %987 = vrot.lane.b32.xlu1 %v5444_v10, %s5045_s20  ;;  %v1432_v10 = vld [vmem:[%s5854_s7] sm:$0xff] }
0x1706   :  { %v4353_v38 = vpack.c.bf16 %v1433_v37, %v1432_v10 }
0x1708   :  { %4354 = vmatprep.subr.bf16.mxu0 %v4353_v38 }
0x1709   :  { %1315 = vrot.lane.b32.xlu1 %v1313_v12, %s5045_s20  ;;  %4356 = vmatpush3.bf16.msra.mxu0 %v4353_v38 }
0x170a   :  { %4358 = vmatprep.subr.bf16.mxu0 %v4357_v44 }
0x170d   :  { %4360 = vmatpush3.bf16.msra.mxu0 %v4357_v44 }
0x170e   :  { %4367 = vmatprep.subr.bf16.mxu0 %v5041_v27 }
0x176f   :  { %v1416_v31 = vpop.permute.xlu1 %1415 }
0x1770   :  { %v1418_v33 = vadd.f32 %v1416_v31, %v1408_v28 }
0x1772   :  { %4586 = vtanh.f32 %v1418_v33 }
0x1773   :  { %v764_v34 = vpop.permute.xlu1 %763 }
0x1774   :  { %767 = vst.msk [vmem:[#allocation2] sm:$0xc] %vm766_vm6, %v764_v34 }
0x1777   :  { %v988_v35 = vpop.permute.xlu1 %987 }
0x1778   :  { %991 = vst.msk [vmem:[#allocation2] sm:$0xc0] %vm990_vm7, %v988_v35 }
0x177b   :  { %v1316_v30 = vpop.permute.xlu1 %1315 }
0x177c   :  { %v4587_v36 = vpop.eup %4586  ;;  %1318 = vst.msk [vmem:[#allocation2 + $0x8] sm:$0x30] %vm878_vm8, %v1316_v30 }
0x177d   :  { %1421 = vrot.lane.b32.xlu0 %v4587_v36, %s5044_s5 }
0x1781   :  { %875 = vrot.lane.b32.xlu0 %v5429_v53, %s5045_s20  ;;  %v1525_v53 = vld [vmem:[%s5855_s8 + $0x8] sm:$0xff] }
0x1782   :  { %v5515_v41 = vpack.c.bf16 %v1525_v53, %v1524_v39 }
0x1784   :  { %4363 = vmatpush3.bf16.msra.mxu1 %v5515_v41 }
0x1785   :  { %1204 = vrot.lane.b32.xlu0 %v5471_v54, %s5045_s20  ;;  %4364 = vmatprep.subr.bf16.mxu1 %v5041_v27 }
0x1788   :  { %4366 = vmatpush3.bf16.msra.mxu1 %v5527_v45 }
0x1789   :  { %4373 = vmatprep.subr.bf16.mxu1 %v5041_v27 }
0x178b   :  { %4093 = vmatmul.mubr.f32.vlgmr.msra.gmra.mrb[12].mxu1 %v5043_v32 }
0x178c   :  { %4375 = vmatpush3.bf16.msra.mxu1 %v5515_v41  ;;  %4114 = vmatprep.mubr.msk.f32.mxu1 %vm5042_vm2, %v5043_v32 }
0x178d   :  { %4376 = vmatprep.subr.bf16.mxu1 %v5041_v27 }
0x1790   :  { %4378 = vmatpush3.bf16.msra.mxu1 %v5527_v45 }
0x1791   :  { %4385 = vmatprep.subr.bf16.mxu1 %v5041_v27 }
0x17ef   :  { %v1422_v29 = vpop.permute.xlu0 %1421 }
0x17f0   :  { %v1424_v46 = vmul.f32 %v4585_v23, %v1422_v29 }
0x17f2   :  { %1426 = vrot.lane.b32.xlu0 %v1424_v46, %s5045_s20 }
0x17f3   :  { %v876_v48 = vpop.permute.xlu0 %875 }
0x17f4   :  { %879 = vst.msk [vmem:[#allocation2] sm:$0x30] %vm878_vm8, %v876_v48 }
0x17f7   :  { %v1205_v49 = vpop.permute.xlu0 %1204 }
0x17f8   :  { %1207 = vst.msk [vmem:[#allocation2 + $0x8] sm:$0xc] %vm766_vm6, %v1205_v49 }
0x17fb   :  { %v1430_v50 = vld [vmem:[#allocation2] sm:$0xff] }
0x17fc   :  { %4081 = vmatprep.mubr.msk.f32.mxu0 %vm554_vm5, %v1430_v50 }
0x185e   :  { %v1594_v55 = vpop.f32.mrb[12].mxu1 }
0x185f   :  { %v4094_v57 = vpop.f32.mrb[13].mxu1 }
0x1864   :  { %v1427_v52 = vpop.permute.xlu0 %1426 }
0x1865   :  { %1429 = vst.msk [vmem:[#allocation2 + $0x8] sm:$0xc0] %vm990_vm7, %v1427_v52 }
0x186c   :  { %v1431_v54 = vld [vmem:[#allocation2 + $0x8] sm:$0xff] }
0x186d   :  { %4082 = vmatmul.mubr.msk.f32.vlgmr.msra.gmra.mrb[8].mxu0 %vm554_vm5, %v1431_v54 }
0x186e   :  { %4369 = vmatpush3.bf16.msra.mxu0 %v5515_v41  ;;  %4103 = vmatprep.mubr.msk.f32.mxu0 %vm5042_vm2, %v5043_v32 }
0x186f   :  { %4370 = vmatprep.subr.bf16.mxu0 %v5041_v27 }
0x1872   :  { %4372 = vmatpush3.bf16.msra.mxu0 %v5527_v45 }
0x1873   :  { %4379 = vmatprep.subr.bf16.mxu0 %v5041_v27 }
0x1940   :  { %v4083_v60 = vpop.f32.mrb[8].mxu0 }
0x1941   :  { %v5552_v61 = vadd.f32 %v4083_v60, %v3761_v59  ;;  %v1515_v62 = vpop.f32.mrb[9].mxu0 }
0x1942   :  { %v5554_v63 = vadd.f32 %v3761_v59, %v1515_v62 }
0x1944   :  { %v1598_v0 = vadd.f32 %v1594_v55, %v5554_v63 }
0x1946   :  { %4588 = vtanh.f32 %v1598_v0  ;;  %v3764_v2 = vmul.f32 -1.442695, %v1598_v0 }
0x1948   :  { %4590 = vpow2.f32 %v3764_v2 }
0x1950   :  { %v4589_v1 = vpop.eup %4588 }
0x1951   :  { %1608 = vrot.lane.b32.xlu1 %v4589_v1, %s5044_s5 }
0x1952   :  { %v4591_v3 = vpop.eup %4590 }
0x1953   :  { %v1602_v4 = vadd.f32 1.0, %v4591_v3 }
0x1955   :  { %4592 = vrcp.f32 %v1602_v4 }
0x195f   :  { %v4593_v5 = vpop.eup %4592 }
0x1960   :  { %v1606_v8 = vmul.f32 0.0, %v4593_v5 }
0x19c3   :  { %v1609_v6 = vpop.permute.xlu1 %1608 }
0x19c4   :  { %v1611_v7 = vmul.f32 %v4593_v5, %v1609_v6 }
0x19c6   :  { %1613 = vrot.lane.b32.xlu0 %v1611_v7, %s5044_s5 }
0x1a38   :  { %v1614_v58 = vpop.permute.xlu0 %1613 }
0x1a39   :  { %v1616_v9 = vadd.f32 %v1614_v58, %v1606_v8 }
0x1a3b   :  { %4594 = vtanh.f32 %v1616_v9  ;;  %v1712_v56 = vrot.slane %v1616_v9, 6 }
0x1a45   :  { %v4595_v11 = vpop.eup %4594 }
0x1a46   :  { %1619 = vrot.lane.b32.xlu1 %v4595_v11, %s5044_s5 }
0x1ab8   :  { %v1620_v12 = vpop.permute.xlu1 %1619 }
0x1ab9   :  { %v1622_v13 = vmul.f32 %v4593_v5, %v1620_v12 }
0x1abb   :  { %1624 = vrot.lane.b32.xlu0 %v1622_v13, %s5045_s20 }
0x1b2d   :  { %v1625_v14 = vpop.permute.xlu0 %1624 }
0x1b2e   :  { %1627 = vst.msk [vmem:[#allocation3] sm:$0x3] %vm657_vm4, %v1625_v14  ;;  %4104 = vmatmul.mubr.msk.f32.vlgmr.msra.gmra.mrb[10].mxu0 %vm554_vm5, %v1625_v14 }
0x1b2f   :  { %4381 = vmatpush3.bf16.msra.mxu0 %v5515_v41  ;;  %4125 = vmatprep.mubr.msk.f32.mxu0 %vm5042_vm2, %v5043_v32 }
0x1b30   :  { %4382 = vmatprep.subr.bf16.mxu0 %v5041_v27 }
0x1b33   :  { %4384 = vmatpush3.bf16.msra.mxu0 %v5527_v45 }
0x1b34   :  { %4391 = vmatprep.subr.bf16.mxu0 %v5041_v27 }
0x1c01   :  { %v1696_v15 = vpop.f32.mrb[10].mxu0 }
0x1c02   :  { %v1701_v16 = vrot.slane %v1696_v15, 6  ;;  %v4105_v17 = vpop.f32.mrb[11].mxu0 }
0x1c04   :  { %v1703_v18 = vadd.f32 %v1701_v16, %v5554_v63 }
0x1c06   :  { %4596 = vtanh.f32 %v1703_v18  ;;  %v3766_v20 = vmul.f32 -1.442695, %v1703_v18 }
0x1c08   :  { %4598 = vpow2.f32 %v3766_v20 }
0x1c10   :  { %v4597_v19 = vpop.eup %4596 }
0x1c11   :  { %1716 = vrot.lane.b32.xlu1 %v4597_v19, %s5044_s5 }
0x1c12   :  { %v4599_v21 = vpop.eup %4598 }
0x1c13   :  { %v1707_v22 = vadd.f32 1.0, %v4599_v21 }
0x1c15   :  { %4600 = vrcp.f32 %v1707_v22 }
0x1c1f   :  { %v4601_v23 = vpop.eup %4600 }
0x1c20   :  { %v1714_v28 = vmul.f32 %v4601_v23, %v1712_v56 }
0x1c83   :  { %v1717_v25 = vpop.permute.xlu1 %1716 }
0x1c84   :  { %v1719_v26 = vmul.f32 %v4601_v23, %v1717_v25 }
0x1c86   :  { %1721 = vrot.lane.b32.xlu0 %v1719_v26, %s5044_s5 }
0x1cf8   :  { %v1722_v31 = vpop.permute.xlu0 %1721 }
0x1cf9   :  { %v1724_v33 = vadd.f32 %v1722_v31, %v1714_v28 }
0x1cfb   :  { %4602 = vtanh.f32 %v1724_v33  ;;  %v1823_v48 = vrot.slane %v1724_v33, 6 }
0x1d05   :  { %v4603_v34 = vpop.eup %4602 }
0x1d06   :  { %1727 = vrot.lane.b32.xlu1 %v4603_v34, %s5044_s5 }
0x1d78   :  { %v1728_v35 = vpop.permute.xlu1 %1727 }
0x1d79   :  { %v5573_v30 = vmul.f32 %v4601_v23, %v1728_v35 }
0x1d7b   :  { %v1736_v36 = vrot.slane %v5573_v30, 2 }
0x1d7d   :  { %1737 = vrot.lane.b32.xlu0 %v1736_v36, %s5045_s20 }
0x1def   :  { %v1738_v10 = vpop.permute.xlu0 %1737 }
0x1df0   :  { %4115 = vmatmul.mubr.msk.f32.vlgmr.msra.gmra.mrb[14].mxu1 %vm554_vm5, %v1738_v10 }
0x1df1   :  { %4387 = vmatpush3.bf16.msra.mxu1 %v5515_v41  ;;  %4136 = vmatprep.mubr.msk.f32.mxu1 %vm5042_vm2, %v5043_v32 }
0x1df2   :  { %4388 = vmatprep.subr.bf16.mxu1 %v5041_v27 }
0x1df5   :  { %4390 = vmatpush3.bf16.msra.mxu1 %v5527_v45 }
0x1df6   :  { %4397 = vmatprep.subr.bf16.mxu1 %v5041_v27 }
0x1ec3   :  { %v1807_v37 = vpop.f32.mrb[14].mxu1 }
0x1ec4   :  { %v1812_v38 = vrot.slane %v1807_v37, 4  ;;  %v4116_v39 = vpop.f32.mrb[15].mxu1 }
0x1ec6   :  { %v1814_v53 = vadd.f32 %v1812_v38, %v5554_v63 }
0x1ec8   :  { %4604 = vtanh.f32 %v1814_v53  ;;  %v3768_v24 = vmul.f32 -1.442695, %v1814_v53 }
0x1eca   :  { %4606 = vpow2.f32 %v3768_v24 }
0x1ed2   :  { %v4605_v40 = vpop.eup %4604 }
0x1ed3   :  { %1827 = vrot.lane.b32.xlu1 %v4605_v40, %s5044_s5 }
0x1ed4   :  { %v4607_v42 = vpop.eup %4606 }
0x1ed5   :  { %v1818_v43 = vadd.f32 1.0, %v4607_v42 }
0x1ed7   :  { %4608 = vrcp.f32 %v1818_v43 }
0x1ee1   :  { %v4609_v44 = vpop.eup %4608 }
0x1ee2   :  { %v1825_v49 = vmul.f32 %v4609_v44, %v1823_v48 }
0x1f45   :  { %v1828_v29 = vpop.permute.xlu1 %1827 }
0x1f46   :  { %v1830_v46 = vmul.f32 %v4609_v44, %v1828_v29 }
0x1f48   :  { %1832 = vrot.lane.b32.xlu0 %v1830_v46, %s5044_s5 }
0x1fba   :  { %v1833_v50 = vpop.permute.xlu0 %1832 }
0x1fbb   :  { %v1835_v52 = vadd.f32 %v1833_v50, %v1825_v49 }
0x1fbd   :  { %4610 = vtanh.f32 %v1835_v52  ;;  %v1934_v9 = vrot.slane %v1835_v52, 6 }
0x1fc7   :  { %v4611_v54 = vpop.eup %4610 }
0x1fc8   :  { %1838 = vrot.lane.b32.xlu1 %v4611_v54, %s5044_s5 }
0x203a   :  { %v1839_v55 = vpop.permute.xlu1 %1838 }
0x203b   :  { %v5588_v57 = vmul.f32 %v4609_v44, %v1839_v55 }
0x203d   :  { %v1847_v59 = vrot.slane %v5588_v57, 4 }
0x203f   :  { %1848 = vrot.lane.b32.xlu0 %v1847_v59, %s5045_s20 }
0x20b1   :  { %v1849_v60 = vpop.permute.xlu0 %1848 }
0x20b2   :  { %4126 = vmatmul.mubr.msk.f32.vlgmr.msra.gmra.mrb[12].mxu0 %vm554_vm5, %v1849_v60 }
0x20b3   :  { %4393 = vmatpush3.bf16.msra.mxu0 %v5515_v41  ;;  %4147 = vmatprep.mubr.msk.f32.mxu0 %vm5042_vm2, %v5043_v32 }
0x20b4   :  { %4394 = vmatprep.subr.bf16.mxu0 %v5041_v27 }
0x20b7   :  { %4396 = vmatpush3.bf16.msra.mxu0 %v5527_v45 }
0x20b8   :  { %4403 = vmatprep.subr.bf16.mxu0 %v5041_v27 }
0x2185   :  { %v1918_v62 = vpop.f32.mrb[12].mxu0 }
0x2186   :  { %v1923_v0 = vrot.slane %v1918_v62, 2  ;;  %v4127_v1 = vpop.f32.mrb[13].mxu0 }
0x2188   :  { %v1925_v2 = vadd.f32 %v1923_v0, %v5554_v63 }
0x218a   :  { %4612 = vtanh.f32 %v1925_v2  ;;  %v3770_v4 = vmul.f32 -1.442695, %v1925_v2 }
0x218c   :  { %4614 = vpow2.f32 %v3770_v4 }
0x2194   :  { %v4613_v3 = vpop.eup %4612 }
0x2195   :  { %1938 = vrot.lane.b32.xlu1 %v4613_v3, %s5044_s5 }
0x2196   :  { %v4615_v5 = vpop.eup %4614 }
0x2197   :  { %v1929_v6 = vadd.f32 1.0, %v4615_v5 }
0x2199   :  { %4616 = vrcp.f32 %v1929_v6 }
0x21a3   :  { %v4617_v7 = vpop.eup %4616 }
0x21a4   :  { %v1936_v11 = vmul.f32 %v4617_v7, %v1934_v9 }
0x2207   :  { %v1939_v8 = vpop.permute.xlu1 %1938 }
0x2208   :  { %v1941_v58 = vmul.f32 %v4617_v7, %v1939_v8 }
0x220a   :  { %1943 = vrot.lane.b32.xlu0 %v1941_v58, %s5044_s5 }
0x227c   :  { %v1944_v12 = vpop.permute.xlu0 %1943 }
0x227d   :  { %v1946_v13 = vadd.f32 %v1944_v12, %v1936_v11 }
0x227f   :  { %4618 = vtanh.f32 %v1946_v13  ;;  %v2042_v31 = vrot.slane %v1946_v13, 6 }
0x2289   :  { %v4619_v63 = vpop.eup %4618 }
0x228a   :  { %1949 = vrot.lane.b32.xlu1 %v4619_v63, %s5044_s5 }
0x22fc   :  { %v1950_v14 = vpop.permute.xlu1 %1949 }
0x22fd   :  { %v5603_v15 = vmul.f32 %v4617_v7, %v1950_v14 }
0x22ff   :  { %v1958_v16 = vrot.slane %v5603_v15, 6 }
0x2301   :  { %1959 = vrot.lane.b32.xlu0 %v1958_v16, %s5045_s20 }
0x2373   :  { %v1960_v17 = vpop.permute.xlu0 %1959 }
0x2374   :  { %4137 = vmatmul.mubr.msk.f32.vlgmr.msra.gmra.mrb[16].mxu1 %vm554_vm5, %v1960_v17 }
0x2375   :  { %4399 = vmatpush3.bf16.msra.mxu1 %v5515_v41  ;;  %4158 = vmatprep.mubr.msk.f32.mxu1 %vm5042_vm2, %v5043_v32 }
0x2376   :  { %4400 = vmatprep.subr.bf16.mxu1 %v5041_v27 }
0x2379   :  { %4402 = vmatpush3.bf16.msra.mxu1 %v5527_v45 }
0x2447   :  { %v2029_v18 = vpop.f32.mrb[16].mxu1 }
0x2448   :  { %v2033_v19 = vadd.f32 %v2029_v18, %v5552_v61  ;;  %v4138_v20 = vpop.f32.mrb[17].mxu1 }
0x244a   :  { %4620 = vtanh.f32 %v2033_v19  ;;  %v3772_v22 = vmul.f32 -1.442695, %v2033_v19 }
0x244c   :  { %4622 = vpow2.f32 %v3772_v22 }
0x2454   :  { %v4621_v21 = vpop.eup %4620 }
0x2455   :  { %2046 = vrot.lane.b32.xlu1 %v4621_v21, %s5044_s5 }
0x2456   :  { %v4623_v23 = vpop.eup %4622 }
0x2457   :  { %v2037_v25 = vadd.f32 1.0, %v4623_v23 }
0x2459   :  { %4624 = vrcp.f32 %v2037_v25 }
0x2463   :  { %v4625_v26 = vpop.eup %4624 }
0x2464   :  { %v2044_v33 = vmul.f32 %v4625_v26, %v2042_v31 }
0x24c7   :  { %v2047_v56 = vpop.permute.xlu1 %2046 }
0x24c8   :  { %v2049_v28 = vmul.f32 %v4625_v26, %v2047_v56 }
0x24ca   :  { %2051 = vrot.lane.b32.xlu0 %v2049_v28, %s5044_s5 }
0x253c   :  { %v2052_v34 = vpop.permute.xlu0 %2051 }
0x253d   :  { %v2054_v35 = vadd.f32 %v2052_v34, %v2044_v33 }
0x253f   :  { %4626 = vtanh.f32 %v2054_v35 }
0x2549   :  { %v4627_v36 = vpop.eup %4626 }
0x254a   :  { %2057 = vrot.lane.b32.xlu1 %v4627_v36, %s5044_s5 }
0x25bc   :  { %v2058_v10 = vpop.permute.xlu1 %2057 }
0x25bd   :  { %v2060_v37 = vmul.f32 %v4625_v26, %v2058_v10 }
0x25bf   :  { %2062 = vrot.lane.b32.xlu0 %v2060_v37, %s5045_s20 }
0x2631   :  { %v2063_v38 = vpop.permute.xlu0 %2062 }
0x2632   :  { %2065 = vst.msk [vmem:[#allocation3 + $0x8] sm:$0x3] %vm657_vm4, %v2063_v38  ;;  %4148 = vmatmul.mubr.msk.f32.vlgmr.msra.gmra.mrb[14].mxu0 %vm554_vm5, %v2063_v38 }
0x2633   :  { %4405 = vmatpush3.bf16.msra.mxu0 %v5515_v41  ;;  %4169 = vmatprep.mubr.msk.f32.mxu0 %vm5042_vm2, %v5043_v32 }
0x2634   :  { %4406 = vmatprep.subr.bf16.mxu0 %v5041_v27 }
0x2637   :  { %4408 = vmatpush3.bf16.msra.mxu0 %v5527_v45  ;;  %v2150_v45 = vrot.slane %v2054_v35, 6 }
0x2638   :  { %4417 = vmatprep.subr.bf16.mxu0 %v5041_v27 }
0x2705   :  { %v2134_v39 = vpop.f32.mrb[14].mxu0 }
0x2706   :  { %v2139_v53 = vrot.slane %v2134_v39, 6  ;;  %v4149_v40 = vpop.f32.mrb[15].mxu0 }
0x2708   :  { %v2141_v24 = vadd.f32 %v2139_v53, %v5552_v61 }
0x270a   :  { %4628 = vtanh.f32 %v2141_v24  ;;  %v3774_v43 = vmul.f32 -1.442695, %v2141_v24  ;;  %v2490_v24 = vld [vmem:[#allocation16] sm:$0xff] }
0x270c   :  { %4630 = vpow2.f32 %v3774_v43  ;;  %v2400_v43 = vld [vmem:[#allocation15 + $0x10] sm:$0xff] }
0x2714   :  { %v4629_v42 = vpop.eup %4628 }
0x2715   :  { %2154 = vrot.lane.b32.xlu1 %v4629_v42, %s5044_s5  ;;  %v2491_v42 = vld [vmem:[#allocation16 + $0x8] sm:$0xff] }
0x2716   :  { %v4631_v41 = vpop.eup %4630 }
0x2717   :  { %v2145_v44 = vadd.f32 1.0, %v4631_v41  ;;  %v5659_v41 = vpack.c.bf16 %v2491_v42, %v2490_v24 }
0x2719   :  { %4632 = vrcp.f32 %v2145_v44  ;;  %v2401_v44 = vld [vmem:[#allocation15 + $0x18] sm:$0xff] }
0x2723   :  { %v4633_v29 = vpop.eup %4632 }
0x2724   :  { %v2152_v49 = vmul.f32 %v4633_v29, %v2150_v45 }
0x2787   :  { %v2155_v46 = vpop.permute.xlu1 %2154 }
0x2788   :  { %v2157_v48 = vmul.f32 %v4633_v29, %v2155_v46  ;;  %v2493_v46 = vld [vmem:[#allocation16 + $0x18] sm:$0xff] }
0x278a   :  { %2159 = vrot.lane.b32.xlu0 %v2157_v48, %s5044_s5  ;;  %v4413_v48 = vpack.c.bf16 %v2401_v44, %v2400_v43 }
0x27fc   :  { %v2160_v50 = vpop.permute.xlu0 %2159 }
0x27fd   :  { %v2162_v52 = vadd.f32 %v2160_v50, %v2152_v49 }
0x27ff   :  { %4634 = vtanh.f32 %v2162_v52  ;;  %v2261_v11 = vrot.slane %v2162_v52, 6 }
0x2809   :  { %v4635_v54 = vpop.eup %4634 }
0x280a   :  { %2165 = vrot.lane.b32.xlu1 %v4635_v54, %s5044_s5 }
0x287c   :  { %v2166_v55 = vpop.permute.xlu1 %2165 }
0x287d   :  { %v5630_v59 = vmul.f32 %v4633_v29, %v2166_v55  ;;  %v2492_v29 = vld [vmem:[#allocation16 + $0x10] sm:$0xff] }
0x287f   :  { %v2174_v60 = vrot.slane %v5630_v59, 2 }
0x2881   :  { %2175 = vrot.lane.b32.xlu0 %v2174_v60, %s5045_s20 }
0x28f3   :  { %v2176_v62 = vpop.permute.xlu0 %2175 }
0x28f4   :  { %4159 = vmatmul.mubr.msk.f32.vlgmr.msra.gmra.mrb[18].mxu1 %vm554_vm5, %v2176_v62 }
0x29c7   :  { %v2245_v0 = vpop.f32.mrb[18].mxu1 }
0x29c8   :  { %v2250_v1 = vrot.slane %v2245_v0, 4  ;;  %v4160_v2 = vpop.f32.mrb[19].mxu1  ;;  %v3779_v0 = vld [vmem:[#allocation18] ss:$0 sm:$0xff] }
0x29ca   :  { %v2252_v3 = vadd.f32 %v2250_v1, %v5552_v61 }
0x29cc   :  { %4636 = vtanh.f32 %v2252_v3  ;;  %v3776_v5 = vmul.f32 -1.442695, %v2252_v3 }
0x29ce   :  { %4638 = vpow2.f32 %v3776_v5 }
0x29d6   :  { %v4637_v4 = vpop.eup %4636 }
0x29d7   :  { %2265 = vrot.lane.b32.xlu1 %v4637_v4, %s5044_s5 }
0x29d8   :  { %v4639_v6 = vpop.eup %4638 }
0x29d9   :  { %v2256_v7 = vadd.f32 1.0, %v4639_v6 }
0x29db   :  { %4640 = vrcp.f32 %v2256_v7 }
0x29e5   :  { %v4641_v8 = vpop.eup %4640 }
0x29e6   :  { %v2263_v12 = vmul.f32 %v4641_v8, %v2261_v11 }
0x2a49   :  { %v2266_v58 = vpop.permute.xlu1 %2265 }
0x2a4a   :  { %v2268_v9 = vmul.f32 %v4641_v8, %v2266_v58 }
0x2a4c   :  { %2270 = vrot.lane.b32.xlu0 %v2268_v9, %s5044_s5 }
0x2abe   :  { %v2271_v13 = vpop.permute.xlu0 %2270 }
0x2abf   :  { %v2273_v63 = vadd.f32 %v2271_v13, %v2263_v12 }
0x2ac1   :  { %4642 = vtanh.f32 %v2273_v63 }
0x2acb   :  { %v4643_v14 = vpop.eup %4642 }
0x2acc   :  { %2276 = vrot.lane.b32.xlu1 %v4643_v14, %s5044_s5 }
0x2b3e   :  { %v2277_v16 = vpop.permute.xlu1 %2276 }
0x2b3f   :  { %v2279_v17 = vmul.f32 %v4641_v8, %v2277_v16 }
0x2b41   :  { %v2285_v18 = vrot.slane %v2279_v17, 4 }
0x2b43   :  { %2286 = vrot.lane.b32.xlu0 %v2285_v18, %s5045_s20 }
0x2bb5   :  { %v2287_v19 = vpop.permute.xlu0 %2286 }
0x2bb6   :  { %4170 = vmatmul.mubr.msk.f32.vlgmr.msra.gmra.mrb[16].mxu0 %vm554_vm5, %v2287_v19 }
0x2bb7   :  { %4191 = vmatprep.mubr.msk.f32.mxu0 %vm5042_vm2, %v5043_v32  ;;  %4419 = vmatpush3.bf16.msra.mxu0 %v5659_v41 }
0x2bb8   :  { %4420 = vmatprep.subr.bf16.mxu0 %v5041_v27 }
0x2c89   :  { %v2356_v20 = vpop.f32.mrb[16].mxu0 }
0x2c8a   :  { %v2361_v21 = vrot.slane %v2356_v20, 2  ;;  %v4171_v22 = vpop.f32.mrb[17].mxu0 }
0x2c8c   :  { %v2363_v23 = vadd.f32 %v2361_v21, %v5552_v61  ;;  %v2372_v61 = vrot.slane %v2273_v63, 6 }
0x2c8e   :  { %4644 = vtanh.f32 %v2363_v23  ;;  %v3778_v26 = vmul.f32 -1.442695, %v2363_v23 }
0x2c90   :  { %4646 = vpow2.f32 %v3778_v26 }
0x2c98   :  { %v4645_v25 = vpop.eup %4644 }
0x2c99   :  { %2376 = vrot.lane.b32.xlu1 %v4645_v25, %s5044_s5 }
0x2c9a   :  { %v4647_v56 = vpop.eup %4646 }
0x2c9b   :  { %v2367_v28 = vadd.f32 1.0, %v4647_v56 }
0x2c9d   :  { %4648 = vrcp.f32 %v2367_v28 }
0x2ca7   :  { %v4649_v31 = vpop.eup %4648 }
0x2ca8   :  { %v2374_v35 = vmul.f32 %v4649_v31, %v2372_v61 }
0x2d0b   :  { %v2377_v33 = vpop.permute.xlu1 %2376 }
0x2d0c   :  { %v2379_v34 = vmul.f32 %v4649_v31, %v2377_v33 }
0x2d0e   :  { %2381 = vrot.lane.b32.xlu0 %v2379_v34, %s5044_s5 }
0x2d12   :  { %1732 = vrot.lane.b32.xlu0 %v5573_v30, %s5045_s20  ;;  %v2398_v30 = vld [vmem:[#allocation15] sm:$0xff] }
0x2d16   :  { %1954 = vrot.lane.b32.xlu0 %v5603_v15, %s5045_s20  ;;  %v2399_v15 = vld [vmem:[#allocation15 + $0x8] sm:$0xff] }
0x2d17   :  { %v4409_v40 = vpack.c.bf16 %v2399_v15, %v2398_v30 }
0x2d19   :  { %4410 = vmatprep.subr.bf16.mxu1 %v4409_v40 }
0x2d1a   :  { %2281 = vrot.lane.b32.xlu0 %v2279_v17, %s5045_s20  ;;  %4412 = vmatpush3.bf16.msra.mxu1 %v4409_v40 }
0x2d1b   :  { %4414 = vmatprep.subr.bf16.mxu1 %v4413_v48 }
0x2d1e   :  { %4416 = vmatpush3.bf16.msra.mxu1 %v4413_v48 }
0x2d1f   :  { %4423 = vmatprep.subr.bf16.mxu1 %v5041_v27 }
0x2d80   :  { %v2382_v36 = vpop.permute.xlu0 %2381 }
0x2d81   :  { %v2384_v10 = vadd.f32 %v2382_v36, %v2374_v35 }
0x2d83   :  { %4650 = vtanh.f32 %v2384_v10 }
0x2d84   :  { %v1733_v37 = vpop.permute.xlu0 %1732 }
0x2d85   :  { %1735 = vst.msk [vmem:[#allocation3] sm:$0xc] %vm766_vm6, %v1733_v37 }
0x2d88   :  { %v1955_v38 = vpop.permute.xlu0 %1954 }
0x2d89   :  { %1957 = vst.msk [vmem:[#allocation3] sm:$0xc0] %vm990_vm7, %v1955_v38 }
0x2d8c   :  { %v2282_v39 = vpop.permute.xlu0 %2281 }
0x2d8d   :  { %v4651_v53 = vpop.eup %4650  ;;  %2284 = vst.msk [vmem:[#allocation3 + $0x8] sm:$0x30] %vm878_vm8, %v2282_v39 }
0x2d8e   :  { %2387 = vrot.lane.b32.xlu1 %v4651_v53, %s5044_s5 }
0x2d92   :  { %1843 = vrot.lane.b32.xlu1 %v5588_v57, %s5045_s20  ;;  %v5662_v57 = vpack.c.bf16 %v2493_v46, %v2492_v29 }
0x2d94   :  { %4422 = vmatpush3.bf16.msra.mxu0 %v5662_v57 }
0x2d95   :  { %4429 = vmatprep.subr.bf16.mxu0 %v5041_v27 }
0x2d96   :  { %2170 = vrot.lane.b32.xlu1 %v5630_v59, %s5045_s20 }
0x2d97   :  { %4192 = vmatmul.mubr.f32.vlgmr.msra.gmra.mrb[18].mxu0 %v5043_v32 }
0x2d98   :  { %4431 = vmatpush3.bf16.msra.mxu0 %v5659_v41  ;;  %4213 = vmatprep.mubr.msk.f32.mxu0 %vm5042_vm2, %v5043_v32 }
0x2d99   :  { %4432 = vmatprep.subr.bf16.mxu0 %v5041_v27 }
0x2d9c   :  { %4434 = vmatpush3.bf16.msra.mxu0 %v5662_v57 }
0x2d9d   :  { %4441 = vmatprep.subr.bf16.mxu0 %v5041_v27 }
0x2e00   :  { %v2388_v45 = vpop.permute.xlu1 %2387 }
0x2e01   :  { %v2390_v49 = vmul.f32 %v4649_v31, %v2388_v45 }
0x2e03   :  { %2392 = vrot.lane.b32.xlu1 %v2390_v49, %s5045_s20 }
0x2e04   :  { %v1844_v50 = vpop.permute.xlu1 %1843 }
0x2e05   :  { %1846 = vst.msk [vmem:[#allocation3] sm:$0x30] %vm878_vm8, %v1844_v50 }
0x2e08   :  { %v2171_v52 = vpop.permute.xlu1 %2170 }
0x2e09   :  { %2173 = vst.msk [vmem:[#allocation3 + $0x8] sm:$0xc] %vm766_vm6, %v2171_v52 }
0x2e0c   :  { %v2396_v54 = vld [vmem:[#allocation3] sm:$0xff] }
0x2e0d   :  { %4180 = vmatprep.mubr.msk.f32.mxu1 %vm554_vm5, %v2396_v54 }
0x2e6a   :  { %v2560_v60 = vpop.f32.mrb[18].mxu0 }
0x2e6b   :  { %v4193_v62 = vpop.f32.mrb[19].mxu0 }
0x2e75   :  { %v2393_v55 = vpop.permute.xlu1 %2392 }
0x2e76   :  { %2395 = vst.msk [vmem:[#allocation3 + $0x8] sm:$0xc0] %vm990_vm7, %v2393_v55 }
0x2e7d   :  { %v2397_v59 = vld [vmem:[#allocation3 + $0x8] sm:$0xff] }
0x2e7e   :  { %4181 = vmatmul.mubr.msk.f32.vlgmr.msra.gmra.mrb[20].mxu1 %vm554_vm5, %v2397_v59 }
0x2e7f   :  { %4425 = vmatpush3.bf16.msra.mxu1 %v5659_v41  ;;  %4202 = vmatprep.mubr.msk.f32.mxu1 %vm5042_vm2, %v5043_v32 }
0x2e80   :  { %4426 = vmatprep.subr.bf16.mxu1 %v5041_v27 }
0x2e83   :  { %4428 = vmatpush3.bf16.msra.mxu1 %v5662_v57 }
0x2e84   :  { %4435 = vmatprep.subr.bf16.mxu1 %v5041_v27 }
0x2f51   :  { %v4182_v1 = vpop.f32.mrb[20].mxu1 }
0x2f52   :  { %v5687_v2 = vadd.f32 %v4182_v1, %v3779_v0  ;;  %v2481_v3 = vpop.f32.mrb[21].mxu1 }
0x2f53   :  { %v5689_v4 = vadd.f32 %v3779_v0, %v2481_v3 }
0x2f55   :  { %v2564_v5 = vadd.f32 %v2560_v60, %v5689_v4 }
0x2f57   :  { %4652 = vtanh.f32 %v2564_v5  ;;  %v3782_v7 = vmul.f32 -1.442695, %v2564_v5 }
0x2f59   :  { %4654 = vpow2.f32 %v3782_v7 }
0x2f61   :  { %v4653_v6 = vpop.eup %4652 }
0x2f62   :  { %2574 = vrot.lane.b32.xlu0 %v4653_v6, %s5044_s5 }
0x2f63   :  { %v4655_v8 = vpop.eup %4654 }
0x2f64   :  { %v2568_v58 = vadd.f32 1.0, %v4655_v8 }
0x2f66   :  { %4656 = vrcp.f32 %v2568_v58 }
0x2f70   :  { %v4657_v9 = vpop.eup %4656 }
0x2f71   :  { %v2572_v13 = vmul.f32 0.0, %v4657_v9 }
0x2fd4   :  { %v2575_v11 = vpop.permute.xlu0 %2574 }
0x2fd5   :  { %v2577_v12 = vmul.f32 %v4657_v9, %v2575_v11 }
0x2fd7   :  { %2579 = vrot.lane.b32.xlu1 %v2577_v12, %s5044_s5 }
0x3049   :  { %v2580_v63 = vpop.permute.xlu1 %2579 }
0x304a   :  { %v2582_v14 = vadd.f32 %v2580_v63, %v2572_v13 }
0x304c   :  { %4658 = vtanh.f32 %v2582_v14  ;;  %v2678_v61 = vrot.slane %v2582_v14, 6 }
0x3056   :  { %v4659_v16 = vpop.eup %4658 }
0x3057   :  { %2585 = vrot.lane.b32.xlu0 %v4659_v16, %s5044_s5 }
0x30c9   :  { %v2586_v17 = vpop.permute.xlu0 %2585 }
0x30ca   :  { %v2588_v18 = vmul.f32 %v4657_v9, %v2586_v17 }
0x30cc   :  { %2590 = vrot.lane.b32.xlu1 %v2588_v18, %s5045_s20 }
0x313e   :  { %v2591_v19 = vpop.permute.xlu1 %2590 }
0x313f   :  { %2593 = vst.msk [vmem:[#allocation2] sm:$0x3] %vm657_vm4, %v2591_v19  ;;  %4203 = vmatmul.mubr.msk.f32.vlgmr.msra.gmra.mrb[22].mxu1 %vm554_vm5, %v2591_v19 }
0x3140   :  { %4437 = vmatpush3.bf16.msra.mxu1 %v5659_v41  ;;  %4224 = vmatprep.mubr.msk.f32.mxu1 %vm5042_vm2, %v5043_v32 }
0x3141   :  { %4438 = vmatprep.subr.bf16.mxu1 %v5041_v27 }
0x3144   :  { %4440 = vmatpush3.bf16.msra.mxu1 %v5662_v57 }
0x3145   :  { %4447 = vmatprep.subr.bf16.mxu1 %v5041_v27 }
0x3212   :  { %v2662_v20 = vpop.f32.mrb[22].mxu1 }
0x3213   :  { %v2667_v21 = vrot.slane %v2662_v20, 6  ;;  %v4204_v22 = vpop.f32.mrb[23].mxu1 }
0x3215   :  { %v2669_v23 = vadd.f32 %v2667_v21, %v5689_v4 }
0x3217   :  { %4660 = vtanh.f32 %v2669_v23  ;;  %v3784_v26 = vmul.f32 -1.442695, %v2669_v23 }
0x3219   :  { %4662 = vpow2.f32 %v3784_v26 }
0x3221   :  { %v4661_v25 = vpop.eup %4660 }
0x3222   :  { %2682 = vrot.lane.b32.xlu0 %v4661_v25, %s5044_s5 }
0x3223   :  { %v4663_v56 = vpop.eup %4662 }
0x3224   :  { %v2673_v28 = vadd.f32 1.0, %v4663_v56 }
0x3226   :  { %4664 = vrcp.f32 %v2673_v28 }
0x3230   :  { %v4665_v31 = vpop.eup %4664 }
0x3231   :  { %v2680_v35 = vmul.f32 %v4665_v31, %v2678_v61 }
0x3294   :  { %v2683_v33 = vpop.permute.xlu0 %2682 }
0x3295   :  { %v2685_v34 = vmul.f32 %v4665_v31, %v2683_v33 }
0x3297   :  { %2687 = vrot.lane.b32.xlu1 %v2685_v34, %s5044_s5 }
0x3309   :  { %v2688_v36 = vpop.permute.xlu1 %2687 }
0x330a   :  { %v2690_v10 = vadd.f32 %v2688_v36, %v2680_v35 }
0x330c   :  { %4666 = vtanh.f32 %v2690_v10  ;;  %v2789_v50 = vrot.slane %v2690_v10, 6 }
0x3316   :  { %v4667_v37 = vpop.eup %4666 }
0x3317   :  { %2693 = vrot.lane.b32.xlu0 %v4667_v37, %s5044_s5 }
0x3389   :  { %v2694_v38 = vpop.permute.xlu0 %2693 }
0x338a   :  { %v5708_v39 = vmul.f32 %v4665_v31, %v2694_v38 }
0x338c   :  { %v2702_v53 = vrot.slane %v5708_v39, 2 }
0x338e   :  { %2703 = vrot.lane.b32.xlu1 %v2702_v53, %s5045_s20 }
0x3400   :  { %v2704_v30 = vpop.permute.xlu1 %2703 }
0x3401   :  { %4214 = vmatmul.mubr.msk.f32.vlgmr.msra.gmra.mrb[20].mxu0 %vm554_vm5, %v2704_v30 }
0x3402   :  { %4443 = vmatpush3.bf16.msra.mxu0 %v5659_v41  ;;  %4235 = vmatprep.mubr.msk.f32.mxu0 %vm5042_vm2, %v5043_v32 }
0x3403   :  { %4444 = vmatprep.subr.bf16.mxu0 %v5041_v27 }
0x3406   :  { %4446 = vmatpush3.bf16.msra.mxu0 %v5662_v57 }
0x3407   :  { %4453 = vmatprep.subr.bf16.mxu0 %v5041_v27 }
0x34d4   :  { %v2773_v15 = vpop.f32.mrb[20].mxu0 }
0x34d5   :  { %v2778_v40 = vrot.slane %v2773_v15, 4  ;;  %v4215_v24 = vpop.f32.mrb[21].mxu0 }
0x34d7   :  { %v2780_v42 = vadd.f32 %v2778_v40, %v5689_v4 }
0x34d9   :  { %4668 = vtanh.f32 %v2780_v42  ;;  %v3786_v44 = vmul.f32 -1.442695, %v2780_v42 }
0x34db   :  { %4670 = vpow2.f32 %v3786_v44 }
0x34e3   :  { %v4669_v43 = vpop.eup %4668 }
0x34e4   :  { %2793 = vrot.lane.b32.xlu0 %v4669_v43, %s5044_s5 }
0x34e5   :  { %v4671_v29 = vpop.eup %4670 }
0x34e6   :  { %v2784_v46 = vadd.f32 1.0, %v4671_v29 }
0x34e8   :  { %4672 = vrcp.f32 %v2784_v46 }
0x34f2   :  { %v4673_v48 = vpop.eup %4672 }
0x34f3   :  { %v2791_v52 = vmul.f32 %v4673_v48, %v2789_v50 }
0x3556   :  { %v2794_v45 = vpop.permute.xlu0 %2793 }
0x3557   :  { %v2796_v49 = vmul.f32 %v4673_v48, %v2794_v45 }
0x3559   :  { %2798 = vrot.lane.b32.xlu1 %v2796_v49, %s5044_s5 }
0x35cb   :  { %v2799_v54 = vpop.permute.xlu1 %2798 }
0x35cc   :  { %v2801_v55 = vadd.f32 %v2799_v54, %v2791_v52 }
0x35ce   :  { %4674 = vtanh.f32 %v2801_v55  ;;  %v2900_v14 = vrot.slane %v2801_v55, 6  ;;  %v3363_v55 = vld [vmem:[#allocation21] sm:$0xff] }
0x35d8   :  { %v4675_v59 = vpop.eup %4674 }
0x35d9   :  { %2804 = vrot.lane.b32.xlu0 %v4675_v59, %s5044_s5  ;;  %v3364_v59 = vld [vmem:[#allocation21 + $0x8] sm:$0xff] }
0x364b   :  { %v2805_v60 = vpop.permute.xlu0 %2804 }
0x364c   :  { %v5723_v62 = vmul.f32 %v4673_v48, %v2805_v60  ;;  %v4465_v60 = vpack.c.bf16 %v3364_v59, %v3363_v55  ;;  %v3804_v59 = vld [vmem:[#allocation22] ss:$0 sm:$0xff] }
0x364e   :  { %v2813_v0 = vrot.slane %v5723_v62, 4 }
0x3650   :  { %2814 = vrot.lane.b32.xlu1 %v2813_v0, %s5045_s20 }
0x36c2   :  { %v2815_v1 = vpop.permute.xlu1 %2814 }
0x36c3   :  { %4225 = vmatmul.mubr.msk.f32.vlgmr.msra.gmra.mrb[24].mxu1 %vm554_vm5, %v2815_v1 }
0x36c4   :  { %4449 = vmatpush3.bf16.msra.mxu1 %v5659_v41  ;;  %4246 = vmatprep.mubr.msk.f32.mxu1 %vm5042_vm2, %v5043_v32 }
0x36c5   :  { %4450 = vmatprep.subr.bf16.mxu1 %v5041_v27 }
0x36c8   :  { %4452 = vmatpush3.bf16.msra.mxu1 %v5662_v57 }
0x36c9   :  { %4459 = vmatprep.subr.bf16.mxu1 %v5041_v27 }
0x3796   :  { %v2884_v3 = vpop.f32.mrb[24].mxu1 }
0x3797   :  { %v2889_v5 = vrot.slane %v2884_v3, 2  ;;  %v4226_v6 = vpop.f32.mrb[25].mxu1 }
0x3798   :  { %v4716_v6 = vld [vmem:[%s5880_s23] sm:$0xff] }
0x3799   :  { %v2891_v7 = vadd.f32 %v2889_v5, %v5689_v4 }
0x379b   :  { %4676 = vtanh.f32 %v2891_v7  ;;  %v3788_v58 = vmul.f32 -1.442695, %v2891_v7 }
0x379d   :  { %4678 = vpow2.f32 %v3788_v58 }
0x37a5   :  { %v4677_v8 = vpop.eup %4676 }
0x37a6   :  { %2904 = vrot.lane.b32.xlu0 %v4677_v8, %s5044_s5 }
0x37a7   :  { %v4679_v9 = vpop.eup %4678 }
0x37a8   :  { %v2895_v11 = vadd.f32 1.0, %v4679_v9 }
0x37aa   :  { %4680 = vrcp.f32 %v2895_v11 }
0x37b4   :  { %v4681_v12 = vpop.eup %4680 }
0x37b5   :  { %v2902_v16 = vmul.f32 %v4681_v12, %v2900_v14 }
0x3818   :  { %v2905_v13 = vpop.permute.xlu0 %2904 }
0x3819   :  { %v2907_v63 = vmul.f32 %v4681_v12, %v2905_v13 }
0x381b   :  { %2909 = vrot.lane.b32.xlu1 %v2907_v63, %s5044_s5 }
0x388d   :  { %v2910_v17 = vpop.permute.xlu1 %2909 }
0x388e   :  { %v2912_v18 = vadd.f32 %v2910_v17, %v2902_v16 }
0x3890   :  { %4682 = vtanh.f32 %v2912_v18  ;;  %v3008_v36 = vrot.slane %v2912_v18, 6 }
0x389a   :  { %v4683_v4 = vpop.eup %4682 }
0x389b   :  { %2915 = vrot.lane.b32.xlu0 %v4683_v4, %s5044_s5 }
0x390d   :  { %v2916_v19 = vpop.permute.xlu0 %2915 }
0x390e   :  { %v5738_v20 = vmul.f32 %v4681_v12, %v2916_v19 }
0x3910   :  { %v2924_v21 = vrot.slane %v5738_v20, 6 }
0x3912   :  { %2925 = vrot.lane.b32.xlu1 %v2924_v21, %s5045_s20 }
0x3984   :  { %v2926_v22 = vpop.permute.xlu1 %2925 }
0x3985   :  { %4236 = vmatmul.mubr.msk.f32.vlgmr.msra.gmra.mrb[22].mxu0 %vm554_vm5, %v2926_v22 }
0x3986   :  { %4455 = vmatpush3.bf16.msra.mxu0 %v5659_v41  ;;  %4257 = vmatprep.mubr.msk.f32.mxu0 %vm5042_vm2, %v5043_v32 }
0x3987   :  { %4456 = vmatprep.subr.bf16.mxu0 %v5041_v27 }
0x398a   :  { %4458 = vmatpush3.bf16.msra.mxu0 %v5662_v57 }
0x398b   :  { %4466 = vmatprep.subr.bf16.mxu0 %v4465_v60 }
0x3a58   :  { %v2995_v23 = vpop.f32.mrb[22].mxu0 }
0x3a59   :  { %v2999_v25 = vadd.f32 %v2995_v23, %v5687_v2  ;;  %v4237_v26 = vpop.f32.mrb[23].mxu0 }
0x3a5b   :  { %4684 = vtanh.f32 %v2999_v25  ;;  %v3790_v28 = vmul.f32 -1.442695, %v2999_v25 }
0x3a5d   :  { %4686 = vpow2.f32 %v3790_v28 }
0x3a65   :  { %v4685_v56 = vpop.eup %4684 }
0x3a66   :  { %3012 = vrot.lane.b32.xlu0 %v4685_v56, %s5044_s5 }
0x3a67   :  { %v4687_v31 = vpop.eup %4686 }
0x3a68   :  { %v3003_v33 = vadd.f32 1.0, %v4687_v31 }
0x3a6a   :  { %4688 = vrcp.f32 %v3003_v33 }
0x3a74   :  { %v4689_v34 = vpop.eup %4688 }
0x3a75   :  { %v3010_v10 = vmul.f32 %v4689_v34, %v3008_v36 }
0x3ad8   :  { %v3013_v61 = vpop.permute.xlu0 %3012 }
0x3ad9   :  { %v3015_v35 = vmul.f32 %v4689_v34, %v3013_v61 }
0x3adb   :  { %3017 = vrot.lane.b32.xlu1 %v3015_v35, %s5044_s5 }
0x3b4d   :  { %v3018_v37 = vpop.permute.xlu1 %3017 }
0x3b4e   :  { %v3020_v38 = vadd.f32 %v3018_v37, %v3010_v10 }
0x3b50   :  { %4690 = vtanh.f32 %v3020_v38 }
0x3b5a   :  { %v4691_v53 = vpop.eup %4690 }
0x3b5b   :  { %3023 = vrot.lane.b32.xlu0 %v4691_v53, %s5044_s5 }
0x3bcd   :  { %v3024_v30 = vpop.permute.xlu0 %3023 }
0x3bce   :  { %v3026_v15 = vmul.f32 %v4689_v34, %v3024_v30 }
0x3bd0   :  { %3028 = vrot.lane.b32.xlu1 %v3026_v15, %s5045_s20 }
0x3c42   :  { %v3029_v40 = vpop.permute.xlu1 %3028 }
0x3c43   :  { %3031 = vst.msk [vmem:[#allocation2 + $0x8] sm:$0x3] %vm657_vm4, %v3029_v40  ;;  %4247 = vmatmul.mubr.msk.f32.vlgmr.msra.gmra.mrb[26].mxu1 %vm554_vm5, %v3029_v40 }
0x3c44   :  { %4461 = vmatpush3.bf16.msra.mxu1 %v5659_v41  ;;  %4268 = vmatprep.mubr.msk.f32.mxu1 %vm5042_vm2, %v5043_v32 }
0x3c45   :  { %4462 = vmatprep.subr.bf16.mxu1 %v5041_v27  ;;  %v3116_v27 = vrot.slane %v3020_v38, 6 }
0x3c48   :  { %4464 = vmatpush3.bf16.msra.mxu1 %v5662_v57 }
0x3d16   :  { %v3100_v24 = vpop.f32.mrb[26].mxu1 }
0x3d17   :  { %v3105_v42 = vrot.slane %v3100_v24, 6  ;;  %v4248_v43 = vpop.f32.mrb[27].mxu1  ;;  %v3362_v24 = vld [vmem:[#allocation19] sm:$0xf] }
0x3d18   :  { %v3520_v43 = vld [vmem:[%s5862_s15] sm:$0xff] }
0x3d19   :  { %v3107_v44 = vadd.f32 %v3105_v42, %v5687_v2 }
0x3d1b   :  { %4692 = vtanh.f32 %v3107_v44  ;;  %v3792_v46 = vmul.f32 -1.442695, %v3107_v44  ;;  %v3521_v44 = vld [vmem:[%s5862_s15 + $0x8] sm:$0xff] }
0x3d1d   :  { %4694 = vpow2.f32 %v3792_v46  ;;  %v3522_v46 = vld [vmem:[%s5862_s15 + $0x10] sm:$0xff] }
0x3d25   :  { %v4693_v29 = vpop.eup %4692 }
0x3d26   :  { %3120 = vrot.lane.b32.xlu0 %v4693_v29, %s5044_s5  ;;  %v4469_v29 = vpack.c.bf16 %v3521_v44, %v3520_v43 }
0x3d27   :  { %v4695_v48 = vpop.eup %4694 }
0x3d28   :  { %v3111_v41 = vadd.f32 1.0, %v4695_v48  ;;  %v3523_v48 = vld [vmem:[%s5862_s15 + $0x18] sm:$0xff] }
0x3d2a   :  { %4696 = vrcp.f32 %v3111_v41  ;;  %v4473_v41 = vpack.c.bf16 %v3523_v48, %v3522_v46 }
0x3d34   :  { %v4697_v45 = vpop.eup %4696 }
0x3d35   :  { %v3118_v57 = vmul.f32 %v4697_v45, %v3116_v27 }
0x3d98   :  { %v3121_v32 = vpop.permute.xlu0 %3120 }
0x3d99   :  { %v3123_v49 = vmul.f32 %v4697_v45, %v3121_v32 }
0x3d9b   :  { %3125 = vrot.lane.b32.xlu1 %v3123_v49, %s5044_s5 }
0x3e0d   :  { %v3126_v50 = vpop.permute.xlu1 %3125 }
0x3e0e   :  { %v3128_v52 = vadd.f32 %v3126_v50, %v3118_v57 }
0x3e10   :  { %4698 = vtanh.f32 %v3128_v52  ;;  %v3227_v16 = vrot.slane %v3128_v52, 6  ;;  %v3616_v52 = vld [vmem:[%s5864_s17] sm:$0xff] }
0x3e1a   :  { %v4699_v54 = vpop.eup %4698 }
0x3e1b   :  { %3131 = vrot.lane.b32.xlu0 %v4699_v54, %s5044_s5  ;;  %v3617_v54 = vld [vmem:[%s5864_s17 + $0x8] sm:$0x3]  ;;  %s3718_s17 = sshll.u32 %s5047_s19, 4  ;;  %s3719_s17 = int_to_ptr.vmem [resolvable:$true] %s3718_s17 }
0x3e1c   :  { %v4477_v55 = vpack.c.bf16 %v3617_v54, %v3616_v52  ;;  %s4982_s6 = scalar_lea.vmem %s3719_s17, 256  ;;  %p4987_p13 = scmp.lt.s32.totalorder %s3719_s17, %s3719_s17 }
0x3e1d   :  { %p4983_p12 = scmp.ne.s32.totalorder %s3719_s17, %s4982_s6  ;;  %p4988_p0 = scmp.lt.s32.totalorder %s4982_s6, %s4982_s6 }
0x3e1e   :  { %4479 = vmatprep.subr.msk.bf16.mxu1 %vm4478_vm11, %v4477_v55 }
0x3e1f   :  { %p4989_p1 = por %p4988_p0, %p4987_p13 }
0x3e21   :  { %p4990_p2 = pnand %p4989_p1, %p4983_p12 }
0x3e8d   :  { %v3132_v0 = vpop.permute.xlu0 %3131 }
0x3e8e   :  { %v5764_v1 = vmul.f32 %v4697_v45, %v3132_v0 }
0x3e90   :  { %v3140_v3 = vrot.slane %v5764_v1, 2 }
0x3e92   :  { %3141 = vrot.lane.b32.xlu1 %v3140_v3, %s5045_s20 }
0x3f04   :  { %v3142_v5 = vpop.permute.xlu1 %3141 }
0x3f05   :  { %4258 = vmatmul.mubr.msk.f32.vlgmr.msra.gmra.mrb[24].mxu0 %vm554_vm5, %v3142_v5  ;;  %v3805_v5 = vld [vmem:[%s5865_s18] ss:$0 sm:$0xff] }
0x3f06   :  { %4468 = vmatpush3.bf16.msra.mxu0 %v4465_v60  ;;  %4275 = vmatprep.mubr.msk.f32.mxu0 %vm381_vm3, %v5373_v47 }
0x3f07   :  { %4278 = vmatprep.subr.msk.mxu0 %vm220_vm0, %v3362_v24 }
0x3f09   :  { %4276 = vmatmul.mubr.msk.f32.vlgmr.msra.gmra.mrb[26].mxu0 %vm381_vm3, %v5377_v51 }
0x3f0a   :  { %4280 = vmatprep.mubr.msk.f32.mxu0 %vm213_vm1, %v4716_v6  ;;  %4279 = vmatpush3.msk.msra.mxu0 %vm220_vm0, %v3362_v24 }
0x3f0b   :  { %4470 = vmatprep.subr.bf16.mxu0 %v4469_v29 }
0x3fd8   :  { %v3211_v7 = vpop.f32.mrb[24].mxu0 }
0x3fd9   :  { %v3216_v8 = vrot.slane %v3211_v7, 4  ;;  %v4259_v58 = vpop.f32.mrb[25].mxu0 }
0x3fdb   :  { %v3218_v9 = vadd.f32 %v3216_v8, %v5687_v2 }
0x3fdd   :  { %4700 = vtanh.f32 %v3218_v9  ;;  %v3794_v12 = vmul.f32 -1.442695, %v3218_v9 }
0x3fdf   :  { %4702 = vpow2.f32 %v3794_v12 }
0x3fe7   :  { %v4701_v11 = vpop.eup %4700 }
0x3fe8   :  { %3231 = vrot.lane.b32.xlu0 %v4701_v11, %s5044_s5 }
0x3fe9   :  { %v4703_v47 = vpop.eup %4702 }
0x3fea   :  { %v3222_v13 = vadd.f32 1.0, %v4703_v47 }
0x3fec   :  { %4704 = vrcp.f32 %v3222_v13 }
0x3ff6   :  { %v4705_v51 = vpop.eup %4704 }
0x3ff7   :  { %v3229_v17 = vmul.f32 %v4705_v51, %v3227_v16 }
0x405a   :  { %v3232_v63 = vpop.permute.xlu0 %3231 }
0x405b   :  { %v3234_v14 = vmul.f32 %v4705_v51, %v3232_v63 }
0x405d   :  { %3236 = vrot.lane.b32.xlu1 %v3234_v14, %s5044_s5 }
0x40cf   :  { %v3237_v18 = vpop.permute.xlu1 %3236 }
0x40d0   :  { %v3239_v4 = vadd.f32 %v3237_v18, %v3229_v17 }
0x40d2   :  { %4706 = vtanh.f32 %v3239_v4 }
0x40dc   :  { %v4707_v19 = vpop.eup %4706 }
0x40dd   :  { %3242 = vrot.lane.b32.xlu0 %v4707_v19, %s5044_s5 }
0x414f   :  { %v3243_v21 = vpop.permute.xlu0 %3242 }
0x4150   :  { %v3245_v22 = vmul.f32 %v4705_v51, %v3243_v21 }
0x4152   :  { %v3251_v23 = vrot.slane %v3245_v22, 4 }
0x4154   :  { %3252 = vrot.lane.b32.xlu1 %v3251_v23, %s5045_s20 }
0x41c6   :  { %v3253_v25 = vpop.permute.xlu1 %3252 }
0x41c7   :  { %4269 = vmatmul.mubr.msk.f32.vlgmr.msra.gmra.mrb[28].mxu1 %vm554_vm5, %v3253_v25 }
0x41c8   :  { %4482 = vmatpush3.bf16.msk.msra.mxu1 %vm4478_vm11, %v4477_v55 }
0x429a   :  { %v3322_v26 = vpop.f32.mrb[28].mxu1 }
0x429b   :  { %v3327_v56 = vrot.slane %v3322_v26, 2  ;;  %v4270_v28 = vpop.f32.mrb[29].mxu1 }
0x429d   :  { %v3329_v31 = vadd.f32 %v3327_v56, %v5687_v2  ;;  %v3338_v2 = vrot.slane %v3239_v4, 6 }
0x429f   :  { %4708 = vtanh.f32 %v3329_v31  ;;  %v3796_v34 = vmul.f32 -1.442695, %v3329_v31 }
0x42a1   :  { %4710 = vpow2.f32 %v3796_v34 }
0x42a9   :  { %v4709_v33 = vpop.eup %4708 }
0x42aa   :  { %3342 = vrot.lane.b32.xlu0 %v4709_v33, %s5044_s5 }
0x42ab   :  { %v4711_v61 = vpop.eup %4710 }
0x42ac   :  { %v3333_v35 = vadd.f32 1.0, %v4711_v61 }
0x42ae   :  { %4712 = vrcp.f32 %v3333_v35 }
0x42b8   :  { %v4713_v36 = vpop.eup %4712 }
0x42b9   :  { %v3340_v38 = vmul.f32 %v4713_v36, %v3338_v2 }
0x431c   :  { %v3343_v10 = vpop.permute.xlu0 %3342 }
0x431d   :  { %v3345_v37 = vmul.f32 %v4713_v36, %v3343_v10 }
0x431f   :  { %3347 = vrot.lane.b32.xlu1 %v3345_v37, %s5044_s5 }
0x4323   :  { %2698 = vrot.lane.b32.xlu1 %v5708_v39, %s5045_s20 }
0x4327   :  { %2920 = vrot.lane.b32.xlu1 %v5738_v20, %s5045_s20  ;;  %v4717_v20 = vld [vmem:[%s5880_s23 + $0x8] sm:$0xff] }
0x4328   :  { %4281 = vmatmul.mubr.msk.f32.vlgmr.msra.gmra.mrb[26].mxu0 %vm213_vm1, %v4717_v20 }
0x4329   :  { %4472 = vmatpush3.bf16.msra.mxu0 %v4469_v29 }
0x432a   :  { %4474 = vmatprep.subr.bf16.mxu0 %v4473_v41 }
0x432b   :  { %3247 = vrot.lane.b32.xlu1 %v3245_v22, %s5045_s20 }
0x432d   :  { %4476 = vmatpush3.bf16.msra.mxu0 %v4473_v41 }
0x4391   :  { %v3348_v53 = vpop.permute.xlu1 %3347 }
0x4392   :  { %v3350_v30 = vadd.f32 %v3348_v53, %v3340_v38 }
0x4394   :  { %4714 = vtanh.f32 %v3350_v30 }
0x4395   :  { %v2699_v15 = vpop.permute.xlu1 %2698 }
0x4396   :  { %2701 = vst.msk [vmem:[#allocation2] sm:$0xc] %vm766_vm6, %v2699_v15 }
0x4399   :  { %v2921_v40 = vpop.permute.xlu1 %2920 }
0x439a   :  { %2923 = vst.msk [vmem:[#allocation2] sm:$0xc0] %vm990_vm7, %v2921_v40 }
0x439d   :  { %v3248_v39 = vpop.permute.xlu1 %3247 }
0x439e   :  { %v4715_v42 = vpop.eup %4714  ;;  %3250 = vst.msk [vmem:[#allocation2 + $0x8] sm:$0x30] %vm878_vm8, %v3248_v39 }
0x439f   :  { %3353 = vrot.lane.b32.xlu0 %v4715_v42, %s5044_s5 }
0x43a3   :  { %2809 = vrot.lane.b32.xlu0 %v5723_v62, %s5045_s20 }
0x43a7   :  { %3136 = vrot.lane.b32.xlu0 %v5764_v1, %s5045_s20 }
0x4411   :  { %v3354_v45 = vpop.permute.xlu0 %3353 }
0x4412   :  { %v3356_v32 = vmul.f32 %v4713_v36, %v3354_v45 }
0x4414   :  { %3358 = vrot.lane.b32.xlu0 %v3356_v32, %s5045_s20 }
0x4415   :  { %v2810_v49 = vpop.permute.xlu0 %2809 }
0x4416   :  { %2812 = vst.msk [vmem:[#allocation2] sm:$0x30] %vm878_vm8, %v2810_v49 }
0x4419   :  { %v3137_v62 = vpop.permute.xlu0 %3136 }
0x441a   :  { %3139 = vst.msk [vmem:[#allocation2 + $0x8] sm:$0xc] %vm766_vm6, %v3137_v62 }
0x441d   :  { %v3518_v27 = vld [vmem:[#allocation2] sm:$0xff] }
0x441e   :  { %4291 = vmatprep.mubr.msk.f32.mxu0 %vm554_vm5, %v3518_v27 }
0x4486   :  { %v3359_v57 = vpop.permute.xlu0 %3358 }
0x4487   :  { %3361 = vst.msk [vmem:[#allocation2 + $0x8] sm:$0xc0] %vm990_vm7, %v3359_v57 }
0x448e   :  { %v3519_v50 = vld [vmem:[#allocation2 + $0x8] sm:$0xff] }
0x448f   :  { %4292 = vmatmul.mubr.msk.f32.vlgmr.msra.gmra.mrb[26].mxu0 %vm554_vm5, %v3519_v50 }
0x4562   :  { %v4293_v60 = vpop.f32.mrb[26].mxu0 }
0x4563   :  { %v3596_v0 = vpop.f32.mrb[27].mxu0  ;;  %v3615_v3 = vadd.f32 %v4293_v60, %v3804_v59 }
0x4564   :  { %v3614_v1 = vadd.f32 %v3804_v59, %v3596_v0 }
0x4566   :  { %4298 = vmatprep.mubr.msk.f32.mxu1 %vm3625_vm12, %v3614_v1 }
0x4567   :  { %4299 = vmatmul.mubr.msk.f32.vlgmr.msra.gmra.mrb[30].mxu1 %vm3625_vm12, %v3615_v3 }
0x463a   :  { %v4300_v6 = vpop.f32.mrb[30].mxu1 }
0x463b   :  { %v3708_v7 = vadd.f32 %v4300_v6, %v3805_v5  ;;  %v3702_v8 = vpop.f32.mrb[31].mxu1 }
0x463c   :  { %v3703_v58 = vadd.f32 %v3805_v5, %v3702_v8 }
0x463d   :  { %3712 = vst [vmem:[#allocation24 + $0x8] sm:$0xff] %v3708_v7 }
0x463e   :  { %3711 = vst [vmem:[#allocation24] sm:$0xff] %v3703_v58 }
0x463f   :  { %4993 = shalt.err (!%p4990_p2)
}
0x4640   :  { %s5881_s25 = sld [smem:[#allocation37_spill]] }
0x4646   :  { %s4994_s18 = scalar_lea.hbm %s5881_s25, 256 }
0x4647   :  { %p4995_p3 = scmp.ne.s32.totalorder %s5881_s25, %s4994_s18  ;;  %p4998_p4 = scmp.lt.u32.totalorder %s4994_s18, %s5881_s25 }
0x4649   :  { %p5000_p5 = pnand %p4998_p4, %p4995_p3 }
0x464b   :  { %5003 = shalt.err (!%p5000_p5)
}
0x464c   :  { %3724 = dma.vmem_to_hbm [thread:$0]  %s3719_s17, 256, %s5881_s25, [#allocation6], %s5022_s30, %s5022_s30, %s5023_s2  }
0x464d   :  { %5018 = dma.done.wait [#allocation6], 256  }
0x464e   :  { %5019 = vsyncadd [#allocation6], 4294967040 }
0x464f   :  { %3728 = vsyncpa [#allocation5], 1 }
0x4650   :  { %3729 = vsyncpa [#allocation8], 1 }
0x4651   :  { %3730 = vsyncpa [#allocation11], 1 }
0x4652   :  { %3731 = vsyncpa [#allocation14], 1 }
0x4653   :  { %3732 = vsyncpa [#allocation17], 1 }
0x4654   :  { %3733 = vsyncpa [#allocation20], 1 }
0x4655   :  { %3734 = vsyncpa [#allocation23], 1 }
0x4656   :  { %3735 = vsyncpa [#allocation6], 1 }

</bundles_post_ra>
